<compile_context>
chip_gen: v6e
topology: v6e:2x2x1
jax: 0.10.0
libtpu: 0.0.40
codegen_flags: <defaults>
</compile_context>

<pallas_src>
import functools

import jax
import jax.numpy as jnp
from jax.experimental import pallas as pl
from jax.experimental.pallas import tpu as pltpu

HIDDEN1 = 1024      # conv1 output channels
HIDDEN2 = 256       # conv2 / conv3 output channels
H1_CHUNK = 256      # conv1/conv2 hidden-dim chunk size
ROWS_TARGET = 2048  # target matmul rows (bt * tn) per grid step
KPAD = 128          # lane-dense output slab width


def _round_up(a, m):
    return -(-a // m) * m


def _use_bf16_epilogue():
    """bf16 bias+ReLU only on chips with bf16-capable VPUs (v6e / v7x)."""
    try:
        kind = jax.devices()[0].device_kind.lower()
    except Exception:
        return True
    return not any(v in kind for v in ("v2", "v3", "v4", "v5"))


def rot_green_kernel(x_ref, w1_ref, b1_ref, w2_ref, b2_ref,
                     w3_ref, b3_ref, w4_ref, b4_ref, out_ref, acc_ref,
                     *, bf16_h1, n_valid, mask_n):
    """One (bt batches x tn points) tile of the forward pass."""
    j = pl.program_id(1)
    bt, tn, fdim = x_ref.shape

    # Reset the running per-batch channel max at the first N tile of a band.
    @pl.when(j == 0)
    def _init():
        acc_ref[...] = jnp.full(acc_ref.shape, -jnp.inf, jnp.float32)

    # conv1 (+folded bn1) + relu and conv2 (+folded bn2), chunked over the
    # 1024-wide hidden dim so only a (rows, 256) slice of h1 is ever live.
    x = x_ref[...].reshape(bt * tn, fdim)                      # (rows, f) bf16
    h2 = None
    for c0 in range(0, HIDDEN1, H1_CHUNK):
        c1 = c0 + H1_CHUNK
        h1c = jnp.dot(x, w1_ref[:, c0:c1], preferred_element_type=jnp.float32)
        if bf16_h1:
            # bf16 bias + ReLU: halves the dominant element-wise pass on
            # bf16-capable VPUs (v6e / v7x).
            h1c = jnp.maximum(h1c.astype(jnp.bfloat16) + b1_ref[:, c0:c1], 0)
        else:
            # f32 epilogue for v5e and older (no bf16 VALUs; MXU-bound there).
            h1c = jnp.maximum(h1c + b1_ref[:, c0:c1], 0.0).astype(jnp.bfloat16)
        p = jnp.dot(h1c, w2_ref[c0:c1, :], preferred_element_type=jnp.float32)
        h2 = p if h2 is None else h2 + p
    h2 = jnp.maximum(h2 + b2_ref[...], 0.0)                    # (rows, 256) f32

    # torch.max(x, 2)[0]: per-batch max over this tile's points, folded into
    # the running accumulator. Leading-dim reshape is layout-free; the max is
    # a single cross-sublane XLU reduce.
    h2 = h2.reshape(bt, tn, HIDDEN2)
    if mask_n:  # N was padded; keep padded points out of the global max.
        pt = j * tn + jax.lax.broadcasted_iota(jnp.int32, (1, tn, 1), 1)
        h2 = jnp.where(pt < n_valid, h2, -jnp.inf)
    acc_ref[...] = jnp.maximum(acc_ref[...], jnp.max(h2, axis=1))

    # Epilogue (last N tile): conv3 (+folded bn3) + relu, dropout, conv4,
    # written as one lane-dense (bt, 128) row block.
    @pl.when(j == pl.num_programs(1) - 1)
    def _finalize():
        g = acc_ref[...].astype(jnp.bfloat16)                  # (bt, 256)
        h3 = jnp.dot(g, w3_ref[...], preferred_element_type=jnp.float32) + b3_ref[...]
        h3 = jnp.maximum(h3, 0.0).astype(jnp.bfloat16)
        # TODO(synk): Dropout(p=0.2) is identity in eval mode; training-mode
        # dropout (pltpu.prng_* + mask) not implemented here.
        out_ref[...] = (jnp.dot(h3, w4_ref[...], preferred_element_type=jnp.float32)
                        + b4_ref[...])


def rot_green_forward(x_ncl, params, *, bf16_h1=None):
    """x_ncl: (B, f, N) float32 in PyTorch NCL layout. Returns (B, k) float32."""
    w1, b1, w2, b2, w3, b3, w4, b4 = params
    B, f, N = x_ncl.shape
    k = w4.shape[1]
    if bf16_h1 is None:
        bf16_h1 = _use_bf16_epilogue()

    # NCL -> channels-last, fused with the bf16 downcast for the MXU.
    x = jnp.transpose(x_ncl, (0, 2, 1)).astype(jnp.bfloat16)   # (B, N, f)

    # ---- tile sizes --------------------------------------------------------
    # Batch bands: bt=8 keeps the (bt, 128) output block sublane-aligned and,
    # for B >= 8, guarantees >= 2 bands so the "parallel" axis feeds both v7x
    # TensorCores. For B < 8 the batch padding (> 2x work) is not worth it.
    if B >= 16:
        bt = 8
        b_pad = _round_up(B, bt)
    elif B >= 8:
        bt = 8
        b_pad = 2 * bt
    else:
        bt = B
        b_pad = B

    # Point tile: multiple of 16 (bf16 sublanes), sized so bt*tn ~ ROWS_TARGET
    # rows feed the MXU per grid step while intermediates stay a few MiB
    # (fits v7x's 64 MiB VMEM with margin). N is padded up to a multiple of tn
    # and padded points are masked to -inf before the max.
    tn = max(16, min(_round_up(N, 16), (ROWS_TARGET // bt) // 16 * 16))
    n_pad = _round_up(N, tn)

    if b_pad != B or n_pad != N:
        x = jnp.pad(x, ((0, b_pad - B), (0, n_pad - N), (0, 0)))

    # Lane-dense output slab: pad k (=4) up to 128 lanes; sliced below.
    w4p = jnp.zeros((w4.shape[0], KPAD), w4.dtype).at[:, :k].set(w4)
    b4p = jnp.zeros((1, KPAD), b4.dtype).at[:, :k].set(b4)

    # bf16 weights for the MXU; biases stay f32 except b1 when the bf16
    # bias+ReLU epilogue is enabled.
    w1b, w2b, w3b, w4b = (w.astype(jnp.bfloat16) for w in (w1, w2, w3, w4p))
    b1b = b1.astype(jnp.bfloat16) if bf16_h1 else b1

    grid = (b_pad // bt, n_pad // tn)
    kern = functools.partial(rot_green_kernel, bf16_h1=bf16_h1,
                             n_valid=N, mask_n=(n_pad != N))

    consts = (w1b, b1b, w2b, b2, w3b, b3, w4b, b4p)
    flops = (2 * b_pad * n_pad * (f * HIDDEN1 + HIDDEN1 * HIDDEN2)
             + 2 * b_pad * (HIDDEN2 * HIDDEN2 + HIDDEN2 * k))
    bytes_accessed = int(x.size * 2
                         + sum(a.size * a.dtype.itemsize for a in consts)
                         + b_pad * KPAD * 4)

    def call(single_buffer_weights):
        if single_buffer_weights:
            # Constant index maps never re-DMA; one buffer frees ~1 MiB VMEM.
            const = lambda a: pl.BlockSpec(a.shape, lambda i, j: (0, 0),
                                           pipeline_mode=pl.Buffered(1))
        else:
            const = lambda a: pl.BlockSpec(a.shape, lambda i, j: (0, 0))
        out = pl.pallas_call(
            kern,
            out_shape=jax.ShapeDtypeStruct((b_pad, KPAD), jnp.float32),
            grid_spec=pltpu.PrefetchScalarGridSpec(
                num_scalar_prefetch=0,
                grid=grid,
                in_specs=[pl.BlockSpec((bt, tn, f), lambda i, j: (i, j, 0))]
                         + [const(a) for a in consts],
                out_specs=pl.BlockSpec((bt, KPAD), lambda i, j: (i, 0)),
                scratch_shapes=[pltpu.VMEM((bt, HIDDEN2), jnp.float32)],
            ),
            compiler_params=pltpu.CompilerParams(
                # Batch bands shard across TensorCores (v7x megacore); the N
                # axis carries the running-max accumulator -> "arbitrary".
                dimension_semantics=("parallel", "arbitrary"),
                # Headroom for ~2048-row tiles; safely under v7x's 64 MiB.
                vmem_limit_bytes=48 * 1024 * 1024,
            ),
            cost_estimate=pl.CostEstimate(
                flops=flops, transcendentals=0, bytes_accessed=bytes_accessed),
        )(x, *consts)
        return jax.block_until_ready(out)

    try:
        out = call(True)
    except Exception:
        # pl.Buffered(1) / pipeline_mode unsupported on this jax version:
        # fall back to default double-buffered weight blocks.
        out = call(False)

    return out[:B, :k]


def fold_bn(w, b, gamma, beta, mean, var, eps=1e-5):
    """Fold eval-mode BatchNorm1d into a channels-last matmul weight/bias.
    w: (Cin, Cout), b: (1, Cout). BN(z) = gamma*(z-mean)/sqrt(var+eps)+beta."""
    scale = gamma / jnp.sqrt(var + eps)
    w_f = w * scale[None, :]
    b_f = (b[0] - mean) * scale + beta
    return w_f, b_f[None, :]


def make_params(key, f, k):
    """Deterministic synthetic parameters (Conv1d weights transposed to
    (Cin, Cout), eval-mode BN folded where present)."""
    dims = [(f, HIDDEN1), (HIDDEN1, HIDDEN2), (HIDDEN2, HIDDEN2), (HIDDEN2, k)]
    keys = jax.random.split(key, 16)
    params = []
    ki = 0
    for i, (cin, cout) in enumerate(dims):
        w = 0.05 * jax.random.normal(keys[ki], (cin, cout), jnp.float32); ki += 1
        b = 0.05 * jax.random.normal(keys[ki], (1, cout), jnp.float32); ki += 1
        if i < 3:  # conv1/2/3 are followed by bn1/2/3
            gamma = 1.0 + 0.1 * jax.random.normal(keys[ki], (cout,), jnp.float32); ki += 1
            beta = 0.1 * jax.random.normal(keys[ki], (cout,), jnp.float32); ki += 1
            mean = 0.1 * jax.random.normal(jax.random.fold_in(keys[ki - 1], 1),
                                           (cout,), jnp.float32)
            var = jnp.abs(1.0 + 0.1 * jax.random.normal(
                jax.random.fold_in(keys[ki - 1], 2), (cout,), jnp.float32))
            w, b = fold_bn(w, b, gamma, beta, mean, var)
        params += [w, b]
    return tuple(params)


def rot_green_reference(x_ncl, params, *, bf16_h1):
    """Pure-JAX reference of the same (BN-folded, eval-mode) forward with the
    same bf16 cast points as the kernel."""
    w1, b1, w2, b2, w3, b3, w4, b4 = params
    bf = lambda a: a.astype(jnp.bfloat16)
    x = bf(jnp.transpose(x_ncl, (0, 2, 1)))                    # (B, N, f)
    h1 = jnp.einsum('bnf,fc->bnc', x, bf(w1), preferred_element_type=jnp.float32)
    if bf16_h1:
        h1 = jnp.maximum(bf(h1) + bf(b1), 0)                   # bf16 epilogue
    else:
        h1 = bf(jnp.maximum(h1 + b1, 0.0))
    h2 = jnp.maximum(
        jnp.einsum('bnc,cd->bnd', h1, bf(w2), preferred_element_type=jnp.float32)
        + b2, 0.0)
    g = jnp.max(h2, axis=1)                                    # (B, 256)
    h3 = jnp.maximum(jnp.dot(bf(g), bf(w3), preferred_element_type=jnp.float32)
                     + b3, 0.0)
    out = jnp.dot(bf(h3), bf(w4), preferred_element_type=jnp.float32) + b4
    return out                                                 # (B, k)


if __name__ == "__main__":
    key = jax.random.PRNGKey(0)
    bf16_h1 = _use_bf16_epilogue()

    # Case 1: small demo shapes (feat_c_R = 128, R_c = 4, 64 points, batch 2).
    # Case 2: exercises batch-band padding (B=9 -> 2 bands on the parallel
    #         axis) and the N-padding mask (N=50 padded to 64).
    for (B, f, N, k) in [(2, 128, 64, 4), (9, 128, 50, 4)]:
        kx, kp = jax.random.split(jax.random.fold_in(key, N))
        x = jax.random.normal(kx, (B, f, N), jnp.float32)      # PyTorch NCL layout
        params = make_params(kp, f, k)

        out = jax.block_until_ready(rot_green_forward(x, params, bf16_h1=bf16_h1))
        ref = rot_green_reference(x, params, bf16_h1=bf16_h1)

        assert out.shape == (B, k), out.shape
        err = float(jnp.max(jnp.abs(out - ref)))
        assert jnp.allclose(out, ref, atol=2e-3, rtol=2e-3), err

    print("KERNEL_OK")
</pallas_src>

<mosaic_0001>
module attributes {stable_mosaic.version = 11 : i64} {
  func.func @rot_green_kernel(%arg0: i32, %arg1: i32, %arg2: memref<2x64x128xbf16, #tpu.memory_space<vmem>>, %arg3: memref<128x1024xbf16, #tpu.memory_space<vmem>>, %arg4: memref<1x1024xbf16, #tpu.memory_space<vmem>>, %arg5: memref<1024x256xbf16, #tpu.memory_space<vmem>>, %arg6: memref<1x256xf32, #tpu.memory_space<vmem>>, %arg7: memref<256x256xbf16, #tpu.memory_space<vmem>>, %arg8: memref<1x256xf32, #tpu.memory_space<vmem>>, %arg9: memref<256x128xbf16, #tpu.memory_space<vmem>>, %arg10: memref<1x128xf32, #tpu.memory_space<vmem>>, %arg11: memref<2x128xf32, #tpu.memory_space<vmem>>, %arg12: memref<2x256xf32, #tpu.memory_space<vmem>>) attributes {dimension_semantics = [#tpu.dimension_semantics<parallel>, #tpu.dimension_semantics<arbitrary>], iteration_bounds = array<i64: 1, 1>, scalar_prefetch = 0 : i64, scratch_operands = 1 : i64, tpu.core_type = #tpu.core_type<tc>, window_params = [{transform_indices = @transform_0, window_bounds = array<i64: 2, 64, 128>}, {pipeline_mode = #tpu.pipeline_mode<synchronous>, transform_indices = @transform_1, window_bounds = array<i64: 128, 1024>}, {pipeline_mode = #tpu.pipeline_mode<synchronous>, transform_indices = @transform_2, window_bounds = array<i64: 1, 1024>}, {pipeline_mode = #tpu.pipeline_mode<synchronous>, transform_indices = @transform_3, window_bounds = array<i64: 1024, 256>}, {pipeline_mode = #tpu.pipeline_mode<synchronous>, transform_indices = @transform_4, window_bounds = array<i64: 1, 256>}, {pipeline_mode = #tpu.pipeline_mode<synchronous>, transform_indices = @transform_5, window_bounds = array<i64: 256, 256>}, {pipeline_mode = #tpu.pipeline_mode<synchronous>, transform_indices = @transform_6, window_bounds = array<i64: 1, 256>}, {pipeline_mode = #tpu.pipeline_mode<synchronous>, transform_indices = @transform_7, window_bounds = array<i64: 256, 128>}, {pipeline_mode = #tpu.pipeline_mode<synchronous>, transform_indices = @transform_8, window_bounds = array<i64: 1, 128>}, {transform_indices = @transform_9, window_bounds = array<i64: 2, 128>}]} {
    %c0_i32 = arith.constant 0 : i32
    %0 = arith.cmpi eq, %arg1, %c0_i32 : i32
    %1 = arith.extui %0 : i1 to i32
    %c0_i32_0 = arith.constant 0 : i32
    %2 = arith.cmpi ne, %1, %c0_i32_0 : i32
    scf.if %2 {
      %cst_45 = arith.constant 0xFF800000 : f32
      %61 = vector.broadcast %cst_45 : f32 to vector<2x256xf32>
      %c0_46 = arith.constant 0 : index
      %c0_47 = arith.constant 0 : index
      %62 = vector.load %arg12[%c0_46, %c0_47] : memref<2x256xf32, #tpu.memory_space<vmem>>, vector<2x256xf32>
      tpu.vector_store %arg12[%c0_46, %c0_47], %61 {strides = array<i32>} : memref<2x256xf32, #tpu.memory_space<vmem>>, vector<2x256xf32>,
    } else {
    }
    %c0 = arith.constant 0 : index
    %c0_1 = arith.constant 0 : index
    %c0_2 = arith.constant 0 : index
    %3 = vector.load %arg2[%c0, %c0_1, %c0_2] : memref<2x64x128xbf16, #tpu.memory_space<vmem>>, vector<2x64x128xbf16>
    %4 = vector.shape_cast %3 : vector<2x64x128xbf16> to vector<128x128xbf16>
    %c0_3 = arith.constant 0 : index
    %c0_4 = arith.constant 0 : index
    %5 = vector.load %arg3[%c0_3, %c0_4] : memref<128x1024xbf16, #tpu.memory_space<vmem>>, vector<128x256xbf16>
    %cst = arith.constant dense<0.000000e+00> : vector<128x256xf32>
    %6 = tpu.matmul %4, %5, %cst {dimension_numbers = #tpu.dot_dimension_numbers<[1], [0], [0], [1], [0, 0, 1, 1], [], []>} : vector<128x128xbf16>, vector<128x256xbf16>, vector<128x256xf32> -> vector<128x256xf32>
    %7 = arith.truncf %6 : vector<128x256xf32> to vector<128x256xbf16>
    %c0_5 = arith.constant 0 : index
    %c0_6 = arith.constant 0 : index
    %8 = vector.load %arg4[%c0_5, %c0_6] : memref<1x1024xbf16, #tpu.memory_space<vmem>>, vector<1x256xbf16>
    %9 = vector.broadcast %8 : vector<1x256xbf16> to vector<128x256xbf16>
    %10 = arith.addf %7, %9 : vector<128x256xbf16>
    %cst_7 = arith.constant 0.000000e+00 : bf16
    %11 = vector.broadcast %cst_7 : bf16 to vector<128x256xbf16>
    %12 = arith.maximumf %10, %11 : vector<128x256xbf16>
    %c0_8 = arith.constant 0 : index
    %c0_9 = arith.constant 0 : index
    %13 = vector.load %arg5[%c0_8, %c0_9] : memref<1024x256xbf16, #tpu.memory_space<vmem>>, vector<256x256xbf16>
    %cst_10 = arith.constant dense<0.000000e+00> : vector<128x256xf32>
    %14 = tpu.matmul %12, %13, %cst_10 {dimension_numbers = #tpu.dot_dimension_numbers<[1], [0], [0], [1], [0, 0, 1, 1], [], []>} : vector<128x256xbf16>, vector<256x256xbf16>, vector<128x256xf32> -> vector<128x256xf32>
    %c0_11 = arith.constant 0 : index
    %c256 = arith.constant 256 : index
    %15 = vector.load %arg3[%c0_11, %c256] : memref<128x1024xbf16, #tpu.memory_space<vmem>>, vector<128x256xbf16>
    %cst_12 = arith.constant dense<0.000000e+00> : vector<128x256xf32>
    %16 = tpu.matmul %4, %15, %cst_12 {dimension_numbers = #tpu.dot_dimension_numbers<[1], [0], [0], [1], [0, 0, 1, 1], [], []>} : vector<128x128xbf16>, vector<128x256xbf16>, vector<128x256xf32> -> vector<128x256xf32>
    %17 = arith.truncf %16 : vector<128x256xf32> to vector<128x256xbf16>
    %c0_13 = arith.constant 0 : index
    %c256_14 = arith.constant 256 : index
    %18 = vector.load %arg4[%c0_13, %c256_14] : memref<1x1024xbf16, #tpu.memory_space<vmem>>, vector<1x256xbf16>
    %19 = vector.broadcast %18 : vector<1x256xbf16> to vector<128x256xbf16>
    %20 = arith.addf %17, %19 : vector<128x256xbf16>
    %cst_15 = arith.constant 0.000000e+00 : bf16
    %21 = vector.broadcast %cst_15 : bf16 to vector<128x256xbf16>
    %22 = arith.maximumf %20, %21 : vector<128x256xbf16>
    %c256_16 = arith.constant 256 : index
    %c0_17 = arith.constant 0 : index
    %23 = vector.load %arg5[%c256_16, %c0_17] : memref<1024x256xbf16, #tpu.memory_space<vmem>>, vector<256x256xbf16>
    %cst_18 = arith.constant dense<0.000000e+00> : vector<128x256xf32>
    %24 = tpu.matmul %22, %23, %cst_18 {dimension_numbers = #tpu.dot_dimension_numbers<[1], [0], [0], [1], [0, 0, 1, 1], [], []>} : vector<128x256xbf16>, vector<256x256xbf16>, vector<128x256xf32> -> vector<128x256xf32>
    %25 = arith.addf %14, %24 : vector<128x256xf32>
    %c0_19 = arith.constant 0 : index
    %c512 = arith.constant 512 : index
    %26 = vector.load %arg3[%c0_19, %c512] : memref<128x1024xbf16, #tpu.memory_space<vmem>>, vector<128x256xbf16>
    %cst_20 = arith.constant dense<0.000000e+00> : vector<128x256xf32>
    %27 = tpu.matmul %4, %26, %cst_20 {dimension_numbers = #tpu.dot_dimension_numbers<[1], [0], [0], [1], [0, 0, 1, 1], [], []>} : vector<128x128xbf16>, vector<128x256xbf16>, vector<128x256xf32> -> vector<128x256xf32>
    %28 = arith.truncf %27 : vector<128x256xf32> to vector<128x256xbf16>
    %c0_21 = arith.constant 0 : index
    %c512_22 = arith.constant 512 : index
    %29 = vector.load %arg4[%c0_21, %c512_22] : memref<1x1024xbf16, #tpu.memory_space<vmem>>, vector<1x256xbf16>
    %30 = vector.broadcast %29 : vector<1x256xbf16> to vector<128x256xbf16>
    %31 = arith.addf %28, %30 : vector<128x256xbf16>
    %cst_23 = arith.constant 0.000000e+00 : bf16
    %32 = vector.broadcast %cst_23 : bf16 to vector<128x256xbf16>
    %33 = arith.maximumf %31, %32 : vector<128x256xbf16>
    %c512_24 = arith.constant 512 : index
    %c0_25 = arith.constant 0 : index
    %34 = vector.load %arg5[%c512_24, %c0_25] : memref<1024x256xbf16, #tpu.memory_space<vmem>>, vector<256x256xbf16>
    %cst_26 = arith.constant dense<0.000000e+00> : vector<128x256xf32>
    %35 = tpu.matmul %33, %34, %cst_26 {dimension_numbers = #tpu.dot_dimension_numbers<[1], [0], [0], [1], [0, 0, 1, 1], [], []>} : vector<128x256xbf16>, vector<256x256xbf16>, vector<128x256xf32> -> vector<128x256xf32>
    %36 = arith.addf %25, %35 : vector<128x256xf32>
    %c0_27 = arith.constant 0 : index
    %c768 = arith.constant 768 : index
    %37 = vector.load %arg3[%c0_27, %c768] : memref<128x1024xbf16, #tpu.memory_space<vmem>>, vector<128x256xbf16>
    %cst_28 = arith.constant dense<0.000000e+00> : vector<128x256xf32>
    %38 = tpu.matmul %4, %37, %cst_28 {dimension_numbers = #tpu.dot_dimension_numbers<[1], [0], [0], [1], [0, 0, 1, 1], [], []>} : vector<128x128xbf16>, vector<128x256xbf16>, vector<128x256xf32> -> vector<128x256xf32>
    %39 = arith.truncf %38 : vector<128x256xf32> to vector<128x256xbf16>
    %c0_29 = arith.constant 0 : index
    %c768_30 = arith.constant 768 : index
    %40 = vector.load %arg4[%c0_29, %c768_30] : memref<1x1024xbf16, #tpu.memory_space<vmem>>, vector<1x256xbf16>
    %41 = vector.broadcast %40 : vector<1x256xbf16> to vector<128x256xbf16>
    %42 = arith.addf %39, %41 : vector<128x256xbf16>
    %cst_31 = arith.constant 0.000000e+00 : bf16
    %43 = vector.broadcast %cst_31 : bf16 to vector<128x256xbf16>
    %44 = arith.maximumf %42, %43 : vector<128x256xbf16>
    %c768_32 = arith.constant 768 : index
    %c0_33 = arith.constant 0 : index
    %45 = vector.load %arg5[%c768_32, %c0_33] : memref<1024x256xbf16, #tpu.memory_space<vmem>>, vector<256x256xbf16>
    %cst_34 = arith.constant dense<0.000000e+00> : vector<128x256xf32>
    %46 = tpu.matmul %44, %45, %cst_34 {dimension_numbers = #tpu.dot_dimension_numbers<[1], [0], [0], [1], [0, 0, 1, 1], [], []>} : vector<128x256xbf16>, vector<256x256xbf16>, vector<128x256xf32> -> vector<128x256xf32>
    %47 = arith.addf %36, %46 : vector<128x256xf32>
    %c0_35 = arith.constant 0 : index
    %c0_36 = arith.constant 0 : index
    %48 = vector.load %arg6[%c0_35, %c0_36] : memref<1x256xf32, #tpu.memory_space<vmem>>, vector<1x256xf32>
    %49 = vector.broadcast %48 : vector<1x256xf32> to vector<128x256xf32>
    %50 = arith.addf %47, %49 : vector<128x256xf32>
    %cst_37 = arith.constant 0.000000e+00 : f32
    %51 = vector.broadcast %cst_37 : f32 to vector<128x256xf32>
    %52 = arith.maximumf %50, %51 : vector<128x256xf32>
    %53 = vector.shape_cast %52 : vector<128x256xf32> to vector<2x64x256xf32>
    %c0_38 = arith.constant 0 : index
    %c0_39 = arith.constant 0 : index
    %54 = vector.load %arg12[%c0_38, %c0_39] : memref<2x256xf32, #tpu.memory_space<vmem>>, vector<2x256xf32>
    %cst_40 = arith.constant dense<0xFF800000> : vector<2x256xf32>
    %55 = vector.multi_reduction <maximumf>, %53, %cst_40 [1] : vector<2x64x256xf32> to vector<2x256xf32>
    %56 = arith.maximumf %54, %55 : vector<2x256xf32>
    %c0_41 = arith.constant 0 : index
    %c0_42 = arith.constant 0 : index
    %57 = vector.load %arg12[%c0_41, %c0_42] : memref<2x256xf32, #tpu.memory_space<vmem>>, vector<2x256xf32>
    tpu.vector_store %arg12[%c0_41, %c0_42], %56 {strides = array<i32>} : memref<2x256xf32, #tpu.memory_space<vmem>>, vector<2x256xf32>,
    %c0_i32_43 = arith.constant 0 : i32
    %58 = arith.cmpi eq, %arg1, %c0_i32_43 : i32
    %59 = arith.extui %58 : i1 to i32
    %c0_i32_44 = arith.constant 0 : i32
    %60 = arith.cmpi ne, %59, %c0_i32_44 : i32
    scf.if %60 {
      %c0_45 = arith.constant 0 : index
      %c0_46 = arith.constant 0 : index
      %61 = vector.load %arg12[%c0_45, %c0_46] : memref<2x256xf32, #tpu.memory_space<vmem>>, vector<2x256xf32>
      %62 = arith.truncf %61 : vector<2x256xf32> to vector<2x256xbf16>
      %c0_47 = arith.constant 0 : index
      %c0_48 = arith.constant 0 : index
      %63 = vector.load %arg7[%c0_47, %c0_48] : memref<256x256xbf16, #tpu.memory_space<vmem>>, vector<256x256xbf16>
      %cst_49 = arith.constant dense<0.000000e+00> : vector<2x256xf32>
      %64 = tpu.matmul %62, %63, %cst_49 {dimension_numbers = #tpu.dot_dimension_numbers<[1], [0], [0], [1], [0, 0, 1, 1], [], []>} : vector<2x256xbf16>, vector<256x256xbf16>, vector<2x256xf32> -> vector<2x256xf32>
      %c0_50 = arith.constant 0 : index
      %c0_51 = arith.constant 0 : index
      %65 = vector.load %arg8[%c0_50, %c0_51] : memref<1x256xf32, #tpu.memory_space<vmem>>, vector<1x256xf32>
      %66 = vector.broadcast %65 : vector<1x256xf32> to vector<2x256xf32>
      %67 = arith.addf %64, %66 : vector<2x256xf32>
      %cst_52 = arith.constant 0.000000e+00 : f32
      %68 = vector.broadcast %cst_52 : f32 to vector<2x256xf32>
      %69 = arith.maximumf %67, %68 : vector<2x256xf32>
      %70 = arith.truncf %69 : vector<2x256xf32> to vector<2x256xbf16>
      %c0_53 = arith.constant 0 : index
      %c0_54 = arith.constant 0 : index
      %71 = vector.load %arg9[%c0_53, %c0_54] : memref<256x128xbf16, #tpu.memory_space<vmem>>, vector<256x128xbf16>
      %cst_55 = arith.constant dense<0.000000e+00> : vector<2x128xf32>
      %72 = tpu.matmul %70, %71, %cst_55 {dimension_numbers = #tpu.dot_dimension_numbers<[1], [0], [0], [1], [0, 0, 1, 1], [], []>} : vector<2x256xbf16>, vector<256x128xbf16>, vector<2x128xf32> -> vector<2x128xf32>
      %c0_56 = arith.constant 0 : index
      %c0_57 = arith.constant 0 : index
      %73 = vector.load %arg10[%c0_56, %c0_57] : memref<1x128xf32, #tpu.memory_space<vmem>>, vector<1x128xf32>
      %74 = vector.broadcast %73 : vector<1x128xf32> to vector<2x128xf32>
      %75 = arith.addf %72, %74 : vector<2x128xf32>
      %c0_58 = arith.constant 0 : index
      %c0_59 = arith.constant 0 : index
      %76 = vector.load %arg11[%c0_58, %c0_59] : memref<2x128xf32, #tpu.memory_space<vmem>>, vector<2x128xf32>
      tpu.vector_store %arg11[%c0_58, %c0_59], %75 {strides = array<i32>} : memref<2x128xf32, #tpu.memory_space<vmem>>, vector<2x128xf32>,
    } else {
    }
    return
  }
  func.func @transform_0(%arg0: i32, %arg1: i32) -> (i32, i32, i32) {
    %c0_i32 = arith.constant 0 : i32
    %c0_i32_0 = arith.constant 0 : i32
    return %arg0, %arg1, %c0_i32 : i32, i32, i32
  }
  func.func @transform_1(%arg0: i32, %arg1: i32) -> (i32, i32) {
    %c0_i32 = arith.constant 0 : i32
    %c0_i32_0 = arith.constant 0 : i32
    %c0_i32_1 = arith.constant 0 : i32
    return %c0_i32, %c0_i32_0 : i32, i32
  }
  func.func @transform_2(%arg0: i32, %arg1: i32) -> (i32, i32) {
    %c0_i32 = arith.constant 0 : i32
    %c0_i32_0 = arith.constant 0 : i32
    %c0_i32_1 = arith.constant 0 : i32
    return %c0_i32, %c0_i32_0 : i32, i32
  }
  func.func @transform_3(%arg0: i32, %arg1: i32) -> (i32, i32) {
    %c0_i32 = arith.constant 0 : i32
    %c0_i32_0 = arith.constant 0 : i32
    %c0_i32_1 = arith.constant 0 : i32
    return %c0_i32, %c0_i32_0 : i32, i32
  }
  func.func @transform_4(%arg0: i32, %arg1: i32) -> (i32, i32) {
    %c0_i32 = arith.constant 0 : i32
    %c0_i32_0 = arith.constant 0 : i32
    %c0_i32_1 = arith.constant 0 : i32
    return %c0_i32, %c0_i32_0 : i32, i32
  }
  func.func @transform_5(%arg0: i32, %arg1: i32) -> (i32, i32) {
    %c0_i32 = arith.constant 0 : i32
    %c0_i32_0 = arith.constant 0 : i32
    %c0_i32_1 = arith.constant 0 : i32
    return %c0_i32, %c0_i32_0 : i32, i32
  }
  func.func @transform_6(%arg0: i32, %arg1: i32) -> (i32, i32) {
    %c0_i32 = arith.constant 0 : i32
    %c0_i32_0 = arith.constant 0 : i32
    %c0_i32_1 = arith.constant 0 : i32
    return %c0_i32, %c0_i32_0 : i32, i32
  }
  func.func @transform_7(%arg0: i32, %arg1: i32) -> (i32, i32) {
    %c0_i32 = arith.constant 0 : i32
    %c0_i32_0 = arith.constant 0 : i32
    %c0_i32_1 = arith.constant 0 : i32
    return %c0_i32, %c0_i32_0 : i32, i32
  }
  func.func @transform_8(%arg0: i32, %arg1: i32) -> (i32, i32) {
    %c0_i32 = arith.constant 0 : i32
    %c0_i32_0 = arith.constant 0 : i32
    %c0_i32_1 = arith.constant 0 : i32
    return %c0_i32, %c0_i32_0 : i32, i32
  }
  func.func @transform_9(%arg0: i32, %arg1: i32) -> (i32, i32) {
    %c0_i32 = arith.constant 0 : i32
    %c0_i32_0 = arith.constant 0 : i32
    return %arg0, %c0_i32 : i32, i32
  }
}

module attributes {stable_mosaic.version = 11 : i64} {
  func.func @rot_green_kernel(%arg0: i32, %arg1: i32, %arg2: memref<2x64x128xbf16, #tpu.memory_space<vmem>>, %arg3: memref<128x1024xbf16, #tpu.memory_space<vmem>>, %arg4: memref<1x1024xbf16, #tpu.memory_space<vmem>>, %arg5: memref<1024x256xbf16, #tpu.memory_space<vmem>>, %arg6: memref<1x256xf32, #tpu.memory_space<vmem>>, %arg7: memref<256x256xbf16, #tpu.memory_space<vmem>>, %arg8: memref<1x256xf32, #tpu.memory_space<vmem>>, %arg9: memref<256x128xbf16, #tpu.memory_space<vmem>>, %arg10: memref<1x128xf32, #tpu.memory_space<vmem>>, %arg11: memref<2x128xf32, #tpu.memory_space<vmem>>, %arg12: memref<2x256xf32, #tpu.memory_space<vmem>>) attributes {dimension_semantics = [#tpu.dimension_semantics<parallel>, #tpu.dimension_semantics<arbitrary>], iteration_bounds = array<i64: 1, 1>, scalar_prefetch = 0 : i64, scratch_operands = 1 : i64, tpu.core_type = #tpu.core_type<tc>, window_params = [{transform_indices = @transform_0, window_bounds = array<i64: 2, 64, 128>}, {pipeline_mode = #tpu.pipeline_mode<synchronous>, transform_indices = @transform_1, window_bounds = array<i64: 128, 1024>}, {pipeline_mode = #tpu.pipeline_mode<synchronous>, transform_indices = @transform_2, window_bounds = array<i64: 1, 1024>}, {pipeline_mode = #tpu.pipeline_mode<synchronous>, transform_indices = @transform_3, window_bounds = array<i64: 1024, 256>}, {pipeline_mode = #tpu.pipeline_mode<synchronous>, transform_indices = @transform_4, window_bounds = array<i64: 1, 256>}, {pipeline_mode = #tpu.pipeline_mode<synchronous>, transform_indices = @transform_5, window_bounds = array<i64: 256, 256>}, {pipeline_mode = #tpu.pipeline_mode<synchronous>, transform_indices = @transform_6, window_bounds = array<i64: 1, 256>}, {pipeline_mode = #tpu.pipeline_mode<synchronous>, transform_indices = @transform_7, window_bounds = array<i64: 256, 128>}, {pipeline_mode = #tpu.pipeline_mode<synchronous>, transform_indices = @transform_8, window_bounds = array<i64: 1, 128>}, {transform_indices = @transform_9, window_bounds = array<i64: 2, 128>}]} {
    %c0_i32 = arith.constant 0 : i32
    %0 = arith.cmpi eq, %arg1, %c0_i32 : i32
    %1 = arith.extui %0 : i1 to i32
    %c0_i32_0 = arith.constant 0 : i32
    %2 = arith.cmpi ne, %1, %c0_i32_0 : i32
    scf.if %2 {
      %cst_45 = arith.constant 0xFF800000 : f32
      %61 = vector.broadcast %cst_45 : f32 to vector<2x256xf32>
      %c0_46 = arith.constant 0 : index
      %c0_47 = arith.constant 0 : index
      %62 = vector.load %arg12[%c0_46, %c0_47] : memref<2x256xf32, #tpu.memory_space<vmem>>, vector<2x256xf32>
      tpu.vector_store %arg12[%c0_46, %c0_47], %61 {strides = array<i32>} : memref<2x256xf32, #tpu.memory_space<vmem>>, vector<2x256xf32>,
    } else {
    }
    %c0 = arith.constant 0 : index
    %c0_1 = arith.constant 0 : index
    %c0_2 = arith.constant 0 : index
    %3 = vector.load %arg2[%c0, %c0_1, %c0_2] : memref<2x64x128xbf16, #tpu.memory_space<vmem>>, vector<2x64x128xbf16>
    %4 = vector.shape_cast %3 : vector<2x64x128xbf16> to vector<128x128xbf16>
    %c0_3 = arith.constant 0 : index
    %c0_4 = arith.constant 0 : index
    %5 = vector.load %arg3[%c0_3, %c0_4] : memref<128x1024xbf16, #tpu.memory_space<vmem>>, vector<128x256xbf16>
    %cst = arith.constant dense<0.000000e+00> : vector<128x256xf32>
    %6 = tpu.matmul %4, %5, %cst {dimension_numbers = #tpu.dot_dimension_numbers<[1], [0], [0], [1], [0, 0, 1, 1], [], []>} : vector<128x128xbf16>, vector<128x256xbf16>, vector<128x256xf32> -> vector<128x256xf32>
    %7 = arith.truncf %6 : vector<128x256xf32> to vector<128x256xbf16>
    %c0_5 = arith.constant 0 : index
    %c0_6 = arith.constant 0 : index
    %8 = vector.load %arg4[%c0_5, %c0_6] : memref<1x1024xbf16, #tpu.memory_space<vmem>>, vector<1x256xbf16>
    %9 = vector.broadcast %8 : vector<1x256xbf16> to vector<128x256xbf16>
    %10 = arith.addf %7, %9 : vector<128x256xbf16>
    %cst_7 = arith.constant 0.000000e+00 : bf16
    %11 = vector.broadcast %cst_7 : bf16 to vector<128x256xbf16>
    %12 = arith.maximumf %10, %11 : vector<128x256xbf16>
    %c0_8 = arith.constant 0 : index
    %c0_9 = arith.constant 0 : index
    %13 = vector.load %arg5[%c0_8, %c0_9] : memref<1024x256xbf16, #tpu.memory_space<vmem>>, vector<256x256xbf16>
    %cst_10 = arith.constant dense<0.000000e+00> : vector<128x256xf32>
    %14 = tpu.matmul %12, %13, %cst_10 {dimension_numbers = #tpu.dot_dimension_numbers<[1], [0], [0], [1], [0, 0, 1, 1], [], []>} : vector<128x256xbf16>, vector<256x256xbf16>, vector<128x256xf32> -> vector<128x256xf32>
    %c0_11 = arith.constant 0 : index
    %c256 = arith.constant 256 : index
    %15 = vector.load %arg3[%c0_11, %c256] : memref<128x1024xbf16, #tpu.memory_space<vmem>>, vector<128x256xbf16>
    %cst_12 = arith.constant dense<0.000000e+00> : vector<128x256xf32>
    %16 = tpu.matmul %4, %15, %cst_12 {dimension_numbers = #tpu.dot_dimension_numbers<[1], [0], [0], [1], [0, 0, 1, 1], [], []>} : vector<128x128xbf16>, vector<128x256xbf16>, vector<128x256xf32> -> vector<128x256xf32>
    %17 = arith.truncf %16 : vector<128x256xf32> to vector<128x256xbf16>
    %c0_13 = arith.constant 0 : index
    %c256_14 = arith.constant 256 : index
    %18 = vector.load %arg4[%c0_13, %c256_14] : memref<1x1024xbf16, #tpu.memory_space<vmem>>, vector<1x256xbf16>
    %19 = vector.broadcast %18 : vector<1x256xbf16> to vector<128x256xbf16>
    %20 = arith.addf %17, %19 : vector<128x256xbf16>
    %cst_15 = arith.constant 0.000000e+00 : bf16
    %21 = vector.broadcast %cst_15 : bf16 to vector<128x256xbf16>
    %22 = arith.maximumf %20, %21 : vector<128x256xbf16>
    %c256_16 = arith.constant 256 : index
    %c0_17 = arith.constant 0 : index
    %23 = vector.load %arg5[%c256_16, %c0_17] : memref<1024x256xbf16, #tpu.memory_space<vmem>>, vector<256x256xbf16>
    %cst_18 = arith.constant dense<0.000000e+00> : vector<128x256xf32>
    %24 = tpu.matmul %22, %23, %cst_18 {dimension_numbers = #tpu.dot_dimension_numbers<[1], [0], [0], [1], [0, 0, 1, 1], [], []>} : vector<128x256xbf16>, vector<256x256xbf16>, vector<128x256xf32> -> vector<128x256xf32>
    %25 = arith.addf %14, %24 : vector<128x256xf32>
    %c0_19 = arith.constant 0 : index
    %c512 = arith.constant 512 : index
    %26 = vector.load %arg3[%c0_19, %c512] : memref<128x1024xbf16, #tpu.memory_space<vmem>>, vector<128x256xbf16>
    %cst_20 = arith.constant dense<0.000000e+00> : vector<128x256xf32>
    %27 = tpu.matmul %4, %26, %cst_20 {dimension_numbers = #tpu.dot_dimension_numbers<[1], [0], [0], [1], [0, 0, 1, 1], [], []>} : vector<128x128xbf16>, vector<128x256xbf16>, vector<128x256xf32> -> vector<128x256xf32>
    %28 = arith.truncf %27 : vector<128x256xf32> to vector<128x256xbf16>
    %c0_21 = arith.constant 0 : index
    %c512_22 = arith.constant 512 : index
    %29 = vector.load %arg4[%c0_21, %c512_22] : memref<1x1024xbf16, #tpu.memory_space<vmem>>, vector<1x256xbf16>
    %30 = vector.broadcast %29 : vector<1x256xbf16> to vector<128x256xbf16>
    %31 = arith.addf %28, %30 : vector<128x256xbf16>
    %cst_23 = arith.constant 0.000000e+00 : bf16
    %32 = vector.broadcast %cst_23 : bf16 to vector<128x256xbf16>
    %33 = arith.maximumf %31, %32 : vector<128x256xbf16>
    %c512_24 = arith.constant 512 : index
    %c0_25 = arith.constant 0 : index
    %34 = vector.load %arg5[%c512_24, %c0_25] : memref<1024x256xbf16, #tpu.memory_space<vmem>>, vector<256x256xbf16>
    %cst_26 = arith.constant dense<0.000000e+00> : vector<128x256xf32>
    %35 = tpu.matmul %33, %34, %cst_26 {dimension_numbers = #tpu.dot_dimension_numbers<[1], [0], [0], [1], [0, 0, 1, 1], [], []>} : vector<128x256xbf16>, vector<256x256xbf16>, vector<128x256xf32> -> vector<128x256xf32>
    %36 = arith.addf %25, %35 : vector<128x256xf32>
    %c0_27 = arith.constant 0 : index
    %c768 = arith.constant 768 : index
    %37 = vector.load %arg3[%c0_27, %c768] : memref<128x1024xbf16, #tpu.memory_space<vmem>>, vector<128x256xbf16>
    %cst_28 = arith.constant dense<0.000000e+00> : vector<128x256xf32>
    %38 = tpu.matmul %4, %37, %cst_28 {dimension_numbers = #tpu.dot_dimension_numbers<[1], [0], [0], [1], [0, 0, 1, 1], [], []>} : vector<128x128xbf16>, vector<128x256xbf16>, vector<128x256xf32> -> vector<128x256xf32>
    %39 = arith.truncf %38 : vector<128x256xf32> to vector<128x256xbf16>
    %c0_29 = arith.constant 0 : index
    %c768_30 = arith.constant 768 : index
    %40 = vector.load %arg4[%c0_29, %c768_30] : memref<1x1024xbf16, #tpu.memory_space<vmem>>, vector<1x256xbf16>
    %41 = vector.broadcast %40 : vector<1x256xbf16> to vector<128x256xbf16>
    %42 = arith.addf %39, %41 : vector<128x256xbf16>
    %cst_31 = arith.constant 0.000000e+00 : bf16
    %43 = vector.broadcast %cst_31 : bf16 to vector<128x256xbf16>
    %44 = arith.maximumf %42, %43 : vector<128x256xbf16>
    %c768_32 = arith.constant 768 : index
    %c0_33 = arith.constant 0 : index
    %45 = vector.load %arg5[%c768_32, %c0_33] : memref<1024x256xbf16, #tpu.memory_space<vmem>>, vector<256x256xbf16>
    %cst_34 = arith.constant dense<0.000000e+00> : vector<128x256xf32>
    %46 = tpu.matmul %44, %45, %cst_34 {dimension_numbers = #tpu.dot_dimension_numbers<[1], [0], [0], [1], [0, 0, 1, 1], [], []>} : vector<128x256xbf16>, vector<256x256xbf16>, vector<128x256xf32> -> vector<128x256xf32>
    %47 = arith.addf %36, %46 : vector<128x256xf32>
    %c0_35 = arith.constant 0 : index
    %c0_36 = arith.constant 0 : index
    %48 = vector.load %arg6[%c0_35, %c0_36] : memref<1x256xf32, #tpu.memory_space<vmem>>, vector<1x256xf32>
    %49 = vector.broadcast %48 : vector<1x256xf32> to vector<128x256xf32>
    %50 = arith.addf %47, %49 : vector<128x256xf32>
    %cst_37 = arith.constant 0.000000e+00 : f32
    %51 = vector.broadcast %cst_37 : f32 to vector<128x256xf32>
    %52 = arith.maximumf %50, %51 : vector<128x256xf32>
    %53 = vector.shape_cast %52 : vector<128x256xf32> to vector<2x64x256xf32>
    %c0_38 = arith.constant 0 : index
    %c0_39 = arith.constant 0 : index
    %54 = vector.load %arg12[%c0_38, %c0_39] : memref<2x256xf32, #tpu.memory_space<vmem>>, vector<2x256xf32>
    %cst_40 = arith.constant dense<0xFF800000> : vector<2x256xf32>
    %55 = vector.multi_reduction <maximumf>, %53, %cst_40 [1] : vector<2x64x256xf32> to vector<2x256xf32>
    %56 = arith.maximumf %54, %55 : vector<2x256xf32>
    %c0_41 = arith.constant 0 : index
    %c0_42 = arith.constant 0 : index
    %57 = vector.load %arg12[%c0_41, %c0_42] : memref<2x256xf32, #tpu.memory_space<vmem>>, vector<2x256xf32>
    tpu.vector_store %arg12[%c0_41, %c0_42], %56 {strides = array<i32>} : memref<2x256xf32, #tpu.memory_space<vmem>>, vector<2x256xf32>,
    %c0_i32_43 = arith.constant 0 : i32
    %58 = arith.cmpi eq, %arg1, %c0_i32_43 : i32
    %59 = arith.extui %58 : i1 to i32
    %c0_i32_44 = arith.constant 0 : i32
    %60 = arith.cmpi ne, %59, %c0_i32_44 : i32
    scf.if %60 {
      %c0_45 = arith.constant 0 : index
      %c0_46 = arith.constant 0 : index
      %61 = vector.load %arg12[%c0_45, %c0_46] : memref<2x256xf32, #tpu.memory_space<vmem>>, vector<2x256xf32>
      %62 = arith.truncf %61 : vector<2x256xf32> to vector<2x256xbf16>
      %c0_47 = arith.constant 0 : index
      %c0_48 = arith.constant 0 : index
      %63 = vector.load %arg7[%c0_47, %c0_48] : memref<256x256xbf16, #tpu.memory_space<vmem>>, vector<256x256xbf16>
      %cst_49 = arith.constant dense<0.000000e+00> : vector<2x256xf32>
      %64 = tpu.matmul %62, %63, %cst_49 {dimension_numbers = #tpu.dot_dimension_numbers<[1], [0], [0], [1], [0, 0, 1, 1], [], []>} : vector<2x256xbf16>, vector<256x256xbf16>, vector<2x256xf32> -> vector<2x256xf32>
      %c0_50 = arith.constant 0 : index
      %c0_51 = arith.constant 0 : index
      %65 = vector.load %arg8[%c0_50, %c0_51] : memref<1x256xf32, #tpu.memory_space<vmem>>, vector<1x256xf32>
      %66 = vector.broadcast %65 : vector<1x256xf32> to vector<2x256xf32>
      %67 = arith.addf %64, %66 : vector<2x256xf32>
      %cst_52 = arith.constant 0.000000e+00 : f32
      %68 = vector.broadcast %cst_52 : f32 to vector<2x256xf32>
      %69 = arith.maximumf %67, %68 : vector<2x256xf32>
      %70 = arith.truncf %69 : vector<2x256xf32> to vector<2x256xbf16>
      %c0_53 = arith.constant 0 : index
      %c0_54 = arith.constant 0 : index
      %71 = vector.load %arg9[%c0_53, %c0_54] : memref<256x128xbf16, #tpu.memory_space<vmem>>, vector<256x128xbf16>
      %cst_55 = arith.constant dense<0.000000e+00> : vector<2x128xf32>
      %72 = tpu.matmul %70, %71, %cst_55 {dimension_numbers = #tpu.dot_dimension_numbers<[1], [0], [0], [1], [0, 0, 1, 1], [], []>} : vector<2x256xbf16>, vector<256x128xbf16>, vector<2x128xf32> -> vector<2x128xf32>
      %c0_56 = arith.constant 0 : index
      %c0_57 = arith.constant 0 : index
      %73 = vector.load %arg10[%c0_56, %c0_57] : memref<1x128xf32, #tpu.memory_space<vmem>>, vector<1x128xf32>
      %74 = vector.broadcast %73 : vector<1x128xf32> to vector<2x128xf32>
      %75 = arith.addf %72, %74 : vector<2x128xf32>
      %c0_58 = arith.constant 0 : index
      %c0_59 = arith.constant 0 : index
      %76 = vector.load %arg11[%c0_58, %c0_59] : memref<2x128xf32, #tpu.memory_space<vmem>>, vector<2x128xf32>
      tpu.vector_store %arg11[%c0_58, %c0_59], %75 {strides = array<i32>} : memref<2x128xf32, #tpu.memory_space<vmem>>, vector<2x128xf32>,
    } else {
    }
    return
  }
  func.func @transform_0(%arg0: i32, %arg1: i32) -> (i32, i32, i32) {
    %c0_i32 = arith.constant 0 : i32
    %c0_i32_0 = arith.constant 0 : i32
    return %arg0, %arg1, %c0_i32 : i32, i32, i32
  }
  func.func @transform_1(%arg0: i32, %arg1: i32) -> (i32, i32) {
    %c0_i32 = arith.constant 0 : i32
    %c0_i32_0 = arith.constant 0 : i32
    %c0_i32_1 = arith.constant 0 : i32
    return %c0_i32, %c0_i32_0 : i32, i32
  }
  func.func @transform_2(%arg0: i32, %arg1: i32) -> (i32, i32) {
    %c0_i32 = arith.constant 0 : i32
    %c0_i32_0 = arith.constant 0 : i32
    %c0_i32_1 = arith.constant 0 : i32
    return %c0_i32, %c0_i32_0 : i32, i32
  }
  func.func @transform_3(%arg0: i32, %arg1: i32) -> (i32, i32) {
    %c0_i32 = arith.constant 0 : i32
    %c0_i32_0 = arith.constant 0 : i32
    %c0_i32_1 = arith.constant 0 : i32
    return %c0_i32, %c0_i32_0 : i32, i32
  }
  func.func @transform_4(%arg0: i32, %arg1: i32) -> (i32, i32) {
    %c0_i32 = arith.constant 0 : i32
    %c0_i32_0 = arith.constant 0 : i32
    %c0_i32_1 = arith.constant 0 : i32
    return %c0_i32, %c0_i32_0 : i32, i32
  }
  func.func @transform_5(%arg0: i32, %arg1: i32) -> (i32, i32) {
    %c0_i32 = arith.constant 0 : i32
    %c0_i32_0 = arith.constant 0 : i32
    %c0_i32_1 = arith.constant 0 : i32
    return %c0_i32, %c0_i32_0 : i32, i32
  }
  func.func @transform_6(%arg0: i32, %arg1: i32) -> (i32, i32) {
    %c0_i32 = arith.constant 0 : i32
    %c0_i32_0 = arith.constant 0 : i32
    %c0_i32_1 = arith.constant 0 : i32
    return %c0_i32, %c0_i32_0 : i32, i32
  }
  func.func @transform_7(%arg0: i32, %arg1: i32) -> (i32, i32) {
    %c0_i32 = arith.constant 0 : i32
    %c0_i32_0 = arith.constant 0 : i32
    %c0_i32_1 = arith.constant 0 : i32
    return %c0_i32, %c0_i32_0 : i32, i32
  }
  func.func @transform_8(%arg0: i32, %arg1: i32) -> (i32, i32) {
    %c0_i32 = arith.constant 0 : i32
    %c0_i32_0 = arith.constant 0 : i32
    %c0_i32_1 = arith.constant 0 : i32
    return %c0_i32, %c0_i32_0 : i32, i32
  }
  func.func @transform_9(%arg0: i32, %arg1: i32) -> (i32, i32) {
    %c0_i32 = arith.constant 0 : i32
    %c0_i32_0 = arith.constant 0 : i32
    return %arg0, %c0_i32 : i32, i32
  }
}

</mosaic_0001>

<bundles_post_ra>
// kernel: tpu_custom_call.1
= control target key start
LH: loop header
LB: loop body
LE: loop exit
PB: predicated region body
PF: predicated region fallthrough
CT: control target
= control target key end

     0   :  { %14 = vsyncpa [#allocation4], 0  ;;  %s4591_s0 = inlined_call_operand.hbm [shape: bf16[2,64,128], index: 0, kind: input, shape index: {}]   ;;  %s4592_s1 = inlined_call_operand.hbm [shape: bf16[128,1024], index: 1, kind: input, shape index: {}]   ;;  %s4593_s2 = inlined_call_operand.hbm [shape: bf16[1,1024], index: 2, kind: input, shape index: {}]   ;;  %s4594_s3 = inlined_call_operand.hbm [shape: bf16[1024,256], index: 3, kind: input, shape index: {}]   ;;  %s4595_s4 = inlined_call_operand.vmem [shape: f32[1,256], index: 4, kind: input, shape index: {}]   ;;  %s4596_s5 = inlined_call_operand.hbm [shape: bf16[256,256], index: 5, kind: input, shape index: {}]   ;;  %s4597_s6 = inlined_call_operand.vmem [shape: f32[1,256], index: 6, kind: input, shape index: {}]   ;;  %s4598_s7 = inlined_call_operand.hbm [shape: bf16[256,128], index: 7, kind: input, shape index: {}]   ;;  %s4599_s8 = inlined_call_operand.vmem [shape: f32[1,128], index: 8, kind: input, shape index: {}]   ;;  %s4600_s9 = inlined_call_operand.hbm [shape: f32[2,128], index: 9, kind: output, shape index: {}]  }
   0x1   :  { %15 = vsyncpa [#allocation7], 0 }
   0x2   :  { %16 = vsyncpa [#allocation10], 0 }
   0x3   :  { %17 = vsyncpa [#allocation13], 0 }
   0x4   :  { %18 = vsyncpa [#allocation5], 0  ;;  %s3986_s30 = smov [#allocation6]  }
   0x5   :  { %s36_s10 = sshll.u32 %s3986_s30, 4  ;;  %s37_s10 = int_to_ptr.vmem [resolvable:$true] %s36_s10 }
   0x6   :  { %s3844_s11 = scalar_lea.vmem %s37_s10, 8192  ;;  %p3849_p1 = scmp.lt.s32.totalorder %s37_s10, %s37_s10 }
   0x7   :  { %p3845_p0 = scmp.ne.s32.totalorder %s37_s10, %s3844_s11  ;;  %p3850_p2 = scmp.lt.s32.totalorder %s3844_s11, %s3844_s11 }
   0x9   :  { %p3851_p3 = por %p3850_p2, %p3849_p1 }
   0xb   :  { %p3852_p4 = pnand %p3851_p3, %p3845_p0 }
   0xd   :  { %3855 = shalt.err (!%p3852_p4)
}
   0xe   :  { %s3987_s12 = smov 512   ;;  %s3988_s13 = smov 32  }
   0xf   :  { %42 = dma.hbm_to_vmem [thread:$0]  %s4592_s1, 8192, %s37_s10, [#allocation7], %s3987_s12, %s3987_s12, %s3988_s13  }
  0x10   :  { %s3989_s16 = smov [#allocation9]  }
  0x11   :  { %s58_s17 = sshll.u32 %s3989_s16, 4  ;;  %s59_s17 = int_to_ptr.vmem [resolvable:$true] %s58_s17 }
  0x12   :  { %s3864_s18 = scalar_lea.vmem %s59_s17, 16384  ;;  %p3869_p6 = scmp.lt.s32.totalorder %s59_s17, %s59_s17 }
  0x13   :  { %p3865_p5 = scmp.ne.s32.totalorder %s59_s17, %s3864_s18  ;;  %p3870_p7 = scmp.lt.s32.totalorder %s3864_s18, %s3864_s18 }
  0x15   :  { %p3871_p8 = por %p3870_p7, %p3869_p6 }
  0x17   :  { %p3872_p9 = pnand %p3871_p8, %p3865_p5 }
  0x19   :  { %3875 = shalt.err (!%p3872_p9)
}
  0x1a   :  { %s3990_s19 = smov 128   ;;  %s3991_s20 = smov 8  }
  0x1b   :  { %64 = dma.hbm_to_vmem [thread:$0]  %s4594_s3, 16384, %s59_s17, [#allocation10], %s3990_s19, %s3990_s19, %s3991_s20  }
  0x1c   :  { %s3992_s1 = smov [#allocation3]  }
  0x1d   :  { %s24_s23 = sshll.u32 %s3992_s1, 4  ;;  %s25_s23 = int_to_ptr.vmem [resolvable:$true] %s24_s23 }
  0x1e   :  { %s3884_s24 = scalar_lea.vmem %s25_s23, 1024  ;;  %p3889_p11 = scmp.lt.s32.totalorder %s25_s23, %s25_s23 }
  0x1f   :  { %p3885_p10 = scmp.ne.s32.totalorder %s25_s23, %s3884_s24  ;;  %p3890_p12 = scmp.lt.s32.totalorder %s3884_s24, %s3884_s24 }
  0x21   :  { %p3891_p13 = por %p3890_p12, %p3889_p11 }
  0x23   :  { %p3892_p0 = pnand %p3891_p13, %p3885_p10 }
  0x25   :  { %3895 = shalt.err (!%p3892_p0)
}
  0x26   :  { %s3993_s25 = smov 64   ;;  %s3994_s26 = smov 4  }
  0x27   :  { %30 = dma.hbm_to_vmem [thread:$0]  %s4591_s0, 1024, %s25_s23, [#allocation4], %s3993_s25, %s3993_s25, %s3994_s26  }
  0x28   :  { %s3995_s3 = smov [#allocation8]   ;;  %s3996_s30 = smov [#allocation11]  }
  0x29   :  { %s49_s29 = sshll.u32 %s3995_s3, 4  ;;  %s72_s10 = sshll.u32 %s3996_s30, 4  ;;  %s50_s29 = int_to_ptr.vmem [resolvable:$true] %s49_s29  ;;  %s73_s10 = int_to_ptr.vmem [resolvable:$true] %s72_s10 }
  0x2a   :  { %s3904_s11 = scalar_lea.vmem %s50_s29, 128  ;;  %p3909_p2 = scmp.lt.s32.totalorder %s50_s29, %s50_s29 }
  0x2b   :  { %p3905_p1 = scmp.ne.s32.totalorder %s50_s29, %s3904_s11  ;;  %p3910_p3 = scmp.lt.s32.totalorder %s3904_s11, %s3904_s11 }
  0x2d   :  { %p3911_p4 = por %p3910_p3, %p3909_p2 }
  0x2f   :  { %p3912_p5 = pnand %p3911_p4, %p3905_p1 }
  0x31   :  { %3915 = shalt.err (!%p3912_p5)
}
  0x32   :  { %52 = dma.hbm_to_vmem [thread:$0]  %s4593_s2, 128, %s50_s29, [#allocation7]  }
  0x33   :  { %s3924_s14 = scalar_lea.vmem %s73_s10, 4096  ;;  %p3929_p7 = scmp.lt.s32.totalorder %s73_s10, %s73_s10 }
  0x34   :  { %p3925_p6 = scmp.ne.s32.totalorder %s73_s10, %s3924_s14  ;;  %p3930_p8 = scmp.lt.s32.totalorder %s3924_s14, %s3924_s14 }
  0x36   :  { %p3931_p9 = por %p3930_p8, %p3929_p7 }
  0x38   :  { %p3932_p10 = pnand %p3931_p9, %p3925_p6 }
  0x3a   :  { %3935 = shalt.err (!%p3932_p10)
}
  0x3b   :  { %78 = dma.hbm_to_vmem [thread:$0]  %s4596_s5, 4096, %s73_s10, [#allocation10], %s3990_s19, %s3990_s19, %s3991_s20  }
  0x3c   :  { %s3997_s16 = smov [#allocation12]  }
  0x3d   :  { %s86_s17 = sshll.u32 %s3997_s16, 4  ;;  %s87_s17 = int_to_ptr.vmem [resolvable:$true] %s86_s17 }
  0x3e   :  { %s3944_s18 = scalar_lea.vmem %s87_s17, 2048  ;;  %p3949_p12 = scmp.lt.s32.totalorder %s87_s17, %s87_s17 }
  0x3f   :  { %p3945_p11 = scmp.ne.s32.totalorder %s87_s17, %s3944_s18  ;;  %p3950_p13 = scmp.lt.s32.totalorder %s3944_s18, %s3944_s18 }
  0x41   :  { %p3951_p0 = por %p3950_p13, %p3949_p12 }
  0x43   :  { %p3952_p1 = pnand %p3951_p0, %p3945_p11 }
  0x45   :  { %3955 = shalt.err (!%p3952_p1)
}
  0x46   :  { %92 = dma.hbm_to_vmem [thread:$0]  %s4598_s7, 2048, %s87_s17, [#allocation13], %s3993_s25, %s3993_s25, %s3994_s26  }
  0x47   :  { %3976 = dma.done.wait [#allocation4], 1024  }
  0x48   :  { %3977 = vsyncadd [#allocation4], 4294966272 }
  0x49   :  { %3978 = dma.done.wait [#allocation7], 8320  }
  0x4a   :  { %3979 = vsyncadd [#allocation7], 4294958976 }
  0x4b   :  { %3980 = dma.done.wait [#allocation10], 20480  }
  0x4c   :  { %3981 = vsyncadd [#allocation10], 4294946816 }
  0x4d   :  { %3982 = dma.done.wait [#allocation13], 2048  }
  0x4e   :  { %3983 = vsyncadd [#allocation13], 4294965248  ;;  %v3998_v0 = vmov 0   ;;  %v149_v1 = vld [vmem:[#allocation6 + $0x1c0] sm:$0xff]  ;;  %v524_v3 = vld [vmem:[#allocation6 + $0x1c8] sm:$0xff]  ;;  %vm2801_vm0 = vcmask 1041409  }
  0x4f   :  { %311 = vmatprep.mubr.bf16.mxu0 %v3998_v0  ;;  %638 = vmatprep.mubr.bf16.mxu1 %v3998_v0  ;;  %v150_v2 = vld [vmem:[#allocation6 + $0x1e0] sm:$0xff]  ;;  %v525_v5 = vld [vmem:[#allocation6 + $0x1e8] sm:$0xff]  ;;  %vm2803_vm1 = vcmask 1043459   ;;  %vm2805_vm2 = vcmask 1045509   ;;  %vm2807_vm3 = vcmask 1047559   ;;  %s4002_s22 = smov [#allocation14]  }
  0x50   :  { %v3295_v4 = vcombine.high %v149_v1, %v150_v2  ;;  %v3294_v6 = vcombine.low %v149_v1, %v150_v2  ;;  %v147_v7 = vld [vmem:[#allocation6 + $0x180] sm:$0xff]  ;;  %v3312_v9 = vcombine.high %v524_v3, %v525_v5  ;;  %v3311_v10 = vcombine.low %v524_v3, %v525_v5  ;;  %v522_v12 = vld [vmem:[#allocation6 + $0x188] sm:$0xff]  ;;  %s3260_s1 = sshll.u32 %s4002_s22, 4  ;;  %s3261_s1 = int_to_ptr.vmem [resolvable:$true] %s3260_s1 }
  0x51   :  { %v148_v8 = vld [vmem:[#allocation6 + $0x1a0] sm:$0xff]  ;;  %v523_v13 = vld [vmem:[#allocation6 + $0x1a8] sm:$0xff]  ;;  %s3956_s23 = scalar_lea.vmem %s3261_s1, 32  ;;  %p3961_p3 = scmp.lt.s32.totalorder %s3261_s1, %s3261_s1 }
  0x52   :  { %v3293_v11 = vcombine.high %v147_v7, %v148_v8  ;;  %v145_v14 = vld [vmem:[#allocation6 + $0x140] sm:$0xff]  ;;  %279 = vmatprep.subr.bf16.mxu0 %v3295_v4  ;;  %v3310_v15 = vcombine.high %v522_v12, %v523_v13  ;;  %v520_v17 = vld [vmem:[#allocation6 + $0x148] sm:$0xff]  ;;  %606 = vmatprep.subr.bf16.mxu1 %v3312_v9  ;;  %v3292_v19 = vcombine.low %v147_v7, %v148_v8  ;;  %p3957_p2 = scmp.ne.s32.totalorder %s3261_s1, %s3956_s23  ;;  %p3962_p4 = scmp.lt.s32.totalorder %s3956_s23, %s3956_s23 }
  0x53   :  { %v146_v16 = vld [vmem:[#allocation6 + $0x160] sm:$0xff]  ;;  %v521_v18 = vld [vmem:[#allocation6 + $0x168] sm:$0xff]  ;;  %280 = vmatpush1.bf16.msra.mxu0 %v3294_v6  ;;  %607 = vmatpush1.bf16.msra.mxu1 %v3311_v10  ;;  %v3309_v20 = vcombine.low %v522_v12, %v523_v13 }
  0x54   :  { %281 = vmatprep.subr.bf16.mxu0 %v3293_v11  ;;  %v3291_v21 = vcombine.high %v145_v14, %v146_v16  ;;  %608 = vmatprep.subr.bf16.mxu1 %v3310_v15  ;;  %v3308_v22 = vcombine.high %v520_v17, %v521_v18  ;;  %v143_v23 = vld [vmem:[#allocation6 + $0x100] sm:$0xff]  ;;  %v518_v25 = vld [vmem:[#allocation6 + $0x108] sm:$0xff]  ;;  %v3290_v27 = vcombine.low %v145_v14, %v146_v16  ;;  %p3963_p5 = por %p3962_p4, %p3961_p3 }
  0x55   :  { %v144_v24 = vld [vmem:[#allocation6 + $0x120] sm:$0xff]  ;;  %v519_v26 = vld [vmem:[#allocation6 + $0x128] sm:$0xff]  ;;  %v3307_v28 = vcombine.low %v520_v17, %v521_v18 }
  0x56   :  { %v3289_v29 = vcombine.high %v143_v23, %v144_v24  ;;  %v141_v30 = vld [vmem:[#allocation6 + $0xc0] sm:$0xff]  ;;  %v3306_v31 = vcombine.high %v518_v25, %v519_v26  ;;  %v516_v33 = vld [vmem:[#allocation6 + $0xc8] sm:$0xff]  ;;  %v3288_v35 = vcombine.low %v143_v23, %v144_v24  ;;  %v3305_v37 = vcombine.low %v518_v25, %v519_v26  ;;  %p3964_p6 = pnand %p3963_p5, %p3957_p2 }
  0x57   :  { %282 = vmatpush1.bf16.msra.mxu0 %v3292_v19  ;;  %609 = vmatpush1.bf16.msra.mxu1 %v3309_v20  ;;  %v142_v32 = vld [vmem:[#allocation6 + $0xe0] sm:$0xff]  ;;  %v517_v34 = vld [vmem:[#allocation6 + $0xe8] sm:$0xff] }
  0x58   :  { %283 = vmatprep.subr.bf16.mxu0 %v3291_v21  ;;  %610 = vmatprep.subr.bf16.mxu1 %v3308_v22  ;;  %v139_v36 = vld [vmem:[#allocation6 + $0x80] sm:$0xff]  ;;  %v3287_v38 = vcombine.high %v141_v30, %v142_v32  ;;  %v3304_v40 = vcombine.high %v516_v33, %v517_v34  ;;  %v514_v41 = vld [vmem:[#allocation6 + $0x88] sm:$0xff]  ;;  %v3286_v43 = vcombine.low %v141_v30, %v142_v32  ;;  %v3567_v21 = vld [vmem:[#allocation3 + $0x10] sm:$0xff]  }
  0x59   :  { %v140_v39 = vld [vmem:[#allocation6 + $0xa0] sm:$0xff]  ;;  %v515_v42 = vld [vmem:[#allocation6 + $0xa8] sm:$0xff]  ;;  %v3303_v44 = vcombine.low %v516_v33, %v517_v34  ;;  %v3568_v30 = vld [vmem:[#allocation3 + $0x18] sm:$0xff]  }
  0x5a   :  { %v3285_v45 = vcombine.high %v139_v36, %v140_v39  ;;  %v137_v46 = vld [vmem:[#allocation6 + $0x40] sm:$0xff]  ;;  %v3302_v47 = vcombine.high %v514_v41, %v515_v42  ;;  %v512_v49 = vld [vmem:[#allocation6 + $0x48] sm:$0xff]  ;;  %v3284_v51 = vcombine.low %v139_v36, %v140_v39  ;;  %v3301_v52 = vcombine.low %v514_v41, %v515_v42 }
  0x5b   :  { %284 = vmatpush1.bf16.msra.mxu0 %v3290_v27  ;;  %611 = vmatpush1.bf16.msra.mxu1 %v3307_v28  ;;  %v138_v48 = vld [vmem:[#allocation6 + $0x60] sm:$0xff]  ;;  %v513_v50 = vld [vmem:[#allocation6 + $0x68] sm:$0xff] }
  0x5c   :  { %285 = vmatprep.subr.bf16.mxu0 %v3289_v29  ;;  %612 = vmatprep.subr.bf16.mxu1 %v3306_v31  ;;  %v3283_v53 = vcombine.high %v137_v46, %v138_v48  ;;  %v3300_v54 = vcombine.high %v512_v49, %v513_v50  ;;  %v135_v55 = vld [vmem:[#allocation6] sm:$0xff]  ;;  %v510_v57 = vld [vmem:[#allocation6 + $0x8] sm:$0xff]  ;;  %v3282_v59 = vcombine.low %v137_v46, %v138_v48 }
  0x5d   :  { %v136_v56 = vld [vmem:[#allocation6 + $0x20] sm:$0xff]  ;;  %v511_v58 = vld [vmem:[#allocation6 + $0x28] sm:$0xff]  ;;  %v3299_v60 = vcombine.low %v512_v49, %v513_v50 }
  0x5e   :  { %v3281_v61 = vcombine.high %v135_v55, %v136_v56  ;;  %v3298_v62 = vcombine.high %v510_v57, %v511_v58  ;;  %v3280_v63 = vcombine.low %v135_v55, %v136_v56  ;;  %v3297_v1 = vcombine.low %v510_v57, %v511_v58  ;;  %v3575_v2 = vld [vmem:[#allocation9 + $0x174] ss:$8 sps:$4 sm:$0xff]   ;;  %v3573_v5 = vld [vmem:[#allocation9 + $0x170] ss:$8 sps:$4 sm:$0xff]   ;;  %v3581_v7 = vld [vmem:[#allocation9 + $0x164] ss:$8 sps:$4 sm:$0xff]  }
  0x5f   :  { %286 = vmatpush1.bf16.msra.mxu0 %v3288_v35  ;;  %613 = vmatpush1.bf16.msra.mxu1 %v3305_v37  ;;  %v3578_v3 = vld [vmem:[#allocation9 + $0x74] ss:$8 sps:$4 sm:$0xff]   ;;  %v3576_v6 = vld [vmem:[#allocation9 + $0x70] ss:$8 sps:$4 sm:$0xff]   ;;  %v3584_v8 = vld [vmem:[#allocation9 + $0x64] ss:$8 sps:$4 sm:$0xff]  }
  0x60   :  { %287 = vmatprep.subr.bf16.mxu0 %v3287_v38  ;;  %614 = vmatprep.subr.bf16.mxu1 %v3304_v40  ;;  %v3565_v4 = vld [vmem:[#allocation3] sm:$0xff]   ;;  %v3579_v9 = vld [vmem:[#allocation9 + $0x160] ss:$8 sps:$4 sm:$0xff]   ;;  %v3593_v16 = vld [vmem:[#allocation9 + $0x144] ss:$8 sps:$4 sm:$0xff]  }
  0x61   :  { %v3582_v10 = vld [vmem:[#allocation9 + $0x60] ss:$8 sps:$4 sm:$0xff]   ;;  %v3587_v11 = vld [vmem:[#allocation9 + $0x154] ss:$8 sps:$4 sm:$0xff]   ;;  %v3585_v14 = vld [vmem:[#allocation9 + $0x150] ss:$8 sps:$4 sm:$0xff]  }
  0x62   :  { %v3566_v12 = vld [vmem:[#allocation3 + $0x8] sm:$0xff]   ;;  %v3590_v13 = vld [vmem:[#allocation9 + $0x54] ss:$8 sps:$4 sm:$0xff]   ;;  %v3588_v15 = vld [vmem:[#allocation9 + $0x50] ss:$8 sps:$4 sm:$0xff]  }
  0x63   :  { %288 = vmatpush1.bf16.msra.mxu0 %v3286_v43  ;;  %615 = vmatpush1.bf16.msra.mxu1 %v3303_v44  ;;  %v3596_v17 = vld [vmem:[#allocation9 + $0x44] ss:$8 sps:$4 sm:$0xff]   ;;  %v3591_v18 = vld [vmem:[#allocation9 + $0x140] ss:$8 sps:$4 sm:$0xff]   ;;  %v3599_v20 = vld [vmem:[#allocation9 + $0x134] ss:$8 sps:$4 sm:$0xff]  }
  0x64   :  { %289 = vmatprep.subr.bf16.mxu0 %v3285_v45  ;;  %616 = vmatprep.subr.bf16.mxu1 %v3302_v47  ;;  %v3594_v19 = vld [vmem:[#allocation9 + $0x40] ss:$8 sps:$4 sm:$0xff]   ;;  %v3602_v22 = vld [vmem:[#allocation9 + $0x34] ss:$8 sps:$4 sm:$0xff]   ;;  %v3597_v23 = vld [vmem:[#allocation9 + $0x130] ss:$8 sps:$4 sm:$0xff]  }
  0x65   :  { %v3600_v24 = vld [vmem:[#allocation9 + $0x30] ss:$8 sps:$4 sm:$0xff]   ;;  %v3605_v25 = vld [vmem:[#allocation9 + $0x124] ss:$8 sps:$4 sm:$0xff]   ;;  %v3603_v26 = vld [vmem:[#allocation9 + $0x120] ss:$8 sps:$4 sm:$0xff]  }
  0x66   :  { %v3608_v27 = vld [vmem:[#allocation9 + $0x24] ss:$8 sps:$4 sm:$0xff]   ;;  %v3606_v28 = vld [vmem:[#allocation9 + $0x20] ss:$8 sps:$4 sm:$0xff]   ;;  %v3611_v29 = vld [vmem:[#allocation9 + $0x114] ss:$8 sps:$4 sm:$0xff]  }
  0x67   :  { %290 = vmatpush1.bf16.msra.mxu0 %v3284_v51  ;;  %617 = vmatpush1.bf16.msra.mxu1 %v3301_v52  ;;  %v3614_v31 = vld [vmem:[#allocation9 + $0x14] ss:$8 sps:$4 sm:$0xff]   ;;  %v3609_v32 = vld [vmem:[#allocation9 + $0x110] ss:$8 sps:$4 sm:$0xff]   ;;  %v3617_v34 = vld [vmem:[#allocation9 + $0x104] ss:$8 sps:$4 sm:$0xff]  }
  0x68   :  { %291 = vmatprep.subr.bf16.mxu0 %v3283_v53  ;;  %618 = vmatprep.subr.bf16.mxu1 %v3300_v54  ;;  %v3612_v33 = vld [vmem:[#allocation9 + $0x10] ss:$8 sps:$4 sm:$0xff]   ;;  %v3620_v35 = vld [vmem:[#allocation9 + $0x4] ss:$8 sps:$4 sm:$0xff]   ;;  %v3615_v36 = vld [vmem:[#allocation9 + $0x100] ss:$8 sps:$4 sm:$0xff]  }
  0x69   :  { %v3618_v37 = vld [vmem:[#allocation9] ss:$8 sps:$4 sm:$0xff]   ;;  %v3623_v38 = vld [vmem:[#allocation9 + $0x1f4] ss:$8 sps:$4 sm:$0xff]   ;;  %v3621_v41 = vld [vmem:[#allocation9 + $0x1f0] ss:$8 sps:$4 sm:$0xff]  }
  0x6a   :  { %v3569_v39 = vld [vmem:[#allocation3 + $0x20] sm:$0xff]   ;;  %v3629_v43 = vld [vmem:[#allocation9 + $0x1e4] ss:$8 sps:$4 sm:$0xff]   ;;  %v3627_v45 = vld [vmem:[#allocation9 + $0x1e0] ss:$8 sps:$4 sm:$0xff]  }
  0x6b   :  { %292 = vmatpush1.bf16.msra.mxu0 %v3282_v59  ;;  %619 = vmatpush1.bf16.msra.mxu1 %v3299_v60  ;;  %v3626_v40 = vld [vmem:[#allocation9 + $0xf4] ss:$8 sps:$4 sm:$0xff]   ;;  %v3624_v42 = vld [vmem:[#allocation9 + $0xf0] ss:$8 sps:$4 sm:$0xff]   ;;  %v3632_v44 = vld [vmem:[#allocation9 + $0xe4] ss:$8 sps:$4 sm:$0xff]  }
  0x6c   :  { %293 = vmatprep.subr.bf16.mxu0 %v3281_v61  ;;  %620 = vmatprep.subr.bf16.mxu1 %v3298_v62  ;;  %v3630_v46 = vld [vmem:[#allocation9 + $0xe0] ss:$8 sps:$4 sm:$0xff]   ;;  %v3635_v47 = vld [vmem:[#allocation9 + $0x1d4] ss:$8 sps:$4 sm:$0xff]   ;;  %v3633_v50 = vld [vmem:[#allocation9 + $0x1d0] ss:$8 sps:$4 sm:$0xff]  }
  0x6d   :  { %v4095_v48 = vld [vmem:[#allocation3 + $0x28] sm:$0xff]   ;;  %v3638_v49 = vld [vmem:[#allocation9 + $0xd4] ss:$8 sps:$4 sm:$0xff]   ;;  %v3636_v51 = vld [vmem:[#allocation9 + $0xd0] ss:$8 sps:$4 sm:$0xff]  }
  0x6e   :  { %v3641_v52 = vld [vmem:[#allocation9 + $0x1c4] ss:$8 sps:$4 sm:$0xff]   ;;  %v3639_v54 = vld [vmem:[#allocation9 + $0x1c0] ss:$8 sps:$4 sm:$0xff]   ;;  %v3647_v56 = vld [vmem:[#allocation9 + $0x1b4] ss:$8 sps:$4 sm:$0xff]  }
  0x6f   :  { %294 = vmatpush1.bf16.msra.mxu0 %v3280_v63  ;;  %621 = vmatpush1.bf16.msra.mxu1 %v3297_v1  ;;  %v3644_v53 = vld [vmem:[#allocation9 + $0xc4] ss:$8 sps:$4 sm:$0xff]   ;;  %v3642_v55 = vld [vmem:[#allocation9 + $0xc0] ss:$8 sps:$4 sm:$0xff]   ;;  %v3650_v58 = vld [vmem:[#allocation9 + $0xb4] ss:$8 sps:$4 sm:$0xff]  }
  0x70   :  { %997 = vmatprep.subr.bf16.mxu0 %v3575_v2  ;;  %1270 = vmatprep.subr.bf16.mxu1 %v3578_v3  ;;  %v4101_v57 = vld [vmem:[#allocation3 + $0x30] sm:$0xff]   ;;  %v3645_v59 = vld [vmem:[#allocation9 + $0x1b0] ss:$8 sps:$4 sm:$0xff]   ;;  %v3659_v3 = vld [vmem:[#allocation9 + $0x194] ss:$8 sps:$4 sm:$0xff]  }
  0x71   :  { %v3648_v60 = vld [vmem:[#allocation9 + $0xb0] ss:$8 sps:$4 sm:$0xff]   ;;  %v3651_v62 = vld [vmem:[#allocation9 + $0x1a0] ss:$8 sps:$4 sm:$0xff]   ;;  %v3653_v63 = vld [vmem:[#allocation9 + $0x1a4] ss:$8 sps:$4 sm:$0xff]  }
  0x72   :  { %312 = vmatmul.mubr.bf16.vlgmr.msra.gmra.mxu0 %v3565_v4  ;;  %639 = vmatmul.mubr.bf16.vlgmr.msra.gmra.mxu1 %v3565_v4  ;;  %v4107_v61 = vld [vmem:[#allocation3 + $0x38] sm:$0xff]   ;;  %v3656_v1 = vld [vmem:[#allocation9 + $0xa4] ss:$8 sps:$4 sm:$0xff]   ;;  %v3654_v2 = vld [vmem:[#allocation9 + $0xa0] ss:$8 sps:$4 sm:$0xff]  }
  0x73   :  { %321 = vmatprep.mubr.bf16.mxu0 %v3998_v0  ;;  %648 = vmatprep.mubr.bf16.mxu1 %v3998_v0  ;;  %v3662_v4 = vld [vmem:[#allocation9 + $0x94] ss:$8 sps:$4 sm:$0xff]  }
  0x74   :  { %998 = vmatpush1.bf16.msra.mxu0 %v3573_v5  ;;  %1271 = vmatpush1.bf16.msra.mxu1 %v3576_v6  ;;  %v3657_v5 = vld [vmem:[#allocation9 + $0x190] ss:$8 sps:$4 sm:$0xff]  }
  0x75   :  { %999 = vmatprep.subr.bf16.mxu0 %v3581_v7  ;;  %1272 = vmatprep.subr.bf16.mxu1 %v3584_v8  ;;  %v3660_v6 = vld [vmem:[#allocation9 + $0x90] ss:$8 sps:$4 sm:$0xff]   ;;  %v3665_v7 = vld [vmem:[#allocation9 + $0x184] ss:$8 sps:$4 sm:$0xff]   ;;  %v3663_v8 = vld [vmem:[#allocation9 + $0x180] ss:$8 sps:$4 sm:$0xff]  }
  0x78   :  { %1000 = vmatpush1.bf16.msra.mxu0 %v3579_v9  ;;  %1273 = vmatpush1.bf16.msra.mxu1 %v3582_v10  ;;  %v3666_v9 = vld [vmem:[#allocation9 + $0x80] ss:$8 sps:$4 sm:$0xff]   ;;  %v3668_v10 = vld [vmem:[#allocation9 + $0x84] ss:$8 sps:$4 sm:$0xff]  }
  0x79   :  { %1001 = vmatprep.subr.bf16.mxu0 %v3587_v11  ;;  %1274 = vmatprep.subr.bf16.mxu1 %v3590_v13  ;;  %v4111_v11 = vld [vmem:[#allocation6 + $0x1d0] sm:$0xff] }
  0x7a   :  { %322 = vmatmul.mubr.bf16.gmra.mxu0 %v3566_v12  ;;  %649 = vmatmul.mubr.bf16.gmra.mxu1 %v3566_v12  ;;  %v4113_v12 = vld [vmem:[#allocation6 + $0x1f0] sm:$0xff] }
  0x7b   :  { %331 = vmatprep.mubr.bf16.mxu0 %v3998_v0  ;;  %658 = vmatprep.mubr.bf16.mxu1 %v3998_v0  ;;  %v3392_v13 = vcombine.low %v4111_v11, %v4113_v12 }
  0x7c   :  { %1002 = vmatpush1.bf16.msra.mxu0 %v3585_v14  ;;  %1275 = vmatpush1.bf16.msra.mxu1 %v3588_v15  ;;  %v3393_v14 = vcombine.high %v4111_v11, %v4113_v12  ;;  %v3999_v15 = vmov 1966171168  }
  0x7d   :  { %1003 = vmatprep.subr.bf16.mxu0 %v3593_v16  ;;  %1276 = vmatprep.subr.bf16.mxu1 %v3596_v17  ;;  %v419_v16 = vunpack.c.l.s4 %v3999_v15  ;;  %v421_v17 = vlaneseq }
  0x80   :  { %1004 = vmatpush1.bf16.msra.mxu0 %v3591_v18  ;;  %1277 = vmatpush1.bf16.msra.mxu1 %v3594_v19  ;;  %v420_v18 = vunpack.c.0.s8 %v419_v16  ;;  %v4119_v19 = vshrl.u32 %v421_v17, 7 }
  0x81   :  { %1005 = vmatprep.subr.bf16.mxu0 %v3599_v20  ;;  %1278 = vmatprep.subr.bf16.mxu1 %v3602_v22  ;;  %v3296_v20 = vld.sshfl [vmem:[#allocation8] sm:$0x11 pattern:$0x75316420] }
  0x82   :  { %332 = vmatmul.mubr.bf16.gmra.mxu0 %v3567_v21  ;;  %659 = vmatmul.mubr.bf16.gmra.mxu1 %v3567_v21  ;;  %v3313_v21 = vld.sshfl [vmem:[#allocation8 + $0x2] sm:$0x11 pattern:$0x75316420]  ;;  %v417_v22 = vcombine.high %v3296_v20, %v3296_v20 }
  0x83   :  { %341 = vmatprep.mubr.bf16.mxu0 %v3998_v0  ;;  %668 = vmatprep.mubr.bf16.mxu1 %v3998_v0 }
  0x84   :  { %1006 = vmatpush1.bf16.msra.mxu0 %v3597_v23  ;;  %1279 = vmatpush1.bf16.msra.mxu1 %v3600_v24  ;;  %v4122_v23 = vsub.s32 %v420_v18, %v4119_v19  ;;  %v744_v24 = vcombine.high %v3313_v21, %v3313_v21 }
  0x85   :  { %1007 = vmatprep.subr.bf16.mxu0 %v3605_v25  ;;  %1280 = vmatprep.subr.bf16.mxu1 %v3608_v27 }
  0x86   :  { %v424_v25 = vrot.slane %v3296_v20, %v4122_v23  ;;  %v431_v27 = vrot.slane %v417_v22, %v4122_v23 }
  0x88   :  { %1008 = vmatpush1.bf16.msra.mxu0 %v3603_v26  ;;  %1281 = vmatpush1.bf16.msra.mxu1 %v3606_v28  ;;  %v751_v26 = vrot.slane %v3313_v21, %v4122_v23  ;;  %v758_v28 = vrot.slane %v744_v24, %v4122_v23 }
  0x89   :  { %1009 = vmatprep.subr.bf16.mxu0 %v3611_v29  ;;  %1282 = vmatprep.subr.bf16.mxu1 %v3614_v31  ;;  %v433_v29 = vpack.i.b16 %v424_v25, %v424_v25 }
  0x8a   :  { %342 = vmatmul.mubr.bf16.gmra.mxu0 %v3568_v30  ;;  %669 = vmatmul.mubr.bf16.gmra.mxu1 %v3568_v30 }
  0x8b   :  { %351 = vmatprep.mubr.bf16.mxu0 %v3998_v0  ;;  %678 = vmatprep.mubr.bf16.mxu1 %v3998_v0 }
  0x8c   :  { %1010 = vmatpush1.bf16.msra.mxu0 %v3609_v32  ;;  %1283 = vmatpush1.bf16.msra.mxu1 %v3612_v33  ;;  %v4129_v32 = vsub.s32 0, %v4119_v19  ;;  %v760_v33 = vpack.i.b16 %v751_v26, %v751_v26 }
  0x8d   :  { %1011 = vmatprep.subr.bf16.mxu0 %v3617_v34  ;;  %1284 = vmatprep.subr.bf16.mxu1 %v3620_v35  ;;  %v440_v34 = vpack.i.b16 %v431_v27, %v431_v27 }
  0x90   :  { %1012 = vmatpush1.bf16.msra.mxu0 %v3615_v36  ;;  %1285 = vmatpush1.bf16.msra.mxu1 %v3618_v37  ;;  %v767_v36 = vpack.i.b16 %v758_v28, %v758_v28 }
  0x91   :  { %1013 = vmatprep.subr.bf16.mxu0 %v3623_v38  ;;  %1286 = vmatprep.subr.bf16.mxu1 %v3626_v40  ;;  %v4132_v38 = vrot.slane %v433_v29, %v4129_v32 }
  0x92   :  { %352 = vmatmul.mubr.bf16.gmra.mxu0 %v3569_v39  ;;  %679 = vmatmul.mubr.bf16.gmra.mxu1 %v3569_v39 }
  0x93   :  { %361 = vmatprep.mubr.bf16.mxu0 %v3998_v0  ;;  %688 = vmatprep.mubr.bf16.mxu1 %v3998_v0 }
  0x94   :  { %1014 = vmatpush2.bf16.msra.mxu0 %v3621_v41  ;;  %1287 = vmatpush2.bf16.msra.mxu1 %v3624_v42  ;;  %v4135_v42 = vrot.slane %v760_v33, %v4129_v32 }
  0x95   :  { %1015 = vmatprep.subr.bf16.mxu0 %v3629_v43  ;;  %1288 = vmatprep.subr.bf16.mxu1 %v3632_v44  ;;  %v4138_v43 = vrot.slane %v440_v34, %v4129_v32 }
  0x98   :  { %1016 = vmatpush2.bf16.msra.mxu0 %v3627_v45  ;;  %1289 = vmatpush2.bf16.msra.mxu1 %v3630_v46  ;;  %v4141_v46 = vrot.slane %v767_v36, %v4129_v32 }
  0x99   :  { %1017 = vmatprep.subr.bf16.mxu0 %v3635_v47  ;;  %1290 = vmatprep.subr.bf16.mxu1 %v3638_v49 }
  0x9a   :  { %362 = vmatmul.mubr.bf16.gmra.mxu0 %v4095_v48  ;;  %689 = vmatmul.mubr.bf16.gmra.mxu1 %v4095_v48 }
  0x9b   :  { %371 = vmatprep.mubr.bf16.mxu0 %v3998_v0  ;;  %698 = vmatprep.mubr.bf16.mxu1 %v3998_v0 }
  0x9c   :  { %1018 = vmatpush2.bf16.msra.mxu0 %v3633_v50  ;;  %1291 = vmatpush2.bf16.msra.mxu1 %v3636_v51 }
  0x9d   :  { %1019 = vmatprep.subr.bf16.mxu0 %v3641_v52  ;;  %1292 = vmatprep.subr.bf16.mxu1 %v3644_v53 }
  0xa0   :  { %1020 = vmatpush2.bf16.msra.mxu0 %v3639_v54  ;;  %1293 = vmatpush2.bf16.msra.mxu1 %v3642_v55 }
  0xa1   :  { %1021 = vmatprep.subr.bf16.mxu0 %v3647_v56  ;;  %1294 = vmatprep.subr.bf16.mxu1 %v3650_v58 }
  0xa2   :  { %372 = vmatmul.mubr.bf16.gmra.mxu0 %v4101_v57  ;;  %699 = vmatmul.mubr.bf16.gmra.mxu1 %v4101_v57 }
  0xa3   :  { %381 = vmatprep.mubr.bf16.mxu0 %v3998_v0  ;;  %708 = vmatprep.mubr.bf16.mxu1 %v3998_v0 }
  0xa4   :  { %1022 = vmatpush2.bf16.msra.mxu0 %v3645_v59  ;;  %1295 = vmatpush2.bf16.msra.mxu1 %v3648_v60  ;;  %v1395_v60 = vld [vmem:[#allocation6 + $0x190] sm:$0xff] }
  0xa5   :  { %1023 = vmatprep.subr.bf16.mxu0 %v3653_v63  ;;  %1296 = vmatprep.subr.bf16.mxu1 %v3656_v1 }
  0xa8   :  { %1024 = vmatpush2.bf16.msra.mxu0 %v3651_v62  ;;  %1297 = vmatpush2.bf16.msra.mxu1 %v3654_v2  ;;  %v1396_v62 = vld [vmem:[#allocation6 + $0x1b0] sm:$0xff] }
  0xa9   :  { %1025 = vmatprep.subr.bf16.mxu0 %v3659_v3  ;;  %1298 = vmatprep.subr.bf16.mxu1 %v3662_v4  ;;  %v3390_v21 = vcombine.low %v1395_v60, %v1396_v62 }
  0xaa   :  { %382 = vmatmul.mubr.bf16.gmra.mxu0 %v4107_v61  ;;  %709 = vmatmul.mubr.bf16.gmra.mxu1 %v4107_v61 }
  0xac   :  { %1026 = vmatpush2.bf16.msra.mxu0 %v3657_v5  ;;  %1299 = vmatpush2.bf16.msra.mxu1 %v3660_v6 }
  0xad   :  { %1027 = vmatprep.subr.bf16.mxu0 %v3665_v7  ;;  %1300 = vmatprep.subr.bf16.mxu1 %v3668_v10  ;;  %v3391_v7 = vcombine.high %v1395_v60, %v1396_v62  ;;  %v1393_v10 = vld [vmem:[#allocation6 + $0x150] sm:$0xff] }
  0xb0   :  { %1028 = vmatpush2.bf16.msra.mxu0 %v3663_v8  ;;  %1301 = vmatpush2.bf16.msra.mxu1 %v3666_v9 }
  0xb1   :  { %1479 = vmatprep.subr.bf16.mxu0 %v3393_v14  ;;  %v1394_v14 = vld [vmem:[#allocation6 + $0x170] sm:$0xff] }
  0xb2   :  { %v3389_v26 = vcombine.high %v1393_v10, %v1394_v14  ;;  %v3388_v34 = vcombine.low %v1393_v10, %v1394_v14 }
 0x132   :  { %v313_v30 = vpop.f32.mrf.mxu0  ;;  %v640_v31 = vpop.f32.mrf.mxu1 }
 0x134   :  { %v315_v35 = vpop.f32.mrf.mxu0  ;;  %v642_v37 = vpop.f32.mrf.mxu1 }
 0x136   :  { %v317_v39 = vpop.f32.mrf.mxu0  ;;  %v644_v41 = vpop.f32.mrf.mxu1 }
 0x137   :  { %v392_v40 = vpack.c.bf16 %v317_v39, %v313_v30  ;;  %v719_v44 = vpack.c.bf16 %v644_v41, %v640_v31  ;;  %v1391_v30 = vld [vmem:[#allocation6 + $0x110] sm:$0xff] }
 0x138   :  { %v319_v45 = vpop.f32.mrf.mxu0  ;;  %v646_v50 = vpop.f32.mrf.mxu1  ;;  %v1392_v31 = vld [vmem:[#allocation6 + $0x130] sm:$0xff] }
 0x139   :  { %v446_v47 = vadd.bf16 %v4132_v38, %v392_v40  ;;  %v393_v49 = vpack.c.bf16 %v319_v45, %v315_v35  ;;  %v720_v51 = vpack.c.bf16 %v646_v50, %v642_v37  ;;  %v773_v53 = vadd.bf16 %v4135_v42, %v719_v44  ;;  %v1389_v44 = vld [vmem:[#allocation6 + $0xd0] sm:$0xff] }
 0x13a   :  { %v323_v52 = vpop.f32.mrf.mxu0  ;;  %v650_v55 = vpop.f32.mrf.mxu1  ;;  %v3387_v39 = vcombine.high %v1391_v30, %v1392_v31  ;;  %v1390_v45 = vld [vmem:[#allocation6 + $0xf0] sm:$0xff] }
 0x13b   :  { %v447_v54 = vadd.bf16 %v4138_v43, %v393_v49  ;;  %v462_v56 = vmax.bf16 %v3998_v0, %v446_v47  ;;  %v774_v58 = vadd.bf16 %v4141_v46, %v720_v51  ;;  %v789_v4 = vmax.bf16 %v3998_v0, %v773_v53 }
 0x13c   :  { %v325_v59 = vpop.f32.mrf.mxu0  ;;  %v652_v63 = vpop.f32.mrf.mxu1  ;;  %v3386_v53 = vcombine.low %v1391_v30, %v1392_v31 }
 0x13d   :  { %v463_v1 = vmax.bf16 %v3998_v0, %v447_v54  ;;  %v790_v3 = vmax.bf16 %v3998_v0, %v774_v58  ;;  %v3385_v58 = vcombine.high %v1389_v44, %v1390_v45 }
 0x13e   :  { %v327_v2 = vpop.f32.mrf.mxu0  ;;  %v654_v6 = vpop.f32.mrf.mxu1 }
 0x13f   :  { %v394_v5 = vpack.c.bf16 %v327_v2, %v323_v52  ;;  %1302 = vmatprep.mubr.bf16.mxu1 %v463_v1  ;;  %v721_v8 = vpack.c.bf16 %v654_v6, %v650_v55  ;;  %1029 = vmatprep.mubr.bf16.mxu0 %v790_v3  ;;  %v1388_v1 = vld [vmem:[#allocation6 + $0xb0] sm:$0xff]  ;;  %v3384_v6 = vcombine.low %v1389_v44, %v1390_v45 }
 0x140   :  { %v329_v9 = vpop.f32.mrf.mxu0  ;;  %1303 = vmatmul.mubr.bf16.vlgmr.msra.gmra.mxu1 %v462_v56  ;;  %v656_v17 = vpop.f32.mrf.mxu1  ;;  %1030 = vmatmul.mubr.bf16.vlgmr.msra.gmra.mxu0 %v789_v4 }
 0x141   :  { %v448_v15 = vadd.bf16 %v4132_v38, %v394_v5  ;;  %v395_v16 = vpack.c.bf16 %v329_v9, %v325_v59  ;;  %v722_v18 = vpack.c.bf16 %v656_v17, %v652_v63  ;;  %1480 = vmatpush1.bf16.msra.mxu0 %v3392_v13  ;;  %v775_v22 = vadd.bf16 %v4135_v42, %v721_v8  ;;  %v1387_v63 = vld [vmem:[#allocation6 + $0x90] sm:$0xff] }
 0x142   :  { %v333_v20 = vpop.f32.mrf.mxu0  ;;  %v660_v25 = vpop.f32.mrf.mxu1  ;;  %1481 = vmatprep.subr.bf16.mxu0 %v3391_v7  ;;  %v3383_v10 = vcombine.high %v1387_v63, %v1388_v1  ;;  %v1386_v17 = vld [vmem:[#allocation6 + $0x70] sm:$0xff] }
 0x143   :  { %v449_v24 = vadd.bf16 %v4138_v43, %v395_v16  ;;  %v776_v27 = vadd.bf16 %v4141_v46, %v722_v18  ;;  %v464_v29 = vmax.bf16 %v3998_v0, %v448_v15  ;;  %v791_v37 = vmax.bf16 %v3998_v0, %v775_v22  ;;  %v1385_v16 = vld [vmem:[#allocation6 + $0x50] sm:$0xff] }
 0x144   :  { %v335_v28 = vpop.f32.mrf.mxu0  ;;  %v662_v33 = vpop.f32.mrf.mxu1 }
 0x145   :  { %v465_v11 = vmax.bf16 %v3998_v0, %v449_v24  ;;  %v792_v13 = vmax.bf16 %v3998_v0, %v776_v27  ;;  %1482 = vmatpush1.bf16.msra.mxu0 %v3390_v21 }
 0x146   :  { %v337_v12 = vpop.f32.mrf.mxu0  ;;  %v664_v36 = vpop.f32.mrf.mxu1  ;;  %1483 = vmatprep.subr.bf16.mxu0 %v3389_v26 }
 0x147   :  { %v396_v35 = vpack.c.bf16 %v337_v12, %v333_v20  ;;  %1312 = vmatprep.mubr.bf16.mxu1 %v465_v11  ;;  %v723_v40 = vpack.c.bf16 %v664_v36, %v660_v25  ;;  %1039 = vmatprep.mubr.bf16.mxu0 %v792_v13  ;;  %v3382_v25 = vcombine.low %v1387_v63, %v1388_v1  ;;  %v1383_v11 = vld [vmem:[#allocation6 + $0x10] sm:$0xff] }
 0x148   :  { %v339_v41 = vpop.f32.mrf.mxu0  ;;  %1313 = vmatmul.mubr.bf16.gmra.mxu1 %v464_v29  ;;  %v666_v50 = vpop.f32.mrf.mxu1  ;;  %1040 = vmatmul.mubr.bf16.gmra.mxu0 %v791_v37  ;;  %v3381_v29 = vcombine.high %v1385_v16, %v1386_v17  ;;  %v1384_v12 = vld [vmem:[#allocation6 + $0x30] sm:$0xff]  ;;  %v3380_v37 = vcombine.low %v1385_v16, %v1386_v17 }
 0x149   :  { %v450_v47 = vadd.bf16 %v4132_v38, %v396_v35  ;;  %v397_v49 = vpack.c.bf16 %v339_v41, %v335_v28  ;;  %v724_v51 = vpack.c.bf16 %v666_v50, %v662_v33  ;;  %1484 = vmatpush1.bf16.msra.mxu0 %v3388_v34  ;;  %v777_v54 = vadd.bf16 %v4135_v42, %v723_v40  ;;  %v4180_v50 = vld [vmem:[#allocation6 + $0x1f8] sm:$0xff] }
 0x14a   :  { %v343_v52 = vpop.f32.mrf.mxu0  ;;  %v670_v56 = vpop.f32.mrf.mxu1  ;;  %1485 = vmatprep.subr.bf16.mxu0 %v3387_v39  ;;  %v3379_v44 = vcombine.high %v1383_v11, %v1384_v12 }
 0x14b   :  { %v451_v55 = vadd.bf16 %v4138_v43, %v397_v49  ;;  %v778_v59 = vadd.bf16 %v4141_v46, %v724_v51  ;;  %v466_v62 = vmax.bf16 %v3998_v0, %v450_v47  ;;  %v793_v9 = vmax.bf16 %v3998_v0, %v777_v54  ;;  %v4178_v49 = vld [vmem:[#allocation6 + $0x1d8] sm:$0xff] }
 0x14c   :  { %v345_v60 = vpop.f32.mrf.mxu0  ;;  %v672_v2 = vpop.f32.mrf.mxu1 }
 0x14d   :  { %v467_v3 = vmax.bf16 %v3998_v0, %v451_v55  ;;  %v794_v5 = vmax.bf16 %v3998_v0, %v778_v59  ;;  %1486 = vmatpush1.bf16.msra.mxu0 %v3386_v53 }
 0x14e   :  { %v347_v4 = vpop.f32.mrf.mxu0  ;;  %v674_v8 = vpop.f32.mrf.mxu1  ;;  %1487 = vmatprep.subr.bf16.mxu0 %v3385_v58 }
 0x14f   :  { %v398_v7 = vpack.c.bf16 %v347_v4, %v343_v52  ;;  %1322 = vmatprep.mubr.bf16.mxu1 %v467_v3  ;;  %v725_v14 = vpack.c.bf16 %v674_v8, %v670_v56  ;;  %1049 = vmatprep.mubr.bf16.mxu0 %v794_v5  ;;  %v3378_v56 = vcombine.low %v1383_v11, %v1384_v12 }
 0x150   :  { %v349_v15 = vpop.f32.mrf.mxu0  ;;  %1323 = vmatmul.mubr.bf16.gmra.mxu1 %v466_v62  ;;  %v676_v21 = vpop.f32.mrf.mxu1  ;;  %1050 = vmatmul.mubr.bf16.gmra.mxu0 %v793_v9  ;;  %v3442_v62 = vcombine.high %v4178_v49, %v4180_v50 }
 0x151   :  { %v452_v18 = vadd.bf16 %v4132_v38, %v398_v7  ;;  %v399_v20 = vpack.c.bf16 %v349_v15, %v345_v60  ;;  %v726_v22 = vpack.c.bf16 %v676_v21, %v672_v2  ;;  %1488 = vmatpush1.bf16.msra.mxu0 %v3384_v6  ;;  %v779_v26 = vadd.bf16 %v4135_v42, %v725_v14 }
 0x152   :  { %v353_v24 = vpop.f32.mrf.mxu0  ;;  %v680_v28 = vpop.f32.mrf.mxu1  ;;  %1489 = vmatprep.subr.bf16.mxu0 %v3383_v10 }
 0x153   :  { %v453_v27 = vadd.bf16 %v4138_v43, %v399_v20  ;;  %v780_v30 = vadd.bf16 %v4141_v46, %v726_v22  ;;  %v468_v33 = vmax.bf16 %v3998_v0, %v452_v18  ;;  %v795_v41 = vmax.bf16 %v3998_v0, %v779_v26 }
 0x154   :  { %v355_v31 = vpop.f32.mrf.mxu0  ;;  %v682_v13 = vpop.f32.mrf.mxu1 }
 0x155   :  { %v469_v34 = vmax.bf16 %v3998_v0, %v453_v27  ;;  %v796_v36 = vmax.bf16 %v3998_v0, %v780_v30  ;;  %1490 = vmatpush1.bf16.msra.mxu0 %v3382_v25 }
 0x156   :  { %v357_v35 = vpop.f32.mrf.mxu0  ;;  %v684_v40 = vpop.f32.mrf.mxu1  ;;  %1491 = vmatprep.subr.bf16.mxu0 %v3381_v29 }
 0x157   :  { %v400_v39 = vpack.c.bf16 %v357_v35, %v353_v24  ;;  %1332 = vmatprep.mubr.bf16.mxu1 %v469_v34  ;;  %v727_v45 = vpack.c.bf16 %v684_v40, %v680_v28  ;;  %1059 = vmatprep.mubr.bf16.mxu0 %v796_v36 }
 0x158   :  { %v359_v47 = vpop.f32.mrf.mxu0  ;;  %1333 = vmatmul.mubr.bf16.gmra.mxu1 %v468_v33  ;;  %v686_v53 = vpop.f32.mrf.mxu1  ;;  %1060 = vmatmul.mubr.bf16.gmra.mxu0 %v795_v41 }
 0x159   :  { %v454_v51 = vadd.bf16 %v4132_v38, %v400_v39  ;;  %v401_v52 = vpack.c.bf16 %v359_v47, %v355_v31  ;;  %v728_v54 = vpack.c.bf16 %v686_v53, %v682_v13  ;;  %1492 = vmatpush1.bf16.msra.mxu0 %v3380_v37  ;;  %v781_v58 = vadd.bf16 %v4135_v42, %v727_v45 }
 0x15a   :  { %v363_v55 = vpop.f32.mrf.mxu0  ;;  %v690_v60 = vpop.f32.mrf.mxu1  ;;  %1493 = vmatprep.subr.bf16.mxu0 %v3379_v44 }
 0x15b   :  { %v455_v59 = vadd.bf16 %v4138_v43, %v401_v52  ;;  %v782_v63 = vadd.bf16 %v4141_v46, %v728_v54  ;;  %v470_v2 = vmax.bf16 %v3998_v0, %v454_v51  ;;  %v797_v9 = vmax.bf16 %v3998_v0, %v781_v58 }
 0x15c   :  { %v365_v1 = vpop.f32.mrf.mxu0  ;;  %v692_v3 = vpop.f32.mrf.mxu1 }
 0x15d   :  { %v471_v4 = vmax.bf16 %v3998_v0, %v455_v59  ;;  %v798_v6 = vmax.bf16 %v3998_v0, %v782_v63  ;;  %1494 = vmatpush1.bf16.msra.mxu0 %v3378_v56 }
 0x15e   :  { %v367_v5 = vpop.f32.mrf.mxu0  ;;  %v694_v8 = vpop.f32.mrf.mxu1  ;;  %2111 = vmatprep.subr.bf16.mxu0 %v3442_v62 }
 0x15f   :  { %v402_v7 = vpack.c.bf16 %v367_v5, %v363_v55  ;;  %1342 = vmatprep.mubr.bf16.mxu1 %v471_v4  ;;  %v729_v10 = vpack.c.bf16 %v694_v8, %v690_v60  ;;  %1069 = vmatprep.mubr.bf16.mxu0 %v798_v6 }
 0x160   :  { %v369_v14 = vpop.f32.mrf.mxu0  ;;  %1343 = vmatmul.mubr.bf16.gmra.mxu1 %v470_v2  ;;  %v696_v17 = vpop.f32.mrf.mxu1  ;;  %1070 = vmatmul.mubr.bf16.gmra.mxu0 %v797_v9 }
 0x161   :  { %v456_v15 = vadd.bf16 %v4132_v38, %v402_v7  ;;  %v403_v16 = vpack.c.bf16 %v369_v14, %v365_v1  ;;  %v730_v18 = vpack.c.bf16 %v696_v17, %v692_v3  ;;  %v783_v21 = vadd.bf16 %v4135_v42, %v729_v10  ;;  %v4219_v17 = vld [vmem:[#allocation3] sm:$0xff]  }
 0x162   :  { %v373_v20 = vpop.f32.mrf.mxu0  ;;  %v700_v24 = vpop.f32.mrf.mxu1 }
 0x163   :  { %v457_v22 = vadd.bf16 %v4138_v43, %v403_v16  ;;  %v784_v25 = vadd.bf16 %v4141_v46, %v730_v18  ;;  %v472_v27 = vmax.bf16 %v3998_v0, %v456_v15  ;;  %v799_v12 = vmax.bf16 %v3998_v0, %v783_v21  ;;  %v2025_v15 = vld [vmem:[#allocation6 + $0x158] sm:$0xff] }
 0x164   :  { %v375_v26 = vpop.f32.mrf.mxu0  ;;  %v702_v28 = vpop.f32.mrf.mxu1  ;;  %v2026_v16 = vld [vmem:[#allocation6 + $0x178] sm:$0xff] }
 0x165   :  { %v473_v29 = vmax.bf16 %v3998_v0, %v457_v22  ;;  %v800_v31 = vmax.bf16 %v3998_v0, %v784_v25  ;;  %v2023_v21 = vld [vmem:[#allocation6 + $0x118] sm:$0xff] }
 0x166   :  { %v377_v30 = vpop.f32.mrf.mxu0  ;;  %v704_v11 = vpop.f32.mrf.mxu1  ;;  %v2024_v22 = vld [vmem:[#allocation6 + $0x138] sm:$0xff] }
 0x167   :  { %v404_v33 = vpack.c.bf16 %v377_v30, %v373_v20  ;;  %1352 = vmatprep.mubr.bf16.mxu1 %v473_v29  ;;  %v731_v13 = vpack.c.bf16 %v704_v11, %v700_v24  ;;  %1079 = vmatprep.mubr.bf16.mxu0 %v800_v31  ;;  %v3438_v20 = vcombine.high %v2025_v15, %v2026_v16  ;;  %v2019_v29 = vld [vmem:[#allocation6 + $0x98] sm:$0xff] }
 0x168   :  { %v379_v34 = vpop.f32.mrf.mxu0  ;;  %1353 = vmatmul.mubr.bf16.gmra.mxu1 %v472_v27  ;;  %v706_v37 = vpop.f32.mrf.mxu1  ;;  %1080 = vmatmul.mubr.bf16.gmra.mxu0 %v799_v12  ;;  %v3437_v24 = vcombine.low %v2025_v15, %v2026_v16  ;;  %v3436_v25 = vcombine.high %v2023_v21, %v2024_v22  ;;  %v3435_v27 = vcombine.low %v2023_v21, %v2024_v22  ;;  %v2020_v30 = vld [vmem:[#allocation6 + $0xb8] sm:$0xff]  ;;  %v3716_v16 = vld [vmem:[#allocation9 + $0x284] ss:$8 sps:$4 sm:$0xff]  }
 0x169   :  { %v458_v35 = vadd.bf16 %v4132_v38, %v404_v33  ;;  %v405_v36 = vpack.c.bf16 %v379_v34, %v375_v26  ;;  %v732_v39 = vpack.c.bf16 %v706_v37, %v702_v28  ;;  %v785_v41 = vadd.bf16 %v4135_v42, %v731_v13  ;;  %v4223_v26 = vld [vmem:[#allocation3 + $0x8] sm:$0xff]   ;;  %v3671_v31 = vld [vmem:[#allocation9 + $0x274] ss:$8 sps:$4 sm:$0xff]   ;;  %v3669_v11 = vld [vmem:[#allocation9 + $0x270] ss:$8 sps:$4 sm:$0xff]  }
 0x16a   :  { %v383_v40 = vpop.f32.mrf.mxu0  ;;  %v710_v45 = vpop.f32.mrf.mxu1  ;;  %v3432_v12 = vcombine.high %v2019_v29, %v2020_v30  ;;  %1870 = vmatprep.subr.bf16.mxu1 %v3671_v31  ;;  %v2017_v13 = vld [vmem:[#allocation6 + $0x58] sm:$0xff]  ;;  %v3431_v37 = vcombine.low %v2019_v29, %v2020_v30  ;;  %v3835_v21 = vld [vmem:[#allocation3 + $0x30] sm:$0xff]  }
 0x16b   :  { %v459_v44 = vadd.bf16 %v4138_v43, %v405_v36  ;;  %v786_v47 = vadd.bf16 %v4141_v46, %v732_v39  ;;  %v474_v52 = vmax.bf16 %v3998_v0, %v458_v35  ;;  %v801_v60 = vmax.bf16 %v3998_v0, %v785_v41  ;;  %v2018_v34 = vld [vmem:[#allocation6 + $0x78] sm:$0xff]  ;;  %1871 = vmatpush1.bf16.msra.mxu1 %v3669_v11  ;;  %v4227_v35 = vld [vmem:[#allocation3 + $0x10] sm:$0xff]  }
 0x16c   :  { %v385_v51 = vpop.f32.mrf.mxu0  ;;  %v712_v53 = vpop.f32.mrf.mxu1  ;;  %v3674_v36 = vld [vmem:[#allocation9 + $0x264] ss:$8 sps:$4 sm:$0xff]   ;;  %v3672_v39 = vld [vmem:[#allocation9 + $0x260] ss:$8 sps:$4 sm:$0xff]   ;;  %v2015_v41 = vld [vmem:[#allocation6 + $0x18] sm:$0xff] }
 0x16d   :  { %v475_v54 = vmax.bf16 %v3998_v0, %v459_v44  ;;  %v802_v56 = vmax.bf16 %v3998_v0, %v786_v47  ;;  %1872 = vmatprep.subr.bf16.mxu1 %v3674_v36  ;;  %v2016_v44 = vld [vmem:[#allocation6 + $0x38] sm:$0xff]  ;;  %v3429_v47 = vcombine.low %v2017_v13, %v2018_v34 }
 0x16e   :  { %v387_v55 = vpop.f32.mrf.mxu0  ;;  %v714_v59 = vpop.f32.mrf.mxu1  ;;  %v3711_v15 = vld [vmem:[#allocation9 + $0x290] ss:$8 sps:$4 sm:$0xff]  }
 0x16f   :  { %v406_v58 = vpack.c.bf16 %v387_v55, %v383_v40  ;;  %1362 = vmatprep.mubr.bf16.mxu1 %v475_v54  ;;  %v733_v62 = vpack.c.bf16 %v714_v59, %v710_v45  ;;  %1089 = vmatprep.mubr.bf16.mxu0 %v802_v56  ;;  %v3430_v40 = vcombine.high %v2017_v13, %v2018_v34  ;;  %v3677_v45 = vld [vmem:[#allocation9 + $0x254] ss:$8 sps:$4 sm:$0xff]   ;;  %v3680_v54 = vld [vmem:[#allocation9 + $0x244] ss:$8 sps:$4 sm:$0xff]   ;;  %v3678_v56 = vld [vmem:[#allocation9 + $0x240] ss:$8 sps:$4 sm:$0xff]  }
 0x170   :  { %v389_v63 = vpop.f32.mrf.mxu0  ;;  %1363 = vmatmul.mubr.bf16.gmra.mxu1 %v474_v52  ;;  %v716_v3 = vpop.f32.mrf.mxu1  ;;  %1090 = vmatmul.mubr.bf16.gmra.mxu0 %v801_v60  ;;  %v3428_v52 = vcombine.high %v2015_v41, %v2016_v44  ;;  %v3427_v55 = vcombine.low %v2015_v41, %v2016_v44  ;;  %v3681_v59 = vld [vmem:[#allocation9 + $0x230] ss:$8 sps:$4 sm:$0xff]  }
 0x171   :  { %v460_v1 = vadd.bf16 %v4132_v38, %v406_v58  ;;  %v407_v2 = vpack.c.bf16 %v389_v63, %v385_v51  ;;  %v734_v4 = vpack.c.bf16 %v716_v3, %v712_v53  ;;  %v787_v5 = vadd.bf16 %v4135_v42, %v733_v62  ;;  %v2027_v38 = vld [vmem:[#allocation6 + $0x198] sm:$0xff]  ;;  %1873 = vmatpush1.bf16.msra.mxu1 %v3672_v39  ;;  %v3833_v60 = vld [vmem:[#allocation3 + $0x20] sm:$0xff]   ;;  %v3686_v62 = vld [vmem:[#allocation9 + $0x224] ss:$8 sps:$4 sm:$0xff]  }
 0x172   :  { %v2028_v42 = vld [vmem:[#allocation6 + $0x1b8] sm:$0xff]  ;;  %1874 = vmatprep.subr.bf16.mxu1 %v3677_v45  ;;  %v3684_v63 = vld [vmem:[#allocation9 + $0x220] ss:$8 sps:$4 sm:$0xff]   ;;  %v3692_v3 = vld [vmem:[#allocation9 + $0x204] ss:$8 sps:$4 sm:$0xff]  }
 0x173   :  { %v461_v6 = vadd.bf16 %v4138_v43, %v407_v2  ;;  %v788_v7 = vadd.bf16 %v4141_v46, %v734_v4  ;;  %v476_v8 = vmax.bf16 %v3998_v0, %v460_v1  ;;  %v803_v14 = vmax.bf16 %v3998_v0, %v787_v5  ;;  %v3675_v51 = vld [vmem:[#allocation9 + $0x250] ss:$8 sps:$4 sm:$0xff]   ;;  %v3683_v58 = vld [vmem:[#allocation9 + $0x234] ss:$8 sps:$4 sm:$0xff]   ;;  %v3690_v4 = vld [vmem:[#allocation9 + $0x200] ss:$8 sps:$4 sm:$0xff]  }
 0x174   :  { %v3441_v43 = vcombine.low %v4178_v49, %v4180_v50  ;;  %v3440_v46 = vcombine.high %v2027_v38, %v2028_v42  ;;  %v3439_v18 = vcombine.low %v2027_v38, %v2028_v42  ;;  %v2021_v49 = vld [vmem:[#allocation6 + $0xd8] sm:$0xff]  ;;  %v3708_v42 = vld [vmem:[#allocation9 + $0x2a0] ss:$8 sps:$4 sm:$0xff]  }
 0x175   :  { %v477_v9 = vmax.bf16 %v3998_v0, %v461_v6  ;;  %v804_v10 = vmax.bf16 %v3998_v0, %v788_v7  ;;  %v2022_v50 = vld [vmem:[#allocation6 + $0xf8] sm:$0xff]  ;;  %1875 = vmatpush1.bf16.msra.mxu1 %v3675_v51  ;;  %v3698_v7 = vld [vmem:[#allocation9 + $0x2e4] ss:$8 sps:$4 sm:$0xff]  }
 0x176   :  { %v3434_v28 = vcombine.high %v2021_v49, %v2022_v50  ;;  %v3433_v33 = vcombine.low %v2021_v49, %v2022_v50  ;;  %v4231_v53 = vld [vmem:[#allocation3 + $0x18] sm:$0xff]   ;;  %1876 = vmatprep.subr.bf16.mxu1 %v3680_v54 }
 0x177   :  { %1372 = vmatprep.mubr.bf16.mxu1 %v477_v9  ;;  %1099 = vmatprep.mubr.bf16.mxu0 %v804_v10  ;;  %v3689_v1 = vld [vmem:[#allocation9 + $0x214] ss:$8 sps:$4 sm:$0xff]   ;;  %v3687_v2 = vld [vmem:[#allocation9 + $0x210] ss:$8 sps:$4 sm:$0xff]   ;;  %v3704_v10 = vld [vmem:[#allocation9 + $0x2c4] ss:$8 sps:$4 sm:$0xff]  }
 0x178   :  { %1373 = vmatmul.mubr.bf16.gmra.mxu1 %v476_v8  ;;  %1100 = vmatmul.mubr.bf16.gmra.mxu0 %v803_v14  ;;  %v3695_v5 = vld [vmem:[#allocation9 + $0x2f4] ss:$8 sps:$4 sm:$0xff]   ;;  %v3693_v6 = vld [vmem:[#allocation9 + $0x2f0] ss:$8 sps:$4 sm:$0xff]   ;;  %v3696_v8 = vld [vmem:[#allocation9 + $0x2e0] ss:$8 sps:$4 sm:$0xff]  }
 0x179   :  { %1511 = vmatprep.mubr.bf16.mxu0 %v3998_v0  ;;  %1877 = vmatpush1.bf16.msra.mxu1 %v3678_v56  ;;  %v3701_v9 = vld [vmem:[#allocation9 + $0x2d4] ss:$8 sps:$4 sm:$0xff]   ;;  %v3702_v14 = vld [vmem:[#allocation9 + $0x2c0] ss:$8 sps:$4 sm:$0xff]  }
 0x17a   :  { %1878 = vmatprep.subr.bf16.mxu1 %v3683_v58  ;;  %v3707_v38 = vld [vmem:[#allocation9 + $0x2b4] ss:$8 sps:$4 sm:$0xff]  }
 0x17d   :  { %1879 = vmatpush1.bf16.msra.mxu1 %v3681_v59 }
 0x17e   :  { %1880 = vmatprep.subr.bf16.mxu1 %v3686_v62 }
 0x180   :  { %1512 = vmatmul.mubr.bf16.vlgmr.msra.gmra.mxu0 %v4219_v17 }
 0x181   :  { %2112 = vmatpush1.bf16.msra.mxu0 %v3441_v43  ;;  %1521 = vmatprep.mubr.bf16.mxu0 %v3998_v0  ;;  %v3710_v43 = vld [vmem:[#allocation9 + $0x2a4] ss:$8 sps:$4 sm:$0xff]  }
 0x182   :  { %2113 = vmatprep.subr.bf16.mxu0 %v3440_v46  ;;  %1881 = vmatpush1.bf16.msra.mxu1 %v3684_v63  ;;  %v3713_v46 = vld [vmem:[#allocation9 + $0x294] ss:$8 sps:$4 sm:$0xff]  }
 0x183   :  { %1882 = vmatprep.subr.bf16.mxu1 %v3689_v1 }
 0x185   :  { %2114 = vmatpush1.bf16.msra.mxu0 %v3439_v18  ;;  %v3714_v18 = vld [vmem:[#allocation9 + $0x280] ss:$8 sps:$4 sm:$0xff]  }
 0x186   :  { %2115 = vmatprep.subr.bf16.mxu0 %v3438_v20  ;;  %1883 = vmatpush1.bf16.msra.mxu1 %v3687_v2  ;;  %v3719_v20 = vld [vmem:[#allocation9 + $0x374] ss:$8 sps:$4 sm:$0xff]  }
 0x187   :  { %1884 = vmatprep.subr.bf16.mxu1 %v3692_v3 }
 0x188   :  { %1522 = vmatmul.mubr.bf16.gmra.mxu0 %v4223_v26 }
 0x189   :  { %1531 = vmatprep.mubr.bf16.mxu0 %v3998_v0  ;;  %2116 = vmatpush1.bf16.msra.mxu0 %v3437_v24 }
 0x18a   :  { %2117 = vmatprep.subr.bf16.mxu0 %v3436_v25  ;;  %1885 = vmatpush1.bf16.msra.mxu1 %v3690_v4 }
 0x18b   :  { %1886 = vmatprep.subr.bf16.mxu1 %v3695_v5 }
 0x18d   :  { %2118 = vmatpush1.bf16.msra.mxu0 %v3435_v27 }
 0x18e   :  { %2119 = vmatprep.subr.bf16.mxu0 %v3434_v28  ;;  %1887 = vmatpush2.bf16.msra.mxu1 %v3693_v6 }
 0x18f   :  { %1888 = vmatprep.subr.bf16.mxu1 %v3698_v7 }
 0x190   :  { %1532 = vmatmul.mubr.bf16.gmra.mxu0 %v4227_v35 }
 0x191   :  { %1541 = vmatprep.mubr.bf16.mxu0 %v3998_v0  ;;  %2120 = vmatpush1.bf16.msra.mxu0 %v3433_v33 }
 0x192   :  { %2121 = vmatprep.subr.bf16.mxu0 %v3432_v12  ;;  %1889 = vmatpush2.bf16.msra.mxu1 %v3696_v8 }
 0x193   :  { %1890 = vmatprep.subr.bf16.mxu1 %v3701_v9 }
 0x195   :  { %2122 = vmatpush1.bf16.msra.mxu0 %v3431_v37 }
 0x196   :  { %2123 = vmatprep.subr.bf16.mxu0 %v3430_v40 }
 0x198   :  { %1542 = vmatmul.mubr.bf16.gmra.mxu0 %v4231_v53 }
 0x199   :  { %1551 = vmatprep.mubr.bf16.mxu0 %v3998_v0  ;;  %2124 = vmatpush1.bf16.msra.mxu0 %v3429_v47 }
 0x19a   :  { %2125 = vmatprep.subr.bf16.mxu0 %v3428_v52 }
 0x19d   :  { %2126 = vmatpush1.bf16.msra.mxu0 %v3427_v55 }
 0x1a0   :  { %1552 = vmatmul.mubr.bf16.gmra.mxu0 %v3833_v60 }
 0x1a1   :  { %1561 = vmatprep.mubr.bf16.mxu0 %v3998_v0 }
 0x1a8   :  { %1562 = vmatmul.mubr.bf16.gmra.mxu0 %v4095_v48  ;;  %v3699_v48 = vld [vmem:[#allocation9 + $0x2d0] ss:$8 sps:$4 sm:$0xff]  }
 0x1a9   :  { %1571 = vmatprep.mubr.bf16.mxu0 %v3998_v0  ;;  %1891 = vmatpush2.bf16.msra.mxu1 %v3699_v48 }
 0x1aa   :  { %1892 = vmatprep.subr.bf16.mxu1 %v3704_v10 }
 0x1ad   :  { %1893 = vmatpush2.bf16.msra.mxu1 %v3702_v14 }
 0x1ae   :  { %1894 = vmatprep.subr.bf16.mxu1 %v3707_v38 }
 0x1b0   :  { %1572 = vmatmul.mubr.bf16.gmra.mxu0 %v4101_v57  ;;  %v3705_v57 = vld [vmem:[#allocation9 + $0x2b0] ss:$8 sps:$4 sm:$0xff]  }
 0x1b1   :  { %1581 = vmatprep.mubr.bf16.mxu0 %v3998_v0  ;;  %1895 = vmatpush2.bf16.msra.mxu1 %v3705_v57 }
 0x1b2   :  { %1896 = vmatprep.subr.bf16.mxu1 %v3710_v43 }
 0x1b5   :  { %1897 = vmatpush2.bf16.msra.mxu1 %v3708_v42 }
 0x1b6   :  { %1898 = vmatprep.subr.bf16.mxu1 %v3713_v46 }
 0x1b8   :  { %1582 = vmatmul.mubr.bf16.gmra.mxu0 %v4107_v61 }
 0x1b9   :  { %2143 = vmatprep.mubr.bf16.mxu0 %v3998_v0  ;;  %1899 = vmatpush2.bf16.msra.mxu1 %v3711_v15 }
 0x1ba   :  { %1900 = vmatprep.subr.bf16.mxu1 %v3716_v16 }
 0x1bd   :  { %1901 = vmatpush2.bf16.msra.mxu1 %v3714_v18 }
 0x1be   :  { %2502 = vmatprep.subr.bf16.mxu1 %v3719_v20 }
 0x1c0   :  { %2144 = vmatmul.mubr.bf16.vlgmr.msra.gmra.mxu0 %v4219_v17  ;;  %v3834_v17 = vld [vmem:[#allocation3 + $0x28] sm:$0xff]  }
 0x1c1   :  { %2153 = vmatprep.mubr.bf16.mxu0 %v3998_v0 }
 0x1c8   :  { %2154 = vmatmul.mubr.bf16.gmra.mxu0 %v4223_v26 }
 0x1c9   :  { %2163 = vmatprep.mubr.bf16.mxu0 %v3998_v0 }
 0x1d0   :  { %2164 = vmatmul.mubr.bf16.gmra.mxu0 %v4227_v35 }
 0x1d1   :  { %2173 = vmatprep.mubr.bf16.mxu0 %v3998_v0 }
 0x1d8   :  { %2174 = vmatmul.mubr.bf16.gmra.mxu0 %v4231_v53 }
 0x1d9   :  { %2183 = vmatprep.mubr.bf16.mxu0 %v3998_v0 }
 0x1e0   :  { %2184 = vmatmul.mubr.bf16.gmra.mxu0 %v3833_v60 }
 0x1e1   :  { %2193 = vmatprep.mubr.bf16.mxu0 %v3998_v0 }
 0x1e8   :  { %2194 = vmatmul.mubr.bf16.gmra.mxu0 %v3834_v17 }
 0x1e9   :  { %2203 = vmatprep.mubr.bf16.mxu0 %v3998_v0 }
 0x1f0   :  { %2204 = vmatmul.mubr.bf16.gmra.mxu0 %v3835_v21 }
 0x1f1   :  { %2213 = vmatprep.mubr.bf16.mxu0 %v3998_v0 }
 0x1f8   :  { %2214 = vmatmul.mubr.bf16.gmra.mxu0 %v4107_v61 }
 0x200   :  { %v1304_v22 = vpop.f32.mrf.mxu1  ;;  %v1031_v24 = vpop.f32.mrf.mxu0 }
 0x201   :  { %v4254_v25 = vadd.f32 %v1304_v22, %v1031_v24 }
 0x202   :  { %v1306_v49 = vpop.f32.mrf.mxu1  ;;  %v1033_v50 = vpop.f32.mrf.mxu0 }
 0x203   :  { %v4256_v26 = vadd.f32 %v1306_v49, %v1033_v50 }
 0x204   :  { %v1308_v27 = vpop.f32.mrf.mxu1  ;;  %v1035_v28 = vpop.f32.mrf.mxu0 }
 0x205   :  { %v4258_v29 = vadd.f32 %v1308_v27, %v1035_v28 }
 0x206   :  { %v1310_v30 = vpop.f32.mrf.mxu1  ;;  %v1037_v31 = vpop.f32.mrf.mxu0 }
 0x207   :  { %v4260_v33 = vadd.f32 %v1310_v30, %v1037_v31 }
 0x208   :  { %v1314_v11 = vpop.f32.mrf.mxu1  ;;  %v1041_v12 = vpop.f32.mrf.mxu0 }
 0x209   :  { %v4262_v13 = vadd.f32 %v1314_v11, %v1041_v12 }
 0x20a   :  { %v1316_v61 = vpop.f32.mrf.mxu1  ;;  %v1043_v34 = vpop.f32.mrf.mxu0 }
 0x20b   :  { %v4264_v35 = vadd.f32 %v1316_v61, %v1043_v34 }
 0x20c   :  { %v1318_v36 = vpop.f32.mrf.mxu1  ;;  %v1045_v37 = vpop.f32.mrf.mxu0 }
 0x20d   :  { %v4266_v39 = vadd.f32 %v1318_v36, %v1045_v37 }
 0x20e   :  { %v1320_v40 = vpop.f32.mrf.mxu1  ;;  %v1047_v41 = vpop.f32.mrf.mxu0 }
 0x20f   :  { %v4268_v44 = vadd.f32 %v1320_v40, %v1047_v41 }
 0x210   :  { %v1324_v45 = vpop.f32.mrf.mxu1  ;;  %v1051_v47 = vpop.f32.mrf.mxu0 }
 0x211   :  { %v4270_v51 = vadd.f32 %v1324_v45, %v1051_v47 }
 0x212   :  { %v1326_v52 = vpop.f32.mrf.mxu1  ;;  %v1053_v53 = vpop.f32.mrf.mxu0 }
 0x213   :  { %v4272_v54 = vadd.f32 %v1326_v52, %v1053_v53 }
 0x214   :  { %v1328_v55 = vpop.f32.mrf.mxu1  ;;  %v1055_v56 = vpop.f32.mrf.mxu0 }
 0x215   :  { %v4274_v58 = vadd.f32 %v1328_v55, %v1055_v56 }
 0x216   :  { %v1330_v59 = vpop.f32.mrf.mxu1  ;;  %v1057_v60 = vpop.f32.mrf.mxu0 }
 0x217   :  { %v4276_v62 = vadd.f32 %v1330_v59, %v1057_v60  ;;  %v3394_v60 = vld.sshfl [vmem:[#allocation8 + $0x4] sm:$0x11 pattern:$0x75316420] }
 0x218   :  { %v1334_v63 = vpop.f32.mrf.mxu1  ;;  %v1061_v1 = vpop.f32.mrf.mxu0 }
 0x219   :  { %v4278_v2 = vadd.f32 %v1334_v63, %v1061_v1 }
 0x21a   :  { %v1336_v3 = vpop.f32.mrf.mxu1  ;;  %v1063_v4 = vpop.f32.mrf.mxu0 }
 0x21b   :  { %v4280_v5 = vadd.f32 %v1336_v3, %v1063_v4 }
 0x21c   :  { %v1338_v6 = vpop.f32.mrf.mxu1  ;;  %v1065_v7 = vpop.f32.mrf.mxu0 }
 0x21d   :  { %v4282_v8 = vadd.f32 %v1338_v6, %v1065_v7  ;;  %v1617_v7 = vcombine.high %v3394_v60, %v3394_v60 }
 0x21e   :  { %v1340_v9 = vpop.f32.mrf.mxu1  ;;  %v1067_v48 = vpop.f32.mrf.mxu0 }
 0x21f   :  { %v4284_v10 = vadd.f32 %v1340_v9, %v1067_v48 }
 0x220   :  { %v1344_v14 = vpop.f32.mrf.mxu1  ;;  %v1071_v38 = vpop.f32.mrf.mxu0 }
 0x221   :  { %v4286_v57 = vadd.f32 %v1344_v14, %v1071_v38 }
 0x222   :  { %v1346_v42 = vpop.f32.mrf.mxu1  ;;  %v1073_v43 = vpop.f32.mrf.mxu0 }
 0x223   :  { %v4288_v46 = vadd.f32 %v1346_v42, %v1073_v43  ;;  %v1624_v42 = vrot.slane %v3394_v60, %v4122_v23  ;;  %v3722_v60 = vld [vmem:[#allocation9 + $0x364] ss:$8 sps:$4 sm:$0xff]  }
 0x224   :  { %v1348_v15 = vpop.f32.mrf.mxu1  ;;  %v1075_v16 = vpop.f32.mrf.mxu0 }
 0x225   :  { %v4290_v18 = vadd.f32 %v1348_v15, %v1075_v16  ;;  %v1631_v15 = vrot.slane %v1617_v7, %v4122_v23  ;;  %v3720_v7 = vld [vmem:[#allocation9 + $0x360] ss:$8 sps:$4 sm:$0xff]  }
 0x226   :  { %v1350_v20 = vpop.f32.mrf.mxu1  ;;  %v1077_v17 = vpop.f32.mrf.mxu0 }
 0x227   :  { %v4292_v21 = vadd.f32 %v1350_v20, %v1077_v17  ;;  %v1633_v17 = vpack.i.b16 %v1624_v42, %v1624_v42 }
 0x228   :  { %v1354_v22 = vpop.f32.mrf.mxu1  ;;  %v1081_v24 = vpop.f32.mrf.mxu0 }
 0x229   :  { %v4294_v49 = vadd.f32 %v1354_v22, %v1081_v24  ;;  %v1640_v22 = vpack.i.b16 %v1631_v15, %v1631_v15 }
 0x22a   :  { %v1356_v50 = vpop.f32.mrf.mxu1  ;;  %v1083_v27 = vpop.f32.mrf.mxu0 }
 0x22b   :  { %v4296_v28 = vadd.f32 %v1356_v50, %v1083_v27  ;;  %v4321_v27 = vrot.slane %v1633_v17, %v4129_v32  ;;  %v3723_v17 = vld [vmem:[#allocation9 + $0x350] ss:$8 sps:$4 sm:$0xff]  }
 0x22c   :  { %v1358_v30 = vpop.f32.mrf.mxu1  ;;  %v1085_v31 = vpop.f32.mrf.mxu0 }
 0x22d   :  { %v4298_v11 = vadd.f32 %v1358_v30, %v1085_v31  ;;  %v4324_v31 = vrot.slane %v1640_v22, %v4129_v32 }
 0x22e   :  { %v1360_v12 = vpop.f32.mrf.mxu1  ;;  %v1087_v61 = vpop.f32.mrf.mxu0 }
 0x22f   :  { %v4300_v34 = vadd.f32 %v1360_v12, %v1087_v61 }
 0x230   :  { %v1364_v36 = vpop.f32.mrf.mxu1  ;;  %v1091_v37 = vpop.f32.mrf.mxu0 }
 0x231   :  { %v4302_v40 = vadd.f32 %v1364_v36, %v1091_v37 }
 0x232   :  { %v1366_v41 = vpop.f32.mrf.mxu1  ;;  %v1093_v45 = vpop.f32.mrf.mxu0 }
 0x233   :  { %v4304_v47 = vadd.f32 %v1366_v41, %v1093_v45 }
 0x234   :  { %v1368_v52 = vpop.f32.mrf.mxu1  ;;  %v1095_v53 = vpop.f32.mrf.mxu0 }
 0x235   :  { %v4306_v55 = vadd.f32 %v1368_v52, %v1095_v53  ;;  %v3717_v53 = vld [vmem:[#allocation9 + $0x370] ss:$8 sps:$4 sm:$0xff]  }
 0x236   :  { %v1370_v56 = vpop.f32.mrf.mxu1  ;;  %v1097_v59 = vpop.f32.mrf.mxu0 }
 0x237   :  { %v4308_v63 = vadd.f32 %v1370_v56, %v1097_v59 }
 0x238   :  { %v1374_v1 = vpop.f32.mrf.mxu1  ;;  %v1101_v3 = vpop.f32.mrf.mxu0 }
 0x239   :  { %v4310_v4 = vadd.f32 %v1374_v1, %v1101_v3 }
 0x23a   :  { %v1376_v6 = vpop.f32.mrf.mxu1  ;;  %v1103_v9 = vpop.f32.mrf.mxu0 }
 0x23b   :  { %v4312_v48 = vadd.f32 %v1376_v6, %v1103_v9 }
 0x23c   :  { %v1378_v14 = vpop.f32.mrf.mxu1  ;;  %v1105_v38 = vpop.f32.mrf.mxu0 }
 0x23d   :  { %v4315_v43 = vadd.f32 %v1378_v14, %v1105_v38  ;;  %v3725_v38 = vld [vmem:[#allocation9 + $0x354] ss:$8 sps:$4 sm:$0xff]  }
 0x23e   :  { %v4318_v16 = vpop.f32.mrf.mxu0 }
 0x240   :  { %v1513_v20 = vpop.f32.mrf.mxu0 }
 0x242   :  { %v1515_v24 = vpop.f32.mrf.mxu0 }
 0x244   :  { %v1517_v50 = vpop.f32.mrf.mxu0 }
 0x245   :  { %v1592_v30 = vpack.c.bf16 %v1517_v50, %v1513_v20  ;;  %v3728_v50 = vld [vmem:[#allocation9 + $0x344] ss:$8 sps:$4 sm:$0xff]  }
 0x246   :  { %v1519_v12 = vpop.f32.mrf.mxu0 }
 0x247   :  { %v1593_v61 = vpack.c.bf16 %v1519_v12, %v1515_v24  ;;  %v1646_v36 = vadd.bf16 %v4321_v27, %v1592_v30 }
 0x248   :  { %v1523_v37 = vpop.f32.mrf.mxu0 }
 0x249   :  { %v1647_v41 = vadd.bf16 %v4324_v31, %v1593_v61  ;;  %v1662_v56 = vmax.bf16 %v3998_v0, %v1646_v36  ;;  %v3726_v36 = vld [vmem:[#allocation9 + $0x340] ss:$8 sps:$4 sm:$0xff]  }
 0x24a   :  { %v1525_v45 = vpop.f32.mrf.mxu0 }
 0x24b   :  { %v1663_v52 = vmax.bf16 %v3998_v0, %v1647_v41 }
 0x24c   :  { %v1527_v59 = vpop.f32.mrf.mxu0 }
 0x24d   :  { %v1594_v1 = vpack.c.bf16 %v1527_v59, %v1523_v37  ;;  %1902 = vmatprep.mubr.bf16.mxu1 %v1663_v52  ;;  %v3729_v59 = vld [vmem:[#allocation9 + $0x330] ss:$8 sps:$4 sm:$0xff]  }
 0x24e   :  { %v1529_v3 = vpop.f32.mrf.mxu0  ;;  %1903 = vmatmul.mubr.bf16.vlgmr.msra.gmra.mxu1 %v1662_v56 }
 0x24f   :  { %v1595_v6 = vpack.c.bf16 %v1529_v3, %v1525_v45  ;;  %2503 = vmatpush1.bf16.msra.mxu1 %v3717_v53  ;;  %v1648_v9 = vadd.bf16 %v4321_v27, %v1594_v1  ;;  %v3731_v45 = vld [vmem:[#allocation9 + $0x334] ss:$8 sps:$4 sm:$0xff]   ;;  %v3734_v3 = vld [vmem:[#allocation9 + $0x324] ss:$8 sps:$4 sm:$0xff]  }
 0x250   :  { %v1533_v14 = vpop.f32.mrf.mxu0  ;;  %2504 = vmatprep.subr.bf16.mxu1 %v3722_v60 }
 0x251   :  { %v1649_v42 = vadd.bf16 %v4324_v31, %v1595_v6  ;;  %v1664_v24 = vmax.bf16 %v3998_v0, %v1648_v9 }
 0x252   :  { %v1535_v15 = vpop.f32.mrf.mxu0 }
 0x253   :  { %2505 = vmatpush1.bf16.msra.mxu1 %v3720_v7  ;;  %v1665_v20 = vmax.bf16 %v3998_v0, %v1649_v42 }
 0x254   :  { %v1537_v22 = vpop.f32.mrf.mxu0  ;;  %2506 = vmatprep.subr.bf16.mxu1 %v3725_v38 }
 0x255   :  { %v1596_v30 = vpack.c.bf16 %v1537_v22, %v1533_v14  ;;  %1912 = vmatprep.mubr.bf16.mxu1 %v1665_v20  ;;  %v3732_v14 = vld [vmem:[#allocation9 + $0x320] ss:$8 sps:$4 sm:$0xff]  }
 0x256   :  { %v1539_v12 = vpop.f32.mrf.mxu0  ;;  %1913 = vmatmul.mubr.bf16.gmra.mxu1 %v1664_v24  ;;  %v3735_v24 = vld [vmem:[#allocation9 + $0x310] ss:$8 sps:$4 sm:$0xff]  }
 0x257   :  { %v1597_v61 = vpack.c.bf16 %v1539_v12, %v1535_v15  ;;  %2507 = vmatpush1.bf16.msra.mxu1 %v3723_v17  ;;  %v1650_v37 = vadd.bf16 %v4321_v27, %v1596_v30  ;;  %v3737_v15 = vld [vmem:[#allocation9 + $0x314] ss:$8 sps:$4 sm:$0xff]   ;;  %v3740_v12 = vld [vmem:[#allocation9 + $0x304] ss:$8 sps:$4 sm:$0xff]  }
 0x258   :  { %v1543_v41 = vpop.f32.mrf.mxu0  ;;  %2508 = vmatprep.subr.bf16.mxu1 %v3728_v50 }
 0x259   :  { %v1651_v52 = vadd.bf16 %v4324_v31, %v1597_v61  ;;  %v1666_v1 = vmax.bf16 %v3998_v0, %v1650_v37 }
 0x25a   :  { %v1545_v53 = vpop.f32.mrf.mxu0 }
 0x25b   :  { %2509 = vmatpush1.bf16.msra.mxu1 %v3726_v36  ;;  %v1667_v56 = vmax.bf16 %v3998_v0, %v1651_v52 }
 0x25c   :  { %v1547_v60 = vpop.f32.mrf.mxu0  ;;  %2510 = vmatprep.subr.bf16.mxu1 %v3731_v45 }
 0x25d   :  { %v1598_v6 = vpack.c.bf16 %v1547_v60, %v1543_v41  ;;  %1922 = vmatprep.mubr.bf16.mxu1 %v1667_v56  ;;  %v3738_v41 = vld [vmem:[#allocation9 + $0x300] ss:$8 sps:$4 sm:$0xff]  }
 0x25e   :  { %v1549_v7 = vpop.f32.mrf.mxu0  ;;  %1923 = vmatmul.mubr.bf16.gmra.mxu1 %v1666_v1  ;;  %v3741_v1 = vld [vmem:[#allocation9 + $0x3f0] ss:$8 sps:$4 sm:$0xff]  }
 0x25f   :  { %v1599_v9 = vpack.c.bf16 %v1549_v7, %v1545_v53  ;;  %2511 = vmatpush1.bf16.msra.mxu1 %v3729_v59  ;;  %v1652_v38 = vadd.bf16 %v4321_v27, %v1598_v6  ;;  %v3743_v53 = vld [vmem:[#allocation9 + $0x3f4] ss:$8 sps:$4 sm:$0xff]   ;;  %v3746_v7 = vld [vmem:[#allocation9 + $0x3e4] ss:$8 sps:$4 sm:$0xff]  }
 0x260   :  { %v1553_v42 = vpop.f32.mrf.mxu0  ;;  %2512 = vmatprep.subr.bf16.mxu1 %v3734_v3 }
 0x261   :  { %v1653_v20 = vadd.bf16 %v4324_v31, %v1599_v9  ;;  %v1668_v30 = vmax.bf16 %v3998_v0, %v1652_v38 }
 0x262   :  { %v1555_v17 = vpop.f32.mrf.mxu0 }
 0x263   :  { %2513 = vmatpush1.bf16.msra.mxu1 %v3732_v14  ;;  %v1669_v22 = vmax.bf16 %v3998_v0, %v1653_v20 }
 0x264   :  { %v1557_v50 = vpop.f32.mrf.mxu0  ;;  %2514 = vmatprep.subr.bf16.mxu1 %v3737_v15 }
 0x265   :  { %v1600_v61 = vpack.c.bf16 %v1557_v50, %v1553_v42  ;;  %1932 = vmatprep.mubr.bf16.mxu1 %v1669_v22  ;;  %v3744_v42 = vld [vmem:[#allocation9 + $0x3e0] ss:$8 sps:$4 sm:$0xff]  }
 0x266   :  { %v1559_v36 = vpop.f32.mrf.mxu0  ;;  %1933 = vmatmul.mubr.bf16.gmra.mxu1 %v1668_v30  ;;  %v3747_v30 = vld [vmem:[#allocation9 + $0x3d0] ss:$8 sps:$4 sm:$0xff]  }
 0x267   :  { %v1601_v37 = vpack.c.bf16 %v1559_v36, %v1555_v17  ;;  %2515 = vmatpush1.bf16.msra.mxu1 %v3735_v24  ;;  %v1654_v45 = vadd.bf16 %v4321_v27, %v1600_v61  ;;  %v3749_v17 = vld [vmem:[#allocation9 + $0x3d4] ss:$8 sps:$4 sm:$0xff]   ;;  %v3752_v36 = vld [vmem:[#allocation9 + $0x3c4] ss:$8 sps:$4 sm:$0xff]  }
 0x268   :  { %v1563_v52 = vpop.f32.mrf.mxu0  ;;  %2516 = vmatprep.subr.bf16.mxu1 %v3740_v12 }
 0x269   :  { %v1655_v56 = vadd.bf16 %v4324_v31, %v1601_v37  ;;  %v1670_v6 = vmax.bf16 %v3998_v0, %v1654_v45  ;;  %v3443_v45 = vld.sshfl [vmem:[#allocation8 + $0x6] sm:$0x11 pattern:$0x75316420] }
 0x26a   :  { %v1565_v59 = vpop.f32.mrf.mxu0 }
 0x26b   :  { %2517 = vmatpush1.bf16.msra.mxu1 %v3738_v41  ;;  %v1671_v60 = vmax.bf16 %v3998_v0, %v1655_v56 }
 0x26c   :  { %v1567_v3 = vpop.f32.mrf.mxu0  ;;  %2518 = vmatprep.subr.bf16.mxu1 %v3743_v53  ;;  %v3750_v53 = vld [vmem:[#allocation9 + $0x3c0] ss:$8 sps:$4 sm:$0xff]  }
 0x26d   :  { %v1602_v9 = vpack.c.bf16 %v1567_v3, %v1563_v52  ;;  %1942 = vmatprep.mubr.bf16.mxu1 %v1671_v60  ;;  %v3755_v60 = vld [vmem:[#allocation9 + $0x3b4] ss:$8 sps:$4 sm:$0xff]   ;;  %v2249_v3 = vcombine.high %v3443_v45, %v3443_v45 }
 0x26e   :  { %v1569_v14 = vpop.f32.mrf.mxu0  ;;  %1943 = vmatmul.mubr.bf16.gmra.mxu1 %v1670_v6 }
 0x26f   :  { %v1603_v38 = vpack.c.bf16 %v1569_v14, %v1565_v59  ;;  %2519 = vmatpush2.bf16.msra.mxu1 %v3741_v1  ;;  %v1656_v15 = vadd.bf16 %v4321_v27, %v1602_v9  ;;  %v3753_v9 = vld [vmem:[#allocation9 + $0x3b0] ss:$8 sps:$4 sm:$0xff]  }
 0x270   :  { %v1573_v20 = vpop.f32.mrf.mxu0  ;;  %2520 = vmatprep.subr.bf16.mxu1 %v3746_v7 }
 0x271   :  { %v1657_v22 = vadd.bf16 %v4324_v31, %v1603_v38  ;;  %v1672_v61 = vmax.bf16 %v3998_v0, %v1656_v15  ;;  %v2256_v15 = vrot.slane %v3443_v45, %v4122_v23 }
 0x272   :  { %v1575_v24 = vpop.f32.mrf.mxu0 }
 0x273   :  { %2521 = vmatpush2.bf16.msra.mxu1 %v3744_v42  ;;  %v1673_v50 = vmax.bf16 %v3998_v0, %v1657_v22  ;;  %v3758_v42 = vld [vmem:[#allocation9 + $0x3a4] ss:$8 sps:$4 sm:$0xff]  }
 0x274   :  { %v1577_v12 = vpop.f32.mrf.mxu0  ;;  %2522 = vmatprep.subr.bf16.mxu1 %v3749_v17  ;;  %v2263_v17 = vrot.slane %v2249_v3, %v4122_v23 }
 0x275   :  { %v1604_v37 = vpack.c.bf16 %v1577_v12, %v1573_v20  ;;  %1952 = vmatprep.mubr.bf16.mxu1 %v1673_v50  ;;  %v3756_v50 = vld [vmem:[#allocation9 + $0x3a0] ss:$8 sps:$4 sm:$0xff]  }
 0x276   :  { %v1579_v41 = vpop.f32.mrf.mxu0  ;;  %1953 = vmatmul.mubr.bf16.gmra.mxu1 %v1672_v61  ;;  %v2265_v61 = vpack.i.b16 %v2256_v15, %v2256_v15 }
 0x277   :  { %v1605_v52 = vpack.c.bf16 %v1579_v41, %v1575_v24  ;;  %2523 = vmatpush2.bf16.msra.mxu1 %v3747_v30  ;;  %v1658_v56 = vadd.bf16 %v4321_v27, %v1604_v37  ;;  %v2272_v41 = vpack.i.b16 %v2263_v17, %v2263_v17 }
 0x278   :  { %v1583_v59 = vpop.f32.mrf.mxu0  ;;  %2524 = vmatprep.subr.bf16.mxu1 %v3752_v36  ;;  %v3761_v36 = vld [vmem:[#allocation9 + $0x394] ss:$8 sps:$4 sm:$0xff]  }
 0x279   :  { %v1659_v1 = vadd.bf16 %v4324_v31, %v1605_v52  ;;  %v1674_v38 = vmax.bf16 %v3998_v0, %v1658_v56  ;;  %v4360_v56 = vrot.slane %v2265_v61, %v4129_v32 }
 0x27a   :  { %v1585_v6 = vpop.f32.mrf.mxu0 }
 0x27b   :  { %2525 = vmatpush2.bf16.msra.mxu1 %v3750_v53  ;;  %v1675_v7 = vmax.bf16 %v3998_v0, %v1659_v1  ;;  %v3759_v53 = vld [vmem:[#allocation9 + $0x390] ss:$8 sps:$4 sm:$0xff]   ;;  %v4364_v1 = vrot.slane %v2272_v41, %v4129_v32 }
 0x27c   :  { %v1587_v14 = vpop.f32.mrf.mxu0  ;;  %2526 = vmatprep.subr.bf16.mxu1 %v3755_v60 }
 0x27d   :  { %v1606_v20 = vpack.c.bf16 %v1587_v14, %v1583_v59  ;;  %1962 = vmatprep.mubr.bf16.mxu1 %v1675_v7 }
 0x27e   :  { %v1589_v22 = vpop.f32.mrf.mxu0  ;;  %1963 = vmatmul.mubr.bf16.gmra.mxu1 %v1674_v38 }
 0x27f   :  { %v1607_v24 = vpack.c.bf16 %v1589_v22, %v1585_v6  ;;  %2527 = vmatpush2.bf16.msra.mxu1 %v3753_v9  ;;  %v1660_v30 = vadd.bf16 %v4321_v27, %v1606_v20  ;;  %v3764_v27 = vld [vmem:[#allocation9 + $0x384] ss:$8 sps:$4 sm:$0xff]   ;;  %v3762_v6 = vld [vmem:[#allocation9 + $0x380] ss:$8 sps:$4 sm:$0xff]  }
 0x280   :  { %v2145_v12 = vpop.f32.mrf.mxu0  ;;  %2528 = vmatprep.subr.bf16.mxu1 %v3758_v42 }
 0x281   :  { %v1661_v37 = vadd.bf16 %v4324_v31, %v1607_v24  ;;  %v1676_v59 = vmax.bf16 %v3998_v0, %v1660_v30 }
 0x282   :  { %v2147_v52 = vpop.f32.mrf.mxu0 }
 0x283   :  { %2529 = vmatpush2.bf16.msra.mxu1 %v3756_v50  ;;  %v1677_v45 = vmax.bf16 %v3998_v0, %v1661_v37 }
 0x284   :  { %v2149_v23 = vpop.f32.mrf.mxu0  ;;  %2530 = vmatprep.subr.bf16.mxu1 %v3761_v36 }
 0x285   :  { %v2224_v60 = vpack.c.bf16 %v2149_v23, %v2145_v12  ;;  %1972 = vmatprep.mubr.bf16.mxu1 %v1677_v45 }
 0x286   :  { %1973 = vmatmul.mubr.bf16.gmra.mxu1 %v1676_v59  ;;  %v2151_v31 = vpop.f32.mrf.mxu0 }
 0x287   :  { %v2225_v3 = vpack.c.bf16 %v2151_v31, %v2147_v52  ;;  %2531 = vmatpush2.bf16.msra.mxu1 %v3759_v53  ;;  %v2278_v7 = vadd.bf16 %v4360_v56, %v2224_v60 }
 0x288   :  { %v2155_v9 = vpop.f32.mrf.mxu0  ;;  %2532 = vmatprep.subr.bf16.mxu1 %v3764_v27 }
 0x289   :  { %v2279_v14 = vadd.bf16 %v4364_v1, %v2225_v3  ;;  %v2294_v15 = vmax.bf16 %v3998_v0, %v2278_v7 }
 0x28a   :  { %v2157_v38 = vpop.f32.mrf.mxu0 }
 0x28b   :  { %2533 = vmatpush2.bf16.msra.mxu1 %v3762_v6  ;;  %v2295_v42 = vmax.bf16 %v3998_v0, %v2279_v14 }
 0x28c   :  { %v2159_v20 = vpop.f32.mrf.mxu0 }
 0x28d   :  { %v2226_v17 = vpack.c.bf16 %v2159_v20, %v2155_v9  ;;  %2534 = vmatprep.mubr.bf16.mxu1 %v2295_v42 }
 0x28e   :  { %v2161_v22 = vpop.f32.mrf.mxu0  ;;  %2535 = vmatmul.mubr.bf16.vlgmr.msra.gmra.mxu1 %v2294_v15 }
 0x28f   :  { %v2227_v24 = vpack.c.bf16 %v2161_v22, %v2157_v38  ;;  %v2280_v50 = vadd.bf16 %v4360_v56, %v2226_v17 }
 0x290   :  { %v2165_v30 = vpop.f32.mrf.mxu0 }
 0x291   :  { %v2281_v12 = vadd.bf16 %v4364_v1, %v2227_v24  ;;  %v2296_v41 = vmax.bf16 %v3998_v0, %v2280_v50 }
 0x292   :  { %v2167_v61 = vpop.f32.mrf.mxu0 }
 0x293   :  { %v2297_v36 = vmax.bf16 %v3998_v0, %v2281_v12 }
 0x294   :  { %v2169_v37 = vpop.f32.mrf.mxu0 }
 0x295   :  { %v2228_v52 = vpack.c.bf16 %v2169_v37, %v2165_v30  ;;  %2544 = vmatprep.mubr.bf16.mxu1 %v2297_v36 }
 0x296   :  { %v2171_v45 = vpop.f32.mrf.mxu0  ;;  %2545 = vmatmul.mubr.bf16.gmra.mxu1 %v2296_v41 }
 0x297   :  { %v2229_v53 = vpack.c.bf16 %v2171_v45, %v2167_v61  ;;  %v2282_v23 = vadd.bf16 %v4360_v56, %v2228_v52 }
 0x298   :  { %v2175_v59 = vpop.f32.mrf.mxu0 }
 0x299   :  { %v2283_v27 = vadd.bf16 %v4364_v1, %v2229_v53  ;;  %v2298_v6 = vmax.bf16 %v3998_v0, %v2282_v23 }
 0x29a   :  { %v2177_v60 = vpop.f32.mrf.mxu0 }
 0x29b   :  { %v2299_v31 = vmax.bf16 %v3998_v0, %v2283_v27 }
 0x29c   :  { %v2179_v3 = vpop.f32.mrf.mxu0 }
 0x29d   :  { %v2230_v7 = vpack.c.bf16 %v2179_v3, %v2175_v59  ;;  %2554 = vmatprep.mubr.bf16.mxu1 %v2299_v31 }
 0x29e   :  { %v2181_v9 = vpop.f32.mrf.mxu0  ;;  %2555 = vmatmul.mubr.bf16.gmra.mxu1 %v2298_v6 }
 0x29f   :  { %v2231_v14 = vpack.c.bf16 %v2181_v9, %v2177_v60  ;;  %v2284_v38 = vadd.bf16 %v4360_v56, %v2230_v7 }
 0x2a0   :  { %v2185_v42 = vpop.f32.mrf.mxu0 }
 0x2a1   :  { %v2285_v15 = vadd.bf16 %v4364_v1, %v2231_v14  ;;  %v2300_v24 = vmax.bf16 %v3998_v0, %v2284_v38 }
 0x2a2   :  { %v2187_v20 = vpop.f32.mrf.mxu0 }
 0x2a3   :  { %v2301_v17 = vmax.bf16 %v3998_v0, %v2285_v15 }
 0x2a4   :  { %v2189_v22 = vpop.f32.mrf.mxu0 }
 0x2a5   :  { %v2232_v50 = vpack.c.bf16 %v2189_v22, %v2185_v42  ;;  %2564 = vmatprep.mubr.bf16.mxu1 %v2301_v17 }
 0x2a6   :  { %v2191_v30 = vpop.f32.mrf.mxu0  ;;  %2565 = vmatmul.mubr.bf16.gmra.mxu1 %v2300_v24 }
 0x2a7   :  { %v2233_v12 = vpack.c.bf16 %v2191_v30, %v2187_v20  ;;  %v2286_v61 = vadd.bf16 %v4360_v56, %v2232_v50 }
 0x2a8   :  { %v2195_v36 = vpop.f32.mrf.mxu0 }
 0x2a9   :  { %v2287_v37 = vadd.bf16 %v4364_v1, %v2233_v12  ;;  %v2302_v45 = vmax.bf16 %v3998_v0, %v2286_v61 }
 0x2aa   :  { %v2197_v41 = vpop.f32.mrf.mxu0 }
 0x2ab   :  { %v2303_v52 = vmax.bf16 %v3998_v0, %v2287_v37 }
 0x2ac   :  { %v2199_v53 = vpop.f32.mrf.mxu0 }
 0x2ad   :  { %v2234_v23 = vpack.c.bf16 %v2199_v53, %v2195_v36  ;;  %2574 = vmatprep.mubr.bf16.mxu1 %v2303_v52 }
 0x2ae   :  { %v2201_v59 = vpop.f32.mrf.mxu0  ;;  %2575 = vmatmul.mubr.bf16.gmra.mxu1 %v2302_v45 }
 0x2af   :  { %v2235_v27 = vpack.c.bf16 %v2201_v59, %v2197_v41  ;;  %v2288_v60 = vadd.bf16 %v4360_v56, %v2234_v23  ;;  %v3767_v23 = vld [vmem:[#allocation11 + $0x74] ss:$8 sps:$4 sm:$0xff]   ;;  %v3765_v59 = vld [vmem:[#allocation11 + $0x70] ss:$8 sps:$4 sm:$0xff]  }
 0x2b0   :  { %v2205_v31 = vpop.f32.mrf.mxu0  ;;  %3033 = vmatprep.subr.bf16.mxu0 %v3767_v23 }
 0x2b1   :  { %v2289_v3 = vadd.bf16 %v4364_v1, %v2235_v27  ;;  %v2304_v9 = vmax.bf16 %v3998_v0, %v2288_v60  ;;  %3034 = vmatpush1.bf16.msra.mxu0 %v3765_v59  ;;  %v3770_v27 = vld [vmem:[#allocation11 + $0x64] ss:$8 sps:$4 sm:$0xff]   ;;  %v3768_v60 = vld [vmem:[#allocation11 + $0x60] ss:$8 sps:$4 sm:$0xff]  }
 0x2b2   :  { %v2207_v6 = vpop.f32.mrf.mxu0  ;;  %3035 = vmatprep.subr.bf16.mxu0 %v3770_v27  ;;  %v4000_v27 = vmov -inf  }
 0x2b3   :  { %v2305_v7 = vmax.bf16 %v3998_v0, %v2289_v3  ;;  %v3771_v3 = vld [vmem:[#allocation11 + $0x50] ss:$8 sps:$4 sm:$0xff]   ;;  %118 = vst [vmem:[#allocation2] sm:$0xf] %v4000_v27 }
 0x2b4   :  { %v2209_v14 = vpop.f32.mrf.mxu0 }
 0x2b5   :  { %v2236_v38 = vpack.c.bf16 %v2209_v14, %v2205_v31  ;;  %2584 = vmatprep.mubr.bf16.mxu1 %v2305_v7  ;;  %3036 = vmatpush1.bf16.msra.mxu0 %v3768_v60  ;;  %v3773_v31 = vld [vmem:[#allocation11 + $0x54] ss:$8 sps:$4 sm:$0xff]   ;;  %v4398_v7 = vpop.f32.mrf.mxu1  ;;  %v3792_v60 = vld [vmem:[#allocation11 + $0xe0] ss:$8 sps:$4 sm:$0xff]  }
 0x2b6   :  { %v2211_v42 = vpop.f32.mrf.mxu0  ;;  %2585 = vmatmul.mubr.bf16.gmra.mxu1 %v2304_v9  ;;  %3037 = vmatprep.subr.bf16.mxu0 %v3773_v31  ;;  %v3782_v9 = vld [vmem:[#allocation11 + $0x24] ss:$8 sps:$4 sm:$0xff]  }
 0x2b7   :  { %v2237_v15 = vpack.c.bf16 %v2211_v42, %v2207_v6  ;;  %v2290_v20 = vadd.bf16 %v4360_v56, %v2236_v38  ;;  %v3779_v6 = vld [vmem:[#allocation11 + $0x34] ss:$8 sps:$4 sm:$0xff]   ;;  %v3780_v38 = vld [vmem:[#allocation11 + $0x20] ss:$8 sps:$4 sm:$0xff]  }
 0x2b8   :  { %v2215_v17 = vpop.f32.mrf.mxu0 }
 0x2b9   :  { %v2291_v22 = vadd.bf16 %v4364_v1, %v2237_v15  ;;  %v2306_v30 = vmax.bf16 %v3998_v0, %v2290_v20  ;;  %3038 = vmatpush1.bf16.msra.mxu0 %v3771_v3  ;;  %v3797_v3 = vld [vmem:[#allocation11 + $0xd4] ss:$8 sps:$4 sm:$0xff]  }
 0x2ba   :  { %v2217_v24 = vpop.f32.mrf.mxu0 }
 0x2bb   :  { %v2307_v50 = vmax.bf16 %v3998_v0, %v2291_v22 }
 0x2bc   :  { %v2219_v12 = vpop.f32.mrf.mxu0 }
 0x2bd   :  { %v2238_v61 = vpack.c.bf16 %v2219_v12, %v2215_v17  ;;  %2594 = vmatprep.mubr.bf16.mxu1 %v2307_v50  ;;  %v3785_v17 = vld [vmem:[#allocation11 + $0x14] ss:$8 sps:$4 sm:$0xff]  }
 0x2be   :  { %v2221_v36 = vpop.f32.mrf.mxu0  ;;  %2595 = vmatmul.mubr.bf16.gmra.mxu1 %v2306_v30 }
 0x2bf   :  { %v2239_v37 = vpack.c.bf16 %v2221_v36, %v2217_v24  ;;  %v2292_v41 = vadd.bf16 %v4360_v56, %v2238_v61  ;;  %v3776_v56 = vld [vmem:[#allocation11 + $0x44] ss:$8 sps:$4 sm:$0xff]   ;;  %v3783_v24 = vld [vmem:[#allocation11 + $0x10] ss:$8 sps:$4 sm:$0xff]   ;;  %v3786_v36 = vld [vmem:[#allocation11] ss:$8 sps:$4 sm:$0xff]  }
 0x2c0   :  { %3039 = vmatprep.subr.bf16.mxu0 %v3776_v56 }
 0x2c1   :  { %v2293_v52 = vadd.bf16 %v4364_v1, %v2239_v37  ;;  %v2308_v53 = vmax.bf16 %v3998_v0, %v2292_v41  ;;  %v3774_v1 = vld [vmem:[#allocation11 + $0x40] ss:$8 sps:$4 sm:$0xff]  }
 0x2c2   :  { %3040 = vmatpush1.bf16.msra.mxu0 %v3774_v1  ;;  %v3795_v1 = vld [vmem:[#allocation11 + $0xd0] ss:$8 sps:$4 sm:$0xff]  }
 0x2c3   :  { %v2309_v45 = vmax.bf16 %v3998_v0, %v2293_v52  ;;  %v3777_v0 = vld [vmem:[#allocation11 + $0x30] ss:$8 sps:$4 sm:$0xff]   ;;  %3041 = vmatprep.subr.bf16.mxu0 %v3779_v6 }
 0x2c5   :  { %2604 = vmatprep.mubr.bf16.mxu1 %v2309_v45  ;;  %v3789_v45 = vld [vmem:[#allocation11 + $0xf0] ss:$8 sps:$4 sm:$0xff]  }
 0x2c6   :  { %2605 = vmatmul.mubr.bf16.gmra.mxu1 %v2308_v53  ;;  %3042 = vmatpush1.bf16.msra.mxu0 %v3777_v0 }
 0x2c7   :  { %3043 = vmatprep.subr.bf16.mxu0 %v3782_v9 }
 0x2ca   :  { %3044 = vmatpush1.bf16.msra.mxu0 %v3780_v38 }
 0x2cb   :  { %3045 = vmatprep.subr.bf16.mxu0 %v3785_v17 }
 0x2ce   :  { %3046 = vmatpush1.bf16.msra.mxu0 %v3783_v24 }
 0x30e   :  { %v1904_v14 = vpop.f32.mrf.mxu1 }
 0x30f   :  { %v4401_v42 = vadd.f32 %v1904_v14, %v4254_v25  ;;  %v3788_v25 = vld [vmem:[#allocation11 + $0x4] ss:$8 sps:$4 sm:$0xff]   ;;  %v3798_v14 = vld [vmem:[#allocation11 + $0xc0] ss:$8 sps:$4 sm:$0xff]  }
 0x310   :  { %v1906_v15 = vpop.f32.mrf.mxu1  ;;  %3047 = vmatprep.subr.bf16.mxu0 %v3788_v25  ;;  %v3806_v25 = vld [vmem:[#allocation11 + $0xa4] ss:$8 sps:$4 sm:$0xff]  }
 0x311   :  { %v4404_v20 = vadd.f32 %v1906_v15, %v4256_v26  ;;  %3048 = vmatpush1.bf16.msra.mxu0 %v3786_v36  ;;  %v3809_v36 = vld [vmem:[#allocation11 + $0x94] ss:$8 sps:$4 sm:$0xff]  }
 0x312   :  { %v1908_v22 = vpop.f32.mrf.mxu1 }
 0x313   :  { %v4407_v50 = vadd.f32 %v1908_v22, %v4258_v29  ;;  %v3791_v29 = vld [vmem:[#allocation11 + $0xf4] ss:$8 sps:$4 sm:$0xff]   ;;  %v3801_v22 = vld [vmem:[#allocation11 + $0xb0] ss:$8 sps:$4 sm:$0xff]  }
 0x314   :  { %v1910_v30 = vpop.f32.mrf.mxu1  ;;  %3049 = vmatprep.subr.bf16.mxu0 %v3791_v29  ;;  %v3807_v29 = vld [vmem:[#allocation11 + $0x90] ss:$8 sps:$4 sm:$0xff]  }
 0x315   :  { %v4410_v12 = vadd.f32 %v1910_v30, %v4260_v33  ;;  %3050 = vmatpush2.bf16.msra.mxu0 %v3789_v45 }
 0x316   :  { %v1914_v61 = vpop.f32.mrf.mxu1 }
 0x317   :  { %v4413_v37 = vadd.f32 %v1914_v61, %v4262_v13  ;;  %v3794_v13 = vld [vmem:[#allocation11 + $0xe4] ss:$8 sps:$4 sm:$0xff]  }
 0x318   :  { %v1916_v26 = vpop.f32.mrf.mxu1  ;;  %3051 = vmatprep.subr.bf16.mxu0 %v3794_v13  ;;  %v3810_v13 = vld [vmem:[#allocation11 + $0x80] ss:$8 sps:$4 sm:$0xff]  }
 0x319   :  { %v4416_v41 = vadd.f32 %v1916_v26, %v4264_v35  ;;  %3052 = vmatpush2.bf16.msra.mxu0 %v3792_v60 }
 0x31a   :  { %v1918_v52 = vpop.f32.mrf.mxu1  ;;  %3053 = vmatprep.subr.bf16.mxu0 %v3797_v3  ;;  %v3813_v3 = vld [vmem:[#allocation12 + $0x78] sm:$0xff]  }
 0x31b   :  { %v4419_v53 = vadd.f32 %v1918_v52, %v4266_v39  ;;  %v3812_v52 = vld [vmem:[#allocation11 + $0x84] ss:$8 sps:$4 sm:$0xff]   ;;  %3526 = vmatprep.subr.bf16.mxu1 %v3813_v3 }
 0x31c   :  { %v1920_v33 = vpop.f32.mrf.mxu1 }
 0x31d   :  { %v4422_v23 = vadd.f32 %v1920_v33, %v4268_v44  ;;  %3054 = vmatpush2.bf16.msra.mxu0 %v3795_v1 }
 0x31e   :  { %v1924_v59 = vpop.f32.mrf.mxu1 }
 0x31f   :  { %v4425_v35 = vadd.f32 %v1924_v59, %v4270_v51  ;;  %v3800_v51 = vld [vmem:[#allocation11 + $0xc4] ss:$8 sps:$4 sm:$0xff]  }
 0x320   :  { %v1926_v31 = vpop.f32.mrf.mxu1  ;;  %3055 = vmatprep.subr.bf16.mxu0 %v3800_v51 }
 0x321   :  { %v4428_v39 = vadd.f32 %v1926_v31, %v4272_v54  ;;  %3056 = vmatpush2.bf16.msra.mxu0 %v3798_v14 }
 0x322   :  { %v1928_v56 = vpop.f32.mrf.mxu1 }
 0x323   :  { %v4431_v44 = vadd.f32 %v1928_v56, %v4274_v58  ;;  %v3803_v58 = vld [vmem:[#allocation11 + $0xb4] ss:$8 sps:$4 sm:$0xff]  }
 0x324   :  { %v1930_v6 = vpop.f32.mrf.mxu1  ;;  %3057 = vmatprep.subr.bf16.mxu0 %v3803_v58  ;;  %v3815_v56 = vld [vmem:[#allocation12 + $0x70] sm:$0xff]  }
 0x325   :  { %v4434_v0 = vadd.f32 %v1930_v6, %v4276_v62  ;;  %3058 = vmatpush2.bf16.msra.mxu0 %v3801_v22 }
 0x326   :  { %v1934_v9 = vpop.f32.mrf.mxu1  ;;  %3059 = vmatprep.subr.bf16.mxu0 %v3806_v25  ;;  %v3821_v25 = vld [vmem:[#allocation12 + $0x58] sm:$0xff]  }
 0x327   :  { %v4437_v38 = vadd.f32 %v1934_v9, %v4278_v2  ;;  %v3804_v2 = vld [vmem:[#allocation11 + $0xa0] ss:$8 sps:$4 sm:$0xff]  }
 0x328   :  { %v1936_v54 = vpop.f32.mrf.mxu1  ;;  %v3817_v9 = vld [vmem:[#allocation12 + $0x68] sm:$0xff]  }
 0x329   :  { %v4440_v15 = vadd.f32 %v1936_v54, %v4280_v5  ;;  %3060 = vmatpush2.bf16.msra.mxu0 %v3804_v2  ;;  %v3820_v2 = vld [vmem:[#allocation12 + $0x20] sm:$0xff]  }
 0x32a   :  { %v1938_v17 = vpop.f32.mrf.mxu1  ;;  %3061 = vmatprep.subr.bf16.mxu0 %v3809_v36 }
 0x32b   :  { %v4443_v24 = vadd.f32 %v1938_v17, %v4282_v8  ;;  %v3819_v17 = vld [vmem:[#allocation12 + $0x60] sm:$0xff]  }
 0x32c   :  { %v1940_v62 = vpop.f32.mrf.mxu1 }
 0x32d   :  { %v4446_v30 = vadd.f32 %v1940_v62, %v4284_v10  ;;  %3062 = vmatpush2.bf16.msra.mxu0 %v3807_v29  ;;  %v3823_v29 = vld [vmem:[#allocation12 + $0x50] sm:$0xff]  }
 0x32e   :  { %v1944_v61 = vpop.f32.mrf.mxu1  ;;  %3063 = vmatprep.subr.bf16.mxu0 %v3812_v52  ;;  %v2647_v52 = vld [vmem:[%s4595_s4] sm:$0x3] }
 0x32f   :  { %v4449_v26 = vadd.f32 %v1944_v61, %v4286_v57 }
 0x330   :  { %v1946_v5 = vpop.f32.mrf.mxu1 }
 0x331   :  { %v4452_v8 = vadd.f32 %v1946_v5, %v4288_v46  ;;  %3064 = vmatpush2.bf16.msra.mxu0 %v3810_v13  ;;  %v3822_v5 = vld [vmem:[#allocation12 + $0x18] sm:$0xff]   ;;  %v3825_v13 = vld [vmem:[#allocation12 + $0x48] sm:$0xff]  }
 0x332   :  { %v1948_v45 = vpop.f32.mrf.mxu1 }
 0x333   :  { %v4455_v10 = vadd.f32 %v1948_v45, %v4290_v18  ;;  %v3814_v18 = vld [vmem:[#allocation12 + $0x38] sm:$0xff]   ;;  %v2655_v45 = vsub.s32 1, %v4119_v19 }
 0x334   :  { %v1950_v33 = vpop.f32.mrf.mxu1  ;;  %3527 = vmatpush3.bf16.msra.mxu1 %v3814_v18  ;;  %v3826_v18 = vld [vmem:[#allocation12 + $0x8] sm:$0xff]  }
 0x335   :  { %v4458_v59 = vadd.f32 %v1950_v33, %v4292_v21  ;;  %3528 = vmatprep.subr.bf16.mxu1 %v3815_v56  ;;  %v3824_v33 = vld [vmem:[#allocation12 + $0x10] sm:$0xff]  }
 0x336   :  { %v1954_v57 = vpop.f32.mrf.mxu1 }
 0x337   :  { %v4461_v27 = vadd.f32 %v1954_v57, %v4294_v49  ;;  %v3816_v49 = vld [vmem:[#allocation12 + $0x30] sm:$0xff]  }
 0x338   :  { %v1956_v60 = vpop.f32.mrf.mxu1  ;;  %3529 = vmatpush3.bf16.msra.mxu1 %v3816_v49 }
 0x339   :  { %v4464_v46 = vadd.f32 %v1956_v60, %v4296_v28  ;;  %3530 = vmatprep.subr.bf16.mxu1 %v3817_v9  ;;  %v4501_v60 = vrot.slane %v2647_v52, %v4129_v32 }
 0x33a   :  { %v1958_v31 = vpop.f32.mrf.mxu1 }
 0x33b   :  { %v4467_v1 = vadd.f32 %v1958_v31, %v4298_v11  ;;  %v3818_v11 = vld [vmem:[#allocation12 + $0x28] sm:$0xff]  }
 0x33c   :  { %v1960_v6 = vpop.f32.mrf.mxu1  ;;  %3531 = vmatpush3.bf16.msra.mxu1 %v3818_v11 }
 0x33d   :  { %v4470_v21 = vadd.f32 %v1960_v6, %v4300_v34  ;;  %3532 = vmatprep.subr.bf16.mxu1 %v3819_v17 }
 0x33e   :  { %v1964_v51 = vpop.f32.mrf.mxu1 }
 0x33f   :  { %v4473_v28 = vadd.f32 %v1964_v51, %v4302_v40 }
 0x340   :  { %v1966_v14 = vpop.f32.mrf.mxu1  ;;  %3533 = vmatpush3.bf16.msra.mxu1 %v3820_v2 }
 0x341   :  { %v4476_v54 = vadd.f32 %v1966_v14, %v4304_v47  ;;  %3534 = vmatprep.subr.bf16.mxu1 %v3821_v25 }
 0x342   :  { %v1968_v58 = vpop.f32.mrf.mxu1 }
 0x343   :  { %v4479_v34 = vadd.f32 %v1968_v58, %v4306_v55 }
 0x344   :  { %v1970_v22 = vpop.f32.mrf.mxu1  ;;  %3535 = vmatpush3.bf16.msra.mxu1 %v3822_v5 }
 0x345   :  { %v4482_v62 = vadd.f32 %v1970_v22, %v4308_v63  ;;  %3536 = vmatprep.subr.bf16.mxu1 %v3823_v29 }
 0x346   :  { %v1974_v40 = vpop.f32.mrf.mxu1 }
 0x347   :  { %v4485_v47 = vadd.f32 %v1974_v40, %v4310_v4 }
 0x348   :  { %v1976_v61 = vpop.f32.mrf.mxu1  ;;  %3537 = vmatpush3.bf16.msra.mxu1 %v3824_v33 }
 0x349   :  { %v4488_v36 = vadd.f32 %v1976_v61, %v4312_v48  ;;  %3538 = vmatprep.subr.bf16.mxu1 %v3825_v13 }
 0x34a   :  { %v1978_v55 = vpop.f32.mrf.mxu1 }
 0x34b   :  { %v4491_v63 = vadd.f32 %v1978_v55, %v4315_v43  ;;  %v4505_v43 = vrot.slane %v2647_v52, %v2655_v45 }
 0x34c   :  { %v4497_v4 = vpop.f32.mrf.mxu1  ;;  %3539 = vmatpush3.bf16.msra.mxu1 %v3826_v18 }
 0x34e   :  { %v2536_v48 = vpop.f32.mrf.mxu1 }
 0x34f   :  { %v2615_v57 = vadd.f32 %v2536_v48, %v4401_v42 }
 0x350   :  { %v2538_v31 = vpop.f32.mrf.mxu1 }
 0x351   :  { %v2616_v3 = vadd.f32 %v2538_v31, %v4404_v20  ;;  %v2659_v6 = vadd.f32 %v4501_v60, %v2615_v57 }
 0x352   :  { %v2540_v56 = vpop.f32.mrf.mxu1 }
 0x353   :  { %v2617_v49 = vadd.f32 %v2540_v56, %v4407_v50  ;;  %v2660_v42 = vadd.f32 %v4505_v43, %v2616_v3  ;;  %v2691_v58 = vmax.f32 %v2659_v6, 0.0 }
 0x354   :  { %v2542_v51 = vpop.f32.mrf.mxu1 }
 0x355   :  { %v2661_v9 = vadd.f32 %v4501_v60, %v2617_v49  ;;  %v2618_v14 = vadd.f32 %v2542_v51, %v4410_v12  ;;  %v2692_v2 = vmax.f32 %v2660_v42, 0.0 }
 0x356   :  { %v2546_v11 = vpop.f32.mrf.mxu1 }
 0x357   :  { %v2693_v17 = vmax.f32 %v2661_v9, 0.0  ;;  %v2662_v20 = vadd.f32 %v4505_v43, %v2618_v14  ;;  %v2619_v22 = vadd.f32 %v2546_v11, %v4413_v37 }
 0x358   :  { %v2548_v40 = vpop.f32.mrf.mxu1 }
 0x359   :  { %v2724_v25 = vmax.f32 %v2691_v58, %v2693_v17  ;;  %v2694_v61 = vmax.f32 %v2662_v20, 0.0  ;;  %v2663_v50 = vadd.f32 %v4501_v60, %v2619_v22  ;;  %v2620_v5 = vadd.f32 %v2548_v40, %v4416_v41 }
 0x35a   :  { %v2550_v55 = vpop.f32.mrf.mxu1 }
 0x35b   :  { %v2737_v29 = vmax.f32 %v2692_v2, %v2694_v61  ;;  %v2695_v52 = vmax.f32 %v2663_v50, 0.0  ;;  %v2664_v12 = vadd.f32 %v4505_v43, %v2620_v5  ;;  %v2621_v33 = vadd.f32 %v2550_v55, %v4419_v53 }
 0x35c   :  { %v2552_v48 = vpop.f32.mrf.mxu1 }
 0x35d   :  { %v2725_v13 = vmax.f32 %v2724_v25, %v2695_v52  ;;  %v2696_v57 = vmax.f32 %v2664_v12, 0.0  ;;  %v2665_v37 = vadd.f32 %v4501_v60, %v2621_v33  ;;  %v2622_v31 = vadd.f32 %v2552_v48, %v4422_v23 }
 0x35e   :  { %v2556_v3 = vpop.f32.mrf.mxu1 }
 0x35f   :  { %v2738_v18 = vmax.f32 %v2737_v29, %v2696_v57  ;;  %v2697_v56 = vmax.f32 %v2665_v37, 0.0  ;;  %v2666_v6 = vadd.f32 %v4505_v43, %v2622_v31  ;;  %v2623_v41 = vadd.f32 %v2556_v3, %v4425_v35 }
 0x360   :  { %v2558_v49 = vpop.f32.mrf.mxu1 }
 0x361   :  { %v2726_v42 = vmax.f32 %v2725_v13, %v2697_v56  ;;  %v2698_v51 = vmax.f32 %v2666_v6, 0.0  ;;  %v2667_v9 = vadd.f32 %v4501_v60, %v2623_v41  ;;  %v2624_v53 = vadd.f32 %v2558_v49, %v4428_v39 }
 0x362   :  { %v2560_v14 = vpop.f32.mrf.mxu1 }
 0x363   :  { %v2739_v11 = vmax.f32 %v2738_v18, %v2698_v51  ;;  %v2699_v58 = vmax.f32 %v2667_v9, 0.0  ;;  %v2668_v17 = vadd.f32 %v4505_v43, %v2624_v53  ;;  %v2625_v23 = vadd.f32 %v2560_v14, %v4431_v44 }
 0x364   :  { %v2562_v20 = vpop.f32.mrf.mxu1 }
 0x365   :  { %v2727_v22 = vmax.f32 %v2726_v42, %v2699_v58  ;;  %v2700_v2 = vmax.f32 %v2668_v17, 0.0  ;;  %v2669_v40 = vadd.f32 %v4501_v60, %v2625_v23  ;;  %v2626_v35 = vadd.f32 %v2562_v20, %v4434_v0 }
 0x366   :  { %v2566_v25 = vpop.f32.mrf.mxu1 }
 0x367   :  { %v2740_v61 = vmax.f32 %v2739_v11, %v2700_v2  ;;  %v2701_v50 = vmax.f32 %v2669_v40, 0.0  ;;  %v2670_v5 = vadd.f32 %v4505_v43, %v2626_v35  ;;  %v2627_v39 = vadd.f32 %v2566_v25, %v4437_v38 }
 0x368   :  { %v2568_v55 = vpop.f32.mrf.mxu1 }
 0x369   :  { %v2728_v29 = vmax.f32 %v2727_v22, %v2701_v50  ;;  %v2702_v52 = vmax.f32 %v2670_v5, 0.0  ;;  %v2671_v12 = vadd.f32 %v4501_v60, %v2627_v39  ;;  %v2628_v44 = vadd.f32 %v2568_v55, %v4440_v15 }
 0x36a   :  { %v2570_v33 = vpop.f32.mrf.mxu1 }
 0x36b   :  { %v2741_v48 = vmax.f32 %v2740_v61, %v2702_v52  ;;  %v2703_v13 = vmax.f32 %v2671_v12, 0.0  ;;  %v2672_v57 = vadd.f32 %v4505_v43, %v2628_v44  ;;  %v2629_v0 = vadd.f32 %v2570_v33, %v4443_v24 }
 0x36c   :  { %v2572_v37 = vpop.f32.mrf.mxu1 }
 0x36d   :  { %v2729_v31 = vmax.f32 %v2728_v29, %v2703_v13  ;;  %v2704_v3 = vmax.f32 %v2672_v57, 0.0  ;;  %v2673_v18 = vadd.f32 %v4501_v60, %v2629_v0  ;;  %v2630_v38 = vadd.f32 %v2572_v37, %v4446_v30 }
 0x36e   :  { %v2576_v56 = vpop.f32.mrf.mxu1 }
 0x36f   :  { %v2742_v6 = vmax.f32 %v2741_v48, %v2704_v3  ;;  %v2705_v41 = vmax.f32 %v2673_v18, 0.0  ;;  %v2674_v49 = vadd.f32 %v4505_v43, %v2630_v38  ;;  %v2631_v15 = vadd.f32 %v2576_v56, %v4449_v26 }
 0x370   :  { %v2578_v42 = vpop.f32.mrf.mxu1 }
 0x371   :  { %v2730_v51 = vmax.f32 %v2729_v31, %v2705_v41  ;;  %v2706_v9 = vmax.f32 %v2674_v49, 0.0  ;;  %v2632_v53 = vadd.f32 %v2578_v42, %v4452_v8  ;;  %v2675_v58 = vadd.f32 %v4501_v60, %v2631_v15 }
 0x372   :  { %v2580_v24 = vpop.f32.mrf.mxu1 }
 0x373   :  { %v2731_v14 = vrot.slane %v2730_v51, 4  ;;  %v2743_v11 = vmax.f32 %v2742_v6, %v2706_v9  ;;  %v2676_v17 = vadd.f32 %v4505_v43, %v2632_v53  ;;  %v2633_v30 = vadd.f32 %v2580_v24, %v4455_v10 }
 0x374   :  { %v2582_v23 = vpop.f32.mrf.mxu1  ;;  %v2707_v50 = vmax.f32 %v2675_v58, 0.0 }
 0x375   :  { %v2732_v20 = vmax.f32 %v2730_v51, %v2731_v14  ;;  %v2744_v22 = vrot.slane %v2743_v11, 4  ;;  %v2634_v2 = vadd.f32 %v2582_v23, %v4458_v59  ;;  %v2677_v26 = vadd.f32 %v4501_v60, %v2633_v30 }
 0x376   :  { %v2586_v40 = vpop.f32.mrf.mxu1  ;;  %v2708_v5 = vmax.f32 %v2676_v17, 0.0 }
 0x377   :  { %v2733_v35 = vrot.slane %v2732_v20, 2  ;;  %v2745_v25 = vmax.f32 %v2743_v11, %v2744_v22  ;;  %v2678_v8 = vadd.f32 %v4505_v43, %v2634_v2  ;;  %v2635_v61 = vadd.f32 %v2586_v40, %v4461_v27 }
 0x378   :  { %v2709_v39 = vmax.f32 %v2677_v26, 0.0  ;;  %v2588_v55 = vpop.f32.mrf.mxu1 }
 0x379   :  { %v2734_v29 = vmax.f32 %v2732_v20, %v2733_v35  ;;  %v2746_v10 = vrot.slane %v2745_v25, 2  ;;  %v2710_v52 = vmax.f32 %v2678_v8, 0.0  ;;  %v2679_v12 = vadd.f32 %v4501_v60, %v2635_v61 }
 0x37a   :  { %v2750_v44 = vmax.f32 %v2707_v50, %v2709_v39  ;;  %v2636_v59 = vadd.f32 %v2588_v55, %v4464_v46  ;;  %v2590_v33 = vpop.f32.mrf.mxu1  ;;  %v1381_v61 = vadd.f32 %v4398_v7, %v4318_v16 }
 0x37b   :  { %v2735_v48 = vrot.slane %v2734_v29, 1  ;;  %v2747_v13 = vmax.f32 %v2745_v25, %v2746_v10  ;;  %v2763_v57 = vmax.f32 %v2708_v5, %v2710_v52  ;;  %v2711_v0 = vmax.f32 %v2679_v12, 0.0 }
 0x37c   :  { %v2680_v37 = vadd.f32 %v4505_v43, %v2636_v59  ;;  %v2637_v27 = vadd.f32 %v2590_v33, %v4467_v1  ;;  %v2592_v31 = vpop.f32.mrf.mxu1 }
 0x37d   :  { %v2748_v3 = vrot.slane %v2747_v13, 1  ;;  %v2751_v18 = vmax.f32 %v2750_v44, %v2711_v0  ;;  %v2638_v38 = vadd.f32 %v2592_v31, %v4470_v21  ;;  %v4553_v49 = vmax.f32 %v2734_v29, %v2735_v48 }
 0x37e   :  { %v2712_v56 = vmax.f32 %v2680_v37, 0.0  ;;  %v2681_v6 = vadd.f32 %v4501_v60, %v2637_v27  ;;  %v2596_v41 = vpop.f32.mrf.mxu1 }
 0x37f   :  { %v4555_v46 = vmax.f32 %v2747_v13, %v2748_v3  ;;  %v2682_v15 = vadd.f32 %v4505_v43, %v2638_v38  ;;  %v2639_v42 = vadd.f32 %v2596_v41, %v4473_v28 }
 0x380   :  { %v2764_v51 = vmax.f32 %v2763_v57, %v2712_v56  ;;  %v2713_v9 = vmax.f32 %v2681_v6, 0.0  ;;  %v2598_v1 = vpop.f32.mrf.mxu1  ;;  %v4001_v56 = vmov 1983009808  }
 0x381   :  { %v2780_v53 = vcombine.low %v4553_v49, %v4555_v46  ;;  %v2714_v24 = vmax.f32 %v2682_v15, 0.0  ;;  %v2683_v21 = vadd.f32 %v4501_v60, %v2639_v42  ;;  %v2640_v14 = vadd.f32 %v2598_v1, %v4476_v54 }
 0x382   :  { %v2752_v11 = vmax.f32 %v2751_v18, %v2713_v9  ;;  %v2600_v58 = vpop.f32.mrf.mxu1 }
 0x383   :  { %v2765_v17 = vmax.f32 %v2764_v51, %v2714_v24  ;;  %v2715_v30 = vmax.f32 %v2683_v21, 0.0  ;;  %v2684_v23 = vadd.f32 %v4505_v43, %v2640_v14  ;;  %v2641_v20 = vadd.f32 %v2600_v58, %v4479_v34 }
 0x384   :  { %v2602_v28 = vpop.f32.mrf.mxu1 }
 0x385   :  { %v2753_v22 = vmax.f32 %v2752_v11, %v2715_v30  ;;  %v2716_v2 = vmax.f32 %v2684_v23, 0.0  ;;  %v2642_v26 = vadd.f32 %v2602_v28, %v4482_v62  ;;  %v2685_v40 = vadd.f32 %v4501_v60, %v2641_v20  ;;  %v2723_v11 = vld [vmem:[#allocation2] sm:$0xf] }
 0x386   :  { %v2606_v35 = vpop.f32.mrf.mxu1  ;;  %v2014_v62 = vadd.f32 %v4497_v4, %v1381_v61 }
 0x387   :  { %v2766_v25 = vmax.f32 %v2765_v17, %v2716_v2  ;;  %v2686_v8 = vadd.f32 %v4505_v43, %v2642_v26  ;;  %v2643_v54 = vadd.f32 %v2606_v35, %v4485_v47  ;;  %v2717_v50 = vmax.f32 %v2685_v40, 0.0  ;;  %v3827_v26 = vld [vmem:[#allocation12 + $0x40] sm:$0xff]  }
 0x388   :  { %v2608_v5 = vpop.f32.mrf.mxu1  ;;  %v3828_v40 = vld [vmem:[#allocation12] sm:$0xff]   ;;  %3540 = vmatprep.subr.bf16.mxu1 %v3827_v26 }
 0x389   :  { %v2718_v39 = vmax.f32 %v2686_v8, 0.0  ;;  %v2687_v34 = vadd.f32 %v4501_v60, %v2643_v54  ;;  %v2644_v55 = vadd.f32 %v2608_v5, %v4488_v36  ;;  %v2754_v29 = vmax.f32 %v2753_v22, %v2717_v50  ;;  %3541 = vmatpush3.bf16.msra.mxu1 %v3828_v40 }
 0x38a   :  { %v2610_v10 = vpop.f32.mrf.mxu1 }
 0x38b   :  { %v2767_v52 = vmax.f32 %v2766_v25, %v2718_v39  ;;  %v2719_v12 = vmax.f32 %v2687_v34, 0.0  ;;  %v2688_v44 = vadd.f32 %v4505_v43, %v2644_v55  ;;  %v2645_v47 = vadd.f32 %v2610_v10, %v4491_v63 }
 0x38c   :  { %v2612_v59 = vpop.f32.mrf.mxu1  ;;  %v2782_v63 = vunpack.c.l.s4 %v4001_v56 }
 0x38d   :  { %v2755_v33 = vmax.f32 %v2754_v29, %v2719_v12  ;;  %v2720_v16 = vmax.f32 %v2688_v44, 0.0  ;;  %v2689_v7 = vadd.f32 %v4501_v60, %v2645_v47  ;;  %v2646_v48 = vadd.f32 %v2612_v59, %v2014_v62 }
 0x38e   :  { %v2783_v60 = vunpack.c.0.s8 %v2782_v63 }
 0x38f   :  { %v2768_v13 = vmax.f32 %v2767_v52, %v2720_v16  ;;  %v2721_v57 = vmax.f32 %v2689_v7, 0.0  ;;  %v2690_v36 = vadd.f32 %v4505_v43, %v2646_v48 }
 0x390   :  { %v2786_v43 = vsub.s32 %v2783_v60, %v4119_v19 }
 0x391   :  { %v2756_v0 = vmax.f32 %v2755_v33, %v2721_v57  ;;  %v2722_v4 = vmax.f32 %v2690_v36, 0.0 }
 0x392   :  { %v2787_v24 = vrot.slane %v2780_v53, %v2786_v43  ;;  %v2861_v53 = vld [vmem:[%s4597_s6] sm:$0x3] }
 0x393   :  { %v2757_v37 = vrot.slane %v2756_v0, 4  ;;  %v2769_v27 = vmax.f32 %v2768_v13, %v2722_v4  ;;  %v2866_v35 = vrot.slane %v2861_v53, %v4129_v32  ;;  %v2870_v25 = vrot.slane %v2861_v53, %v2655_v45  ;;  %v3509_v32 = vld [vmem:[%s4599_s8] ss:$0 sm:$0xff] }
 0x395   :  { %v2758_v31 = vmax.f32 %v2756_v0, %v2757_v37  ;;  %v2770_v3 = vrot.slane %v2769_v27, 4 }
 0x397   :  { %v2759_v18 = vrot.slane %v2758_v31, 2  ;;  %v2771_v38 = vmax.f32 %v2769_v27, %v2770_v3 }
 0x399   :  { %v2760_v6 = vmax.f32 %v2758_v31, %v2759_v18  ;;  %v2772_v41 = vrot.slane %v2771_v38, 2 }
 0x39b   :  { %v2761_v49 = vrot.slane %v2760_v6, 1  ;;  %v2773_v46 = vmax.f32 %v2771_v38, %v2772_v41 }
 0x39d   :  { %v2774_v15 = vrot.slane %v2773_v46, 1  ;;  %v2762_v42 = vmax.f32 %v2760_v6, %v2761_v49 }
 0x39f   :  { %v2775_v51 = vmax.f32 %v2773_v46, %v2774_v15 }
 0x3a1   :  { %v2788_v9 = vcombine.low %v2762_v42, %v2775_v51 }
 0x3a3   :  { %v2795_v1 = vrot.slane %v2788_v9, %v2786_v43 }
 0x3a5   :  { %v2800_v21 = vrot.slane %v2795_v1, 7 }
 0x3a7   :  { %v2802_v14 = vsel %vm2801_vm0, %v2800_v21, %v2787_v24 }
 0x3a8   :  { %v2804_v58 = vsel %vm2803_vm1, %v2800_v21, %v2802_v14 }
 0x3a9   :  { %v2806_v17 = vsel %vm2805_vm2, %v2800_v21, %v2804_v58 }
 0x3aa   :  { %v2808_v30 = vsel %vm2807_vm3, %v2800_v21, %v2806_v17 }
 0x3ab   :  { %v2810_v23 = vmax.f32 %v2723_v11, %v2808_v30 }
 0x3ad   :  { %2811 = vst [vmem:[#allocation2] sm:$0xf] %v2810_v23 }
 0x3b4   :  { %v3476_v20 = vld.sshfl [vmem:[#allocation2] sm:$0x33 pattern:$0x76325410] }
 0x3b5   :  { %v2824_v28 = vcombine.high %v3476_v20, %v3476_v20  ;;  %v2827_v2 = vpack.c.bf16 %v3476_v20, %v3476_v20 }
 0x3b7   :  { %v2828_v22 = vpack.c.bf16 %v2824_v28, %v2824_v28 }
 0x3b9   :  { %3065 = vmatprep.mubr.bf16.mxu0 %v2828_v22 }
 0x3ba   :  { %3066 = vmatmul.mubr.bf16.vlgmr.msra.gmra.mxu0 %v2827_v2 }
 0x47a   :  { %v3067_v8 = vpop.f32.mrf.mxu0 }
 0x47b   :  { %v3068_v54 = vadd.f32 %v3067_v8, %v2866_v35 }
 0x47c   :  { %v3069_v61 = vpop.f32.mrf.mxu0 }
 0x47d   :  { %v3070_v50 = vadd.f32 %v3069_v61, %v2870_v25  ;;  %v3074_v5 = vmax.f32 %v3068_v54, 0.0 }
 0x47e   :  { %v3071_v39 = vpop.f32.mrf.mxu0 }
 0x47f   :  { %v3075_v34 = vmax.f32 %v3070_v50, 0.0  ;;  %v3076_v29 = vpack.c.bf16 %v3074_v5, %v3074_v5 }
 0x480   :  { %v3072_v55 = vpop.f32.mrf.mxu0 }
 0x481   :  { %v3077_v62 = vpack.c.bf16 %v3075_v34, %v3075_v34 }
 0x483   :  { %3245 = vmatprep.mubr.bf16.mxu1 %v3077_v62 }
 0x484   :  { %3246 = vmatmul.mubr.bf16.vlgmr.msra.gmra.mxu1 %v3076_v29 }
 0x544   :  { %v3542_v10 = vpop.f32.mrf.mxu1 }
 0x546   :  { %v3543_v52 = vpop.f32.mrf.mxu1 }
 0x547   :  { %v3544_v19 = vadd.f32 %v3543_v52, %v3542_v10 }
 0x548   :  { %v3545_v45 = vpop.f32.mrf.mxu1 }
 0x549   :  { %v3248_v12 = vadd.f32 %v3544_v19, %v3509_v32 }
 0x54a   :  { %v3546_v44 = vpop.f32.mrf.mxu1 }
 0x54b   :  { %3253 = vst [vmem:[#allocation14] sm:$0x3] %v3248_v12 }
 0x54c   :  { %3967 = shalt.err (!%p3964_p6)
}
 0x54d   :  { %3263 = dma.vmem_to_hbm [thread:$0]  %s3261_s1, 32, %s4600_s9, [#allocation5]  }
 0x54e   :  { %3984 = dma.done.wait [#allocation5], 32  }
 0x54f   :  { %3985 = vsyncadd [#allocation5], 4294967264 }
 0x550   :  { %3267 = vsyncpa [#allocation4], 1 }
 0x551   :  { %3268 = vsyncpa [#allocation7], 1 }
 0x552   :  { %3269 = vsyncpa [#allocation10], 1 }
 0x553   :  { %3270 = vsyncpa [#allocation13], 1 }
 0x554   :  { %3271 = vsyncpa [#allocation5], 1 }

// kernel: tpu_custom_call.1
= control target key start
LH: loop header
LB: loop body
LE: loop exit
PB: predicated region body
PF: predicated region fallthrough
CT: control target
= control target key end

     0   :  { %14 = vsyncpa [#allocation4], 0  ;;  %s4591_s0 = inlined_call_operand.hbm [shape: bf16[2,64,128], index: 0, kind: input, shape index: {}]   ;;  %s4592_s1 = inlined_call_operand.hbm [shape: bf16[128,1024], index: 1, kind: input, shape index: {}]   ;;  %s4593_s2 = inlined_call_operand.hbm [shape: bf16[1,1024], index: 2, kind: input, shape index: {}]   ;;  %s4594_s3 = inlined_call_operand.hbm [shape: bf16[1024,256], index: 3, kind: input, shape index: {}]   ;;  %s4595_s4 = inlined_call_operand.vmem [shape: f32[1,256], index: 4, kind: input, shape index: {}]   ;;  %s4596_s5 = inlined_call_operand.hbm [shape: bf16[256,256], index: 5, kind: input, shape index: {}]   ;;  %s4597_s6 = inlined_call_operand.vmem [shape: f32[1,256], index: 6, kind: input, shape index: {}]   ;;  %s4598_s7 = inlined_call_operand.hbm [shape: bf16[256,128], index: 7, kind: input, shape index: {}]   ;;  %s4599_s8 = inlined_call_operand.vmem [shape: f32[1,128], index: 8, kind: input, shape index: {}]   ;;  %s4600_s9 = inlined_call_operand.hbm [shape: f32[2,128], index: 9, kind: output, shape index: {}]  }
   0x1   :  { %15 = vsyncpa [#allocation7], 0 }
   0x2   :  { %16 = vsyncpa [#allocation10], 0 }
   0x3   :  { %17 = vsyncpa [#allocation13], 0 }
   0x4   :  { %18 = vsyncpa [#allocation5], 0  ;;  %s3986_s30 = smov [#allocation6]  }
   0x5   :  { %s36_s10 = sshll.u32 %s3986_s30, 4  ;;  %s37_s10 = int_to_ptr.vmem [resolvable:$true] %s36_s10 }
   0x6   :  { %s3844_s11 = scalar_lea.vmem %s37_s10, 8192  ;;  %p3849_p1 = scmp.lt.s32.totalorder %s37_s10, %s37_s10 }
   0x7   :  { %p3845_p0 = scmp.ne.s32.totalorder %s37_s10, %s3844_s11  ;;  %p3850_p2 = scmp.lt.s32.totalorder %s3844_s11, %s3844_s11 }
   0x9   :  { %p3851_p3 = por %p3850_p2, %p3849_p1 }
   0xb   :  { %p3852_p4 = pnand %p3851_p3, %p3845_p0 }
   0xd   :  { %3855 = shalt.err (!%p3852_p4)
}
   0xe   :  { %s3987_s12 = smov 512   ;;  %s3988_s13 = smov 32  }
   0xf   :  { %42 = dma.hbm_to_vmem [thread:$0]  %s4592_s1, 8192, %s37_s10, [#allocation7], %s3987_s12, %s3987_s12, %s3988_s13  }
  0x10   :  { %s3989_s16 = smov [#allocation9]  }
  0x11   :  { %s58_s17 = sshll.u32 %s3989_s16, 4  ;;  %s59_s17 = int_to_ptr.vmem [resolvable:$true] %s58_s17 }
  0x12   :  { %s3864_s18 = scalar_lea.vmem %s59_s17, 16384  ;;  %p3869_p6 = scmp.lt.s32.totalorder %s59_s17, %s59_s17 }
  0x13   :  { %p3865_p5 = scmp.ne.s32.totalorder %s59_s17, %s3864_s18  ;;  %p3870_p7 = scmp.lt.s32.totalorder %s3864_s18, %s3864_s18 }
  0x15   :  { %p3871_p8 = por %p3870_p7, %p3869_p6 }
  0x17   :  { %p3872_p9 = pnand %p3871_p8, %p3865_p5 }
  0x19   :  { %3875 = shalt.err (!%p3872_p9)
}
  0x1a   :  { %s3990_s19 = smov 128   ;;  %s3991_s20 = smov 8  }
  0x1b   :  { %64 = dma.hbm_to_vmem [thread:$0]  %s4594_s3, 16384, %s59_s17, [#allocation10], %s3990_s19, %s3990_s19, %s3991_s20  }
  0x1c   :  { %s3992_s1 = smov [#allocation3]  }
  0x1d   :  { %s24_s23 = sshll.u32 %s3992_s1, 4  ;;  %s25_s23 = int_to_ptr.vmem [resolvable:$true] %s24_s23 }
  0x1e   :  { %s3884_s24 = scalar_lea.vmem %s25_s23, 1024  ;;  %p3889_p11 = scmp.lt.s32.totalorder %s25_s23, %s25_s23 }
  0x1f   :  { %p3885_p10 = scmp.ne.s32.totalorder %s25_s23, %s3884_s24  ;;  %p3890_p12 = scmp.lt.s32.totalorder %s3884_s24, %s3884_s24 }
  0x21   :  { %p3891_p13 = por %p3890_p12, %p3889_p11 }
  0x23   :  { %p3892_p0 = pnand %p3891_p13, %p3885_p10 }
  0x25   :  { %3895 = shalt.err (!%p3892_p0)
}
  0x26   :  { %s3993_s25 = smov 64   ;;  %s3994_s26 = smov 4  }
  0x27   :  { %30 = dma.hbm_to_vmem [thread:$0]  %s4591_s0, 1024, %s25_s23, [#allocation4], %s3993_s25, %s3993_s25, %s3994_s26  }
  0x28   :  { %s3995_s3 = smov [#allocation8]   ;;  %s3996_s30 = smov [#allocation11]  }
  0x29   :  { %s49_s29 = sshll.u32 %s3995_s3, 4  ;;  %s72_s10 = sshll.u32 %s3996_s30, 4  ;;  %s50_s29 = int_to_ptr.vmem [resolvable:$true] %s49_s29  ;;  %s73_s10 = int_to_ptr.vmem [resolvable:$true] %s72_s10 }
  0x2a   :  { %s3904_s11 = scalar_lea.vmem %s50_s29, 128  ;;  %p3909_p2 = scmp.lt.s32.totalorder %s50_s29, %s50_s29 }
  0x2b   :  { %p3905_p1 = scmp.ne.s32.totalorder %s50_s29, %s3904_s11  ;;  %p3910_p3 = scmp.lt.s32.totalorder %s3904_s11, %s3904_s11 }
  0x2d   :  { %p3911_p4 = por %p3910_p3, %p3909_p2 }
  0x2f   :  { %p3912_p5 = pnand %p3911_p4, %p3905_p1 }
  0x31   :  { %3915 = shalt.err (!%p3912_p5)
}
  0x32   :  { %52 = dma.hbm_to_vmem [thread:$0]  %s4593_s2, 128, %s50_s29, [#allocation7]  }
  0x33   :  { %s3924_s14 = scalar_lea.vmem %s73_s10, 4096  ;;  %p3929_p7 = scmp.lt.s32.totalorder %s73_s10, %s73_s10 }
  0x34   :  { %p3925_p6 = scmp.ne.s32.totalorder %s73_s10, %s3924_s14  ;;  %p3930_p8 = scmp.lt.s32.totalorder %s3924_s14, %s3924_s14 }
  0x36   :  { %p3931_p9 = por %p3930_p8, %p3929_p7 }
  0x38   :  { %p3932_p10 = pnand %p3931_p9, %p3925_p6 }
  0x3a   :  { %3935 = shalt.err (!%p3932_p10)
}
  0x3b   :  { %78 = dma.hbm_to_vmem [thread:$0]  %s4596_s5, 4096, %s73_s10, [#allocation10], %s3990_s19, %s3990_s19, %s3991_s20  }
  0x3c   :  { %s3997_s16 = smov [#allocation12]  }
  0x3d   :  { %s86_s17 = sshll.u32 %s3997_s16, 4  ;;  %s87_s17 = int_to_ptr.vmem [resolvable:$true] %s86_s17 }
  0x3e   :  { %s3944_s18 = scalar_lea.vmem %s87_s17, 2048  ;;  %p3949_p12 = scmp.lt.s32.totalorder %s87_s17, %s87_s17 }
  0x3f   :  { %p3945_p11 = scmp.ne.s32.totalorder %s87_s17, %s3944_s18  ;;  %p3950_p13 = scmp.lt.s32.totalorder %s3944_s18, %s3944_s18 }
  0x41   :  { %p3951_p0 = por %p3950_p13, %p3949_p12 }
  0x43   :  { %p3952_p1 = pnand %p3951_p0, %p3945_p11 }
  0x45   :  { %3955 = shalt.err (!%p3952_p1)
}
  0x46   :  { %92 = dma.hbm_to_vmem [thread:$0]  %s4598_s7, 2048, %s87_s17, [#allocation13], %s3993_s25, %s3993_s25, %s3994_s26  }
  0x47   :  { %3976 = dma.done.wait [#allocation4], 1024  }
  0x48   :  { %3977 = vsyncadd [#allocation4], 4294966272 }
  0x49   :  { %3978 = dma.done.wait [#allocation7], 8320  }
  0x4a   :  { %3979 = vsyncadd [#allocation7], 4294958976 }
  0x4b   :  { %3980 = dma.done.wait [#allocation10], 20480  }
  0x4c   :  { %3981 = vsyncadd [#allocation10], 4294946816 }
  0x4d   :  { %3982 = dma.done.wait [#allocation13], 2048  }
  0x4e   :  { %3983 = vsyncadd [#allocation13], 4294965248  ;;  %v3998_v0 = vmov 0   ;;  %v149_v1 = vld [vmem:[#allocation6 + $0x1c0] sm:$0xff]  ;;  %v524_v3 = vld [vmem:[#allocation6 + $0x1c8] sm:$0xff]  ;;  %vm2801_vm0 = vcmask 1041409  }
  0x4f   :  { %311 = vmatprep.mubr.bf16.mxu0 %v3998_v0  ;;  %638 = vmatprep.mubr.bf16.mxu1 %v3998_v0  ;;  %v150_v2 = vld [vmem:[#allocation6 + $0x1e0] sm:$0xff]  ;;  %v525_v5 = vld [vmem:[#allocation6 + $0x1e8] sm:$0xff]  ;;  %vm2803_vm1 = vcmask 1043459   ;;  %vm2805_vm2 = vcmask 1045509   ;;  %vm2807_vm3 = vcmask 1047559   ;;  %s4002_s22 = smov [#allocation14]  }
  0x50   :  { %v3295_v4 = vcombine.high %v149_v1, %v150_v2  ;;  %v3294_v6 = vcombine.low %v149_v1, %v150_v2  ;;  %v147_v7 = vld [vmem:[#allocation6 + $0x180] sm:$0xff]  ;;  %v3312_v9 = vcombine.high %v524_v3, %v525_v5  ;;  %v3311_v10 = vcombine.low %v524_v3, %v525_v5  ;;  %v522_v12 = vld [vmem:[#allocation6 + $0x188] sm:$0xff]  ;;  %s3260_s1 = sshll.u32 %s4002_s22, 4  ;;  %s3261_s1 = int_to_ptr.vmem [resolvable:$true] %s3260_s1 }
  0x51   :  { %v148_v8 = vld [vmem:[#allocation6 + $0x1a0] sm:$0xff]  ;;  %v523_v13 = vld [vmem:[#allocation6 + $0x1a8] sm:$0xff]  ;;  %s3956_s23 = scalar_lea.vmem %s3261_s1, 32  ;;  %p3961_p3 = scmp.lt.s32.totalorder %s3261_s1, %s3261_s1 }
  0x52   :  { %v3293_v11 = vcombine.high %v147_v7, %v148_v8  ;;  %v145_v14 = vld [vmem:[#allocation6 + $0x140] sm:$0xff]  ;;  %279 = vmatprep.subr.bf16.mxu0 %v3295_v4  ;;  %v3310_v15 = vcombine.high %v522_v12, %v523_v13  ;;  %v520_v17 = vld [vmem:[#allocation6 + $0x148] sm:$0xff]  ;;  %606 = vmatprep.subr.bf16.mxu1 %v3312_v9  ;;  %v3292_v19 = vcombine.low %v147_v7, %v148_v8  ;;  %p3957_p2 = scmp.ne.s32.totalorder %s3261_s1, %s3956_s23  ;;  %p3962_p4 = scmp.lt.s32.totalorder %s3956_s23, %s3956_s23 }
  0x53   :  { %v146_v16 = vld [vmem:[#allocation6 + $0x160] sm:$0xff]  ;;  %v521_v18 = vld [vmem:[#allocation6 + $0x168] sm:$0xff]  ;;  %280 = vmatpush1.bf16.msra.mxu0 %v3294_v6  ;;  %607 = vmatpush1.bf16.msra.mxu1 %v3311_v10  ;;  %v3309_v20 = vcombine.low %v522_v12, %v523_v13 }
  0x54   :  { %281 = vmatprep.subr.bf16.mxu0 %v3293_v11  ;;  %v3291_v21 = vcombine.high %v145_v14, %v146_v16  ;;  %608 = vmatprep.subr.bf16.mxu1 %v3310_v15  ;;  %v3308_v22 = vcombine.high %v520_v17, %v521_v18  ;;  %v143_v23 = vld [vmem:[#allocation6 + $0x100] sm:$0xff]  ;;  %v518_v25 = vld [vmem:[#allocation6 + $0x108] sm:$0xff]  ;;  %v3290_v27 = vcombine.low %v145_v14, %v146_v16  ;;  %p3963_p5 = por %p3962_p4, %p3961_p3 }
  0x55   :  { %v144_v24 = vld [vmem:[#allocation6 + $0x120] sm:$0xff]  ;;  %v519_v26 = vld [vmem:[#allocation6 + $0x128] sm:$0xff]  ;;  %v3307_v28 = vcombine.low %v520_v17, %v521_v18 }
  0x56   :  { %v3289_v29 = vcombine.high %v143_v23, %v144_v24  ;;  %v141_v30 = vld [vmem:[#allocation6 + $0xc0] sm:$0xff]  ;;  %v3306_v31 = vcombine.high %v518_v25, %v519_v26  ;;  %v516_v33 = vld [vmem:[#allocation6 + $0xc8] sm:$0xff]  ;;  %v3288_v35 = vcombine.low %v143_v23, %v144_v24  ;;  %v3305_v37 = vcombine.low %v518_v25, %v519_v26  ;;  %p3964_p6 = pnand %p3963_p5, %p3957_p2 }
  0x57   :  { %282 = vmatpush1.bf16.msra.mxu0 %v3292_v19  ;;  %609 = vmatpush1.bf16.msra.mxu1 %v3309_v20  ;;  %v142_v32 = vld [vmem:[#allocation6 + $0xe0] sm:$0xff]  ;;  %v517_v34 = vld [vmem:[#allocation6 + $0xe8] sm:$0xff] }
  0x58   :  { %283 = vmatprep.subr.bf16.mxu0 %v3291_v21  ;;  %610 = vmatprep.subr.bf16.mxu1 %v3308_v22  ;;  %v139_v36 = vld [vmem:[#allocation6 + $0x80] sm:$0xff]  ;;  %v3287_v38 = vcombine.high %v141_v30, %v142_v32  ;;  %v3304_v40 = vcombine.high %v516_v33, %v517_v34  ;;  %v514_v41 = vld [vmem:[#allocation6 + $0x88] sm:$0xff]  ;;  %v3286_v43 = vcombine.low %v141_v30, %v142_v32  ;;  %v3567_v21 = vld [vmem:[#allocation3 + $0x10] sm:$0xff]  }
  0x59   :  { %v140_v39 = vld [vmem:[#allocation6 + $0xa0] sm:$0xff]  ;;  %v515_v42 = vld [vmem:[#allocation6 + $0xa8] sm:$0xff]  ;;  %v3303_v44 = vcombine.low %v516_v33, %v517_v34  ;;  %v3568_v30 = vld [vmem:[#allocation3 + $0x18] sm:$0xff]  }
  0x5a   :  { %v3285_v45 = vcombine.high %v139_v36, %v140_v39  ;;  %v137_v46 = vld [vmem:[#allocation6 + $0x40] sm:$0xff]  ;;  %v3302_v47 = vcombine.high %v514_v41, %v515_v42  ;;  %v512_v49 = vld [vmem:[#allocation6 + $0x48] sm:$0xff]  ;;  %v3284_v51 = vcombine.low %v139_v36, %v140_v39  ;;  %v3301_v52 = vcombine.low %v514_v41, %v515_v42 }
  0x5b   :  { %284 = vmatpush1.bf16.msra.mxu0 %v3290_v27  ;;  %611 = vmatpush1.bf16.msra.mxu1 %v3307_v28  ;;  %v138_v48 = vld [vmem:[#allocation6 + $0x60] sm:$0xff]  ;;  %v513_v50 = vld [vmem:[#allocation6 + $0x68] sm:$0xff] }
  0x5c   :  { %285 = vmatprep.subr.bf16.mxu0 %v3289_v29  ;;  %612 = vmatprep.subr.bf16.mxu1 %v3306_v31  ;;  %v3283_v53 = vcombine.high %v137_v46, %v138_v48  ;;  %v3300_v54 = vcombine.high %v512_v49, %v513_v50  ;;  %v135_v55 = vld [vmem:[#allocation6] sm:$0xff]  ;;  %v510_v57 = vld [vmem:[#allocation6 + $0x8] sm:$0xff]  ;;  %v3282_v59 = vcombine.low %v137_v46, %v138_v48 }
  0x5d   :  { %v136_v56 = vld [vmem:[#allocation6 + $0x20] sm:$0xff]  ;;  %v511_v58 = vld [vmem:[#allocation6 + $0x28] sm:$0xff]  ;;  %v3299_v60 = vcombine.low %v512_v49, %v513_v50 }
  0x5e   :  { %v3281_v61 = vcombine.high %v135_v55, %v136_v56  ;;  %v3298_v62 = vcombine.high %v510_v57, %v511_v58  ;;  %v3280_v63 = vcombine.low %v135_v55, %v136_v56  ;;  %v3297_v1 = vcombine.low %v510_v57, %v511_v58  ;;  %v3575_v2 = vld [vmem:[#allocation9 + $0x174] ss:$8 sps:$4 sm:$0xff]   ;;  %v3573_v5 = vld [vmem:[#allocation9 + $0x170] ss:$8 sps:$4 sm:$0xff]   ;;  %v3581_v7 = vld [vmem:[#allocation9 + $0x164] ss:$8 sps:$4 sm:$0xff]  }
  0x5f   :  { %286 = vmatpush1.bf16.msra.mxu0 %v3288_v35  ;;  %613 = vmatpush1.bf16.msra.mxu1 %v3305_v37  ;;  %v3578_v3 = vld [vmem:[#allocation9 + $0x74] ss:$8 sps:$4 sm:$0xff]   ;;  %v3576_v6 = vld [vmem:[#allocation9 + $0x70] ss:$8 sps:$4 sm:$0xff]   ;;  %v3584_v8 = vld [vmem:[#allocation9 + $0x64] ss:$8 sps:$4 sm:$0xff]  }
  0x60   :  { %287 = vmatprep.subr.bf16.mxu0 %v3287_v38  ;;  %614 = vmatprep.subr.bf16.mxu1 %v3304_v40  ;;  %v3565_v4 = vld [vmem:[#allocation3] sm:$0xff]   ;;  %v3579_v9 = vld [vmem:[#allocation9 + $0x160] ss:$8 sps:$4 sm:$0xff]   ;;  %v3593_v16 = vld [vmem:[#allocation9 + $0x144] ss:$8 sps:$4 sm:$0xff]  }
  0x61   :  { %v3582_v10 = vld [vmem:[#allocation9 + $0x60] ss:$8 sps:$4 sm:$0xff]   ;;  %v3587_v11 = vld [vmem:[#allocation9 + $0x154] ss:$8 sps:$4 sm:$0xff]   ;;  %v3585_v14 = vld [vmem:[#allocation9 + $0x150] ss:$8 sps:$4 sm:$0xff]  }
  0x62   :  { %v3566_v12 = vld [vmem:[#allocation3 + $0x8] sm:$0xff]   ;;  %v3590_v13 = vld [vmem:[#allocation9 + $0x54] ss:$8 sps:$4 sm:$0xff]   ;;  %v3588_v15 = vld [vmem:[#allocation9 + $0x50] ss:$8 sps:$4 sm:$0xff]  }
  0x63   :  { %288 = vmatpush1.bf16.msra.mxu0 %v3286_v43  ;;  %615 = vmatpush1.bf16.msra.mxu1 %v3303_v44  ;;  %v3596_v17 = vld [vmem:[#allocation9 + $0x44] ss:$8 sps:$4 sm:$0xff]   ;;  %v3591_v18 = vld [vmem:[#allocation9 + $0x140] ss:$8 sps:$4 sm:$0xff]   ;;  %v3599_v20 = vld [vmem:[#allocation9 + $0x134] ss:$8 sps:$4 sm:$0xff]  }
  0x64   :  { %289 = vmatprep.subr.bf16.mxu0 %v3285_v45  ;;  %616 = vmatprep.subr.bf16.mxu1 %v3302_v47  ;;  %v3594_v19 = vld [vmem:[#allocation9 + $0x40] ss:$8 sps:$4 sm:$0xff]   ;;  %v3602_v22 = vld [vmem:[#allocation9 + $0x34] ss:$8 sps:$4 sm:$0xff]   ;;  %v3597_v23 = vld [vmem:[#allocation9 + $0x130] ss:$8 sps:$4 sm:$0xff]  }
  0x65   :  { %v3600_v24 = vld [vmem:[#allocation9 + $0x30] ss:$8 sps:$4 sm:$0xff]   ;;  %v3605_v25 = vld [vmem:[#allocation9 + $0x124] ss:$8 sps:$4 sm:$0xff]   ;;  %v3603_v26 = vld [vmem:[#allocation9 + $0x120] ss:$8 sps:$4 sm:$0xff]  }
  0x66   :  { %v3608_v27 = vld [vmem:[#allocation9 + $0x24] ss:$8 sps:$4 sm:$0xff]   ;;  %v3606_v28 = vld [vmem:[#allocation9 + $0x20] ss:$8 sps:$4 sm:$0xff]   ;;  %v3611_v29 = vld [vmem:[#allocation9 + $0x114] ss:$8 sps:$4 sm:$0xff]  }
  0x67   :  { %290 = vmatpush1.bf16.msra.mxu0 %v3284_v51  ;;  %617 = vmatpush1.bf16.msra.mxu1 %v3301_v52  ;;  %v3614_v31 = vld [vmem:[#allocation9 + $0x14] ss:$8 sps:$4 sm:$0xff]   ;;  %v3609_v32 = vld [vmem:[#allocation9 + $0x110] ss:$8 sps:$4 sm:$0xff]   ;;  %v3617_v34 = vld [vmem:[#allocation9 + $0x104] ss:$8 sps:$4 sm:$0xff]  }
  0x68   :  { %291 = vmatprep.subr.bf16.mxu0 %v3283_v53  ;;  %618 = vmatprep.subr.bf16.mxu1 %v3300_v54  ;;  %v3612_v33 = vld [vmem:[#allocation9 + $0x10] ss:$8 sps:$4 sm:$0xff]   ;;  %v3620_v35 = vld [vmem:[#allocation9 + $0x4] ss:$8 sps:$4 sm:$0xff]   ;;  %v3615_v36 = vld [vmem:[#allocation9 + $0x100] ss:$8 sps:$4 sm:$0xff]  }
  0x69   :  { %v3618_v37 = vld [vmem:[#allocation9] ss:$8 sps:$4 sm:$0xff]   ;;  %v3623_v38 = vld [vmem:[#allocation9 + $0x1f4] ss:$8 sps:$4 sm:$0xff]   ;;  %v3621_v41 = vld [vmem:[#allocation9 + $0x1f0] ss:$8 sps:$4 sm:$0xff]  }
  0x6a   :  { %v3569_v39 = vld [vmem:[#allocation3 + $0x20] sm:$0xff]   ;;  %v3629_v43 = vld [vmem:[#allocation9 + $0x1e4] ss:$8 sps:$4 sm:$0xff]   ;;  %v3627_v45 = vld [vmem:[#allocation9 + $0x1e0] ss:$8 sps:$4 sm:$0xff]  }
  0x6b   :  { %292 = vmatpush1.bf16.msra.mxu0 %v3282_v59  ;;  %619 = vmatpush1.bf16.msra.mxu1 %v3299_v60  ;;  %v3626_v40 = vld [vmem:[#allocation9 + $0xf4] ss:$8 sps:$4 sm:$0xff]   ;;  %v3624_v42 = vld [vmem:[#allocation9 + $0xf0] ss:$8 sps:$4 sm:$0xff]   ;;  %v3632_v44 = vld [vmem:[#allocation9 + $0xe4] ss:$8 sps:$4 sm:$0xff]  }
  0x6c   :  { %293 = vmatprep.subr.bf16.mxu0 %v3281_v61  ;;  %620 = vmatprep.subr.bf16.mxu1 %v3298_v62  ;;  %v3630_v46 = vld [vmem:[#allocation9 + $0xe0] ss:$8 sps:$4 sm:$0xff]   ;;  %v3635_v47 = vld [vmem:[#allocation9 + $0x1d4] ss:$8 sps:$4 sm:$0xff]   ;;  %v3633_v50 = vld [vmem:[#allocation9 + $0x1d0] ss:$8 sps:$4 sm:$0xff]  }
  0x6d   :  { %v4095_v48 = vld [vmem:[#allocation3 + $0x28] sm:$0xff]   ;;  %v3638_v49 = vld [vmem:[#allocation9 + $0xd4] ss:$8 sps:$4 sm:$0xff]   ;;  %v3636_v51 = vld [vmem:[#allocation9 + $0xd0] ss:$8 sps:$4 sm:$0xff]  }
  0x6e   :  { %v3641_v52 = vld [vmem:[#allocation9 + $0x1c4] ss:$8 sps:$4 sm:$0xff]   ;;  %v3639_v54 = vld [vmem:[#allocation9 + $0x1c0] ss:$8 sps:$4 sm:$0xff]   ;;  %v3647_v56 = vld [vmem:[#allocation9 + $0x1b4] ss:$8 sps:$4 sm:$0xff]  }
  0x6f   :  { %294 = vmatpush1.bf16.msra.mxu0 %v3280_v63  ;;  %621 = vmatpush1.bf16.msra.mxu1 %v3297_v1  ;;  %v3644_v53 = vld [vmem:[#allocation9 + $0xc4] ss:$8 sps:$4 sm:$0xff]   ;;  %v3642_v55 = vld [vmem:[#allocation9 + $0xc0] ss:$8 sps:$4 sm:$0xff]   ;;  %v3650_v58 = vld [vmem:[#allocation9 + $0xb4] ss:$8 sps:$4 sm:$0xff]  }
  0x70   :  { %997 = vmatprep.subr.bf16.mxu0 %v3575_v2  ;;  %1270 = vmatprep.subr.bf16.mxu1 %v3578_v3  ;;  %v4101_v57 = vld [vmem:[#allocation3 + $0x30] sm:$0xff]   ;;  %v3645_v59 = vld [vmem:[#allocation9 + $0x1b0] ss:$8 sps:$4 sm:$0xff]   ;;  %v3659_v3 = vld [vmem:[#allocation9 + $0x194] ss:$8 sps:$4 sm:$0xff]  }
  0x71   :  { %v3648_v60 = vld [vmem:[#allocation9 + $0xb0] ss:$8 sps:$4 sm:$0xff]   ;;  %v3651_v62 = vld [vmem:[#allocation9 + $0x1a0] ss:$8 sps:$4 sm:$0xff]   ;;  %v3653_v63 = vld [vmem:[#allocation9 + $0x1a4] ss:$8 sps:$4 sm:$0xff]  }
  0x72   :  { %312 = vmatmul.mubr.bf16.vlgmr.msra.gmra.mxu0 %v3565_v4  ;;  %639 = vmatmul.mubr.bf16.vlgmr.msra.gmra.mxu1 %v3565_v4  ;;  %v4107_v61 = vld [vmem:[#allocation3 + $0x38] sm:$0xff]   ;;  %v3656_v1 = vld [vmem:[#allocation9 + $0xa4] ss:$8 sps:$4 sm:$0xff]   ;;  %v3654_v2 = vld [vmem:[#allocation9 + $0xa0] ss:$8 sps:$4 sm:$0xff]  }
  0x73   :  { %321 = vmatprep.mubr.bf16.mxu0 %v3998_v0  ;;  %648 = vmatprep.mubr.bf16.mxu1 %v3998_v0  ;;  %v3662_v4 = vld [vmem:[#allocation9 + $0x94] ss:$8 sps:$4 sm:$0xff]  }
  0x74   :  { %998 = vmatpush1.bf16.msra.mxu0 %v3573_v5  ;;  %1271 = vmatpush1.bf16.msra.mxu1 %v3576_v6  ;;  %v3657_v5 = vld [vmem:[#allocation9 + $0x190] ss:$8 sps:$4 sm:$0xff]  }
  0x75   :  { %999 = vmatprep.subr.bf16.mxu0 %v3581_v7  ;;  %1272 = vmatprep.subr.bf16.mxu1 %v3584_v8  ;;  %v3660_v6 = vld [vmem:[#allocation9 + $0x90] ss:$8 sps:$4 sm:$0xff]   ;;  %v3665_v7 = vld [vmem:[#allocation9 + $0x184] ss:$8 sps:$4 sm:$0xff]   ;;  %v3663_v8 = vld [vmem:[#allocation9 + $0x180] ss:$8 sps:$4 sm:$0xff]  }
  0x78   :  { %1000 = vmatpush1.bf16.msra.mxu0 %v3579_v9  ;;  %1273 = vmatpush1.bf16.msra.mxu1 %v3582_v10  ;;  %v3666_v9 = vld [vmem:[#allocation9 + $0x80] ss:$8 sps:$4 sm:$0xff]   ;;  %v3668_v10 = vld [vmem:[#allocation9 + $0x84] ss:$8 sps:$4 sm:$0xff]  }
  0x79   :  { %1001 = vmatprep.subr.bf16.mxu0 %v3587_v11  ;;  %1274 = vmatprep.subr.bf16.mxu1 %v3590_v13  ;;  %v4111_v11 = vld [vmem:[#allocation6 + $0x1d0] sm:$0xff] }
  0x7a   :  { %322 = vmatmul.mubr.bf16.gmra.mxu0 %v3566_v12  ;;  %649 = vmatmul.mubr.bf16.gmra.mxu1 %v3566_v12  ;;  %v4113_v12 = vld [vmem:[#allocation6 + $0x1f0] sm:$0xff] }
  0x7b   :  { %331 = vmatprep.mubr.bf16.mxu0 %v3998_v0  ;;  %658 = vmatprep.mubr.bf16.mxu1 %v3998_v0  ;;  %v3392_v13 = vcombine.low %v4111_v11, %v4113_v12 }
  0x7c   :  { %1002 = vmatpush1.bf16.msra.mxu0 %v3585_v14  ;;  %1275 = vmatpush1.bf16.msra.mxu1 %v3588_v15  ;;  %v3393_v14 = vcombine.high %v4111_v11, %v4113_v12  ;;  %v3999_v15 = vmov 1966171168  }
  0x7d   :  { %1003 = vmatprep.subr.bf16.mxu0 %v3593_v16  ;;  %1276 = vmatprep.subr.bf16.mxu1 %v3596_v17  ;;  %v419_v16 = vunpack.c.l.s4 %v3999_v15  ;;  %v421_v17 = vlaneseq }
  0x80   :  { %1004 = vmatpush1.bf16.msra.mxu0 %v3591_v18  ;;  %1277 = vmatpush1.bf16.msra.mxu1 %v3594_v19  ;;  %v420_v18 = vunpack.c.0.s8 %v419_v16  ;;  %v4119_v19 = vshrl.u32 %v421_v17, 7 }
  0x81   :  { %1005 = vmatprep.subr.bf16.mxu0 %v3599_v20  ;;  %1278 = vmatprep.subr.bf16.mxu1 %v3602_v22  ;;  %v3296_v20 = vld.sshfl [vmem:[#allocation8] sm:$0x11 pattern:$0x75316420] }
  0x82   :  { %332 = vmatmul.mubr.bf16.gmra.mxu0 %v3567_v21  ;;  %659 = vmatmul.mubr.bf16.gmra.mxu1 %v3567_v21  ;;  %v3313_v21 = vld.sshfl [vmem:[#allocation8 + $0x2] sm:$0x11 pattern:$0x75316420]  ;;  %v417_v22 = vcombine.high %v3296_v20, %v3296_v20 }
  0x83   :  { %341 = vmatprep.mubr.bf16.mxu0 %v3998_v0  ;;  %668 = vmatprep.mubr.bf16.mxu1 %v3998_v0 }
  0x84   :  { %1006 = vmatpush1.bf16.msra.mxu0 %v3597_v23  ;;  %1279 = vmatpush1.bf16.msra.mxu1 %v3600_v24  ;;  %v4122_v23 = vsub.s32 %v420_v18, %v4119_v19  ;;  %v744_v24 = vcombine.high %v3313_v21, %v3313_v21 }
  0x85   :  { %1007 = vmatprep.subr.bf16.mxu0 %v3605_v25  ;;  %1280 = vmatprep.subr.bf16.mxu1 %v3608_v27 }
  0x86   :  { %v424_v25 = vrot.slane %v3296_v20, %v4122_v23  ;;  %v431_v27 = vrot.slane %v417_v22, %v4122_v23 }
  0x88   :  { %1008 = vmatpush1.bf16.msra.mxu0 %v3603_v26  ;;  %1281 = vmatpush1.bf16.msra.mxu1 %v3606_v28  ;;  %v751_v26 = vrot.slane %v3313_v21, %v4122_v23  ;;  %v758_v28 = vrot.slane %v744_v24, %v4122_v23 }
  0x89   :  { %1009 = vmatprep.subr.bf16.mxu0 %v3611_v29  ;;  %1282 = vmatprep.subr.bf16.mxu1 %v3614_v31  ;;  %v433_v29 = vpack.i.b16 %v424_v25, %v424_v25 }
  0x8a   :  { %342 = vmatmul.mubr.bf16.gmra.mxu0 %v3568_v30  ;;  %669 = vmatmul.mubr.bf16.gmra.mxu1 %v3568_v30 }
  0x8b   :  { %351 = vmatprep.mubr.bf16.mxu0 %v3998_v0  ;;  %678 = vmatprep.mubr.bf16.mxu1 %v3998_v0 }
  0x8c   :  { %1010 = vmatpush1.bf16.msra.mxu0 %v3609_v32  ;;  %1283 = vmatpush1.bf16.msra.mxu1 %v3612_v33  ;;  %v4129_v32 = vsub.s32 0, %v4119_v19  ;;  %v760_v33 = vpack.i.b16 %v751_v26, %v751_v26 }
  0x8d   :  { %1011 = vmatprep.subr.bf16.mxu0 %v3617_v34  ;;  %1284 = vmatprep.subr.bf16.mxu1 %v3620_v35  ;;  %v440_v34 = vpack.i.b16 %v431_v27, %v431_v27 }
  0x90   :  { %1012 = vmatpush1.bf16.msra.mxu0 %v3615_v36  ;;  %1285 = vmatpush1.bf16.msra.mxu1 %v3618_v37  ;;  %v767_v36 = vpack.i.b16 %v758_v28, %v758_v28 }
  0x91   :  { %1013 = vmatprep.subr.bf16.mxu0 %v3623_v38  ;;  %1286 = vmatprep.subr.bf16.mxu1 %v3626_v40  ;;  %v4132_v38 = vrot.slane %v433_v29, %v4129_v32 }
  0x92   :  { %352 = vmatmul.mubr.bf16.gmra.mxu0 %v3569_v39  ;;  %679 = vmatmul.mubr.bf16.gmra.mxu1 %v3569_v39 }
  0x93   :  { %361 = vmatprep.mubr.bf16.mxu0 %v3998_v0  ;;  %688 = vmatprep.mubr.bf16.mxu1 %v3998_v0 }
  0x94   :  { %1014 = vmatpush2.bf16.msra.mxu0 %v3621_v41  ;;  %1287 = vmatpush2.bf16.msra.mxu1 %v3624_v42  ;;  %v4135_v42 = vrot.slane %v760_v33, %v4129_v32 }
  0x95   :  { %1015 = vmatprep.subr.bf16.mxu0 %v3629_v43  ;;  %1288 = vmatprep.subr.bf16.mxu1 %v3632_v44  ;;  %v4138_v43 = vrot.slane %v440_v34, %v4129_v32 }
  0x98   :  { %1016 = vmatpush2.bf16.msra.mxu0 %v3627_v45  ;;  %1289 = vmatpush2.bf16.msra.mxu1 %v3630_v46  ;;  %v4141_v46 = vrot.slane %v767_v36, %v4129_v32 }
  0x99   :  { %1017 = vmatprep.subr.bf16.mxu0 %v3635_v47  ;;  %1290 = vmatprep.subr.bf16.mxu1 %v3638_v49 }
  0x9a   :  { %362 = vmatmul.mubr.bf16.gmra.mxu0 %v4095_v48  ;;  %689 = vmatmul.mubr.bf16.gmra.mxu1 %v4095_v48 }
  0x9b   :  { %371 = vmatprep.mubr.bf16.mxu0 %v3998_v0  ;;  %698 = vmatprep.mubr.bf16.mxu1 %v3998_v0 }
  0x9c   :  { %1018 = vmatpush2.bf16.msra.mxu0 %v3633_v50  ;;  %1291 = vmatpush2.bf16.msra.mxu1 %v3636_v51 }
  0x9d   :  { %1019 = vmatprep.subr.bf16.mxu0 %v3641_v52  ;;  %1292 = vmatprep.subr.bf16.mxu1 %v3644_v53 }
  0xa0   :  { %1020 = vmatpush2.bf16.msra.mxu0 %v3639_v54  ;;  %1293 = vmatpush2.bf16.msra.mxu1 %v3642_v55 }
  0xa1   :  { %1021 = vmatprep.subr.bf16.mxu0 %v3647_v56  ;;  %1294 = vmatprep.subr.bf16.mxu1 %v3650_v58 }
  0xa2   :  { %372 = vmatmul.mubr.bf16.gmra.mxu0 %v4101_v57  ;;  %699 = vmatmul.mubr.bf16.gmra.mxu1 %v4101_v57 }
  0xa3   :  { %381 = vmatprep.mubr.bf16.mxu0 %v3998_v0  ;;  %708 = vmatprep.mubr.bf16.mxu1 %v3998_v0 }
  0xa4   :  { %1022 = vmatpush2.bf16.msra.mxu0 %v3645_v59  ;;  %1295 = vmatpush2.bf16.msra.mxu1 %v3648_v60  ;;  %v1395_v60 = vld [vmem:[#allocation6 + $0x190] sm:$0xff] }
  0xa5   :  { %1023 = vmatprep.subr.bf16.mxu0 %v3653_v63  ;;  %1296 = vmatprep.subr.bf16.mxu1 %v3656_v1 }
  0xa8   :  { %1024 = vmatpush2.bf16.msra.mxu0 %v3651_v62  ;;  %1297 = vmatpush2.bf16.msra.mxu1 %v3654_v2  ;;  %v1396_v62 = vld [vmem:[#allocation6 + $0x1b0] sm:$0xff] }
  0xa9   :  { %1025 = vmatprep.subr.bf16.mxu0 %v3659_v3  ;;  %1298 = vmatprep.subr.bf16.mxu1 %v3662_v4  ;;  %v3390_v21 = vcombine.low %v1395_v60, %v1396_v62 }
  0xaa   :  { %382 = vmatmul.mubr.bf16.gmra.mxu0 %v4107_v61  ;;  %709 = vmatmul.mubr.bf16.gmra.mxu1 %v4107_v61 }
  0xac   :  { %1026 = vmatpush2.bf16.msra.mxu0 %v3657_v5  ;;  %1299 = vmatpush2.bf16.msra.mxu1 %v3660_v6 }
  0xad   :  { %1027 = vmatprep.subr.bf16.mxu0 %v3665_v7  ;;  %1300 = vmatprep.subr.bf16.mxu1 %v3668_v10  ;;  %v3391_v7 = vcombine.high %v1395_v60, %v1396_v62  ;;  %v1393_v10 = vld [vmem:[#allocation6 + $0x150] sm:$0xff] }
  0xb0   :  { %1028 = vmatpush2.bf16.msra.mxu0 %v3663_v8  ;;  %1301 = vmatpush2.bf16.msra.mxu1 %v3666_v9 }
  0xb1   :  { %1479 = vmatprep.subr.bf16.mxu0 %v3393_v14  ;;  %v1394_v14 = vld [vmem:[#allocation6 + $0x170] sm:$0xff] }
  0xb2   :  { %v3389_v26 = vcombine.high %v1393_v10, %v1394_v14  ;;  %v3388_v34 = vcombine.low %v1393_v10, %v1394_v14 }
 0x132   :  { %v313_v30 = vpop.f32.mrf.mxu0  ;;  %v640_v31 = vpop.f32.mrf.mxu1 }
 0x134   :  { %v315_v35 = vpop.f32.mrf.mxu0  ;;  %v642_v37 = vpop.f32.mrf.mxu1 }
 0x136   :  { %v317_v39 = vpop.f32.mrf.mxu0  ;;  %v644_v41 = vpop.f32.mrf.mxu1 }
 0x137   :  { %v392_v40 = vpack.c.bf16 %v317_v39, %v313_v30  ;;  %v719_v44 = vpack.c.bf16 %v644_v41, %v640_v31  ;;  %v1391_v30 = vld [vmem:[#allocation6 + $0x110] sm:$0xff] }
 0x138   :  { %v319_v45 = vpop.f32.mrf.mxu0  ;;  %v646_v50 = vpop.f32.mrf.mxu1  ;;  %v1392_v31 = vld [vmem:[#allocation6 + $0x130] sm:$0xff] }
 0x139   :  { %v446_v47 = vadd.bf16 %v4132_v38, %v392_v40  ;;  %v393_v49 = vpack.c.bf16 %v319_v45, %v315_v35  ;;  %v720_v51 = vpack.c.bf16 %v646_v50, %v642_v37  ;;  %v773_v53 = vadd.bf16 %v4135_v42, %v719_v44  ;;  %v1389_v44 = vld [vmem:[#allocation6 + $0xd0] sm:$0xff] }
 0x13a   :  { %v323_v52 = vpop.f32.mrf.mxu0  ;;  %v650_v55 = vpop.f32.mrf.mxu1  ;;  %v3387_v39 = vcombine.high %v1391_v30, %v1392_v31  ;;  %v1390_v45 = vld [vmem:[#allocation6 + $0xf0] sm:$0xff] }
 0x13b   :  { %v447_v54 = vadd.bf16 %v4138_v43, %v393_v49  ;;  %v462_v56 = vmax.bf16 %v3998_v0, %v446_v47  ;;  %v774_v58 = vadd.bf16 %v4141_v46, %v720_v51  ;;  %v789_v4 = vmax.bf16 %v3998_v0, %v773_v53 }
 0x13c   :  { %v325_v59 = vpop.f32.mrf.mxu0  ;;  %v652_v63 = vpop.f32.mrf.mxu1  ;;  %v3386_v53 = vcombine.low %v1391_v30, %v1392_v31 }
 0x13d   :  { %v463_v1 = vmax.bf16 %v3998_v0, %v447_v54  ;;  %v790_v3 = vmax.bf16 %v3998_v0, %v774_v58  ;;  %v3385_v58 = vcombine.high %v1389_v44, %v1390_v45 }
 0x13e   :  { %v327_v2 = vpop.f32.mrf.mxu0  ;;  %v654_v6 = vpop.f32.mrf.mxu1 }
 0x13f   :  { %v394_v5 = vpack.c.bf16 %v327_v2, %v323_v52  ;;  %1302 = vmatprep.mubr.bf16.mxu1 %v463_v1  ;;  %v721_v8 = vpack.c.bf16 %v654_v6, %v650_v55  ;;  %1029 = vmatprep.mubr.bf16.mxu0 %v790_v3  ;;  %v1388_v1 = vld [vmem:[#allocation6 + $0xb0] sm:$0xff]  ;;  %v3384_v6 = vcombine.low %v1389_v44, %v1390_v45 }
 0x140   :  { %v329_v9 = vpop.f32.mrf.mxu0  ;;  %1303 = vmatmul.mubr.bf16.vlgmr.msra.gmra.mxu1 %v462_v56  ;;  %v656_v17 = vpop.f32.mrf.mxu1  ;;  %1030 = vmatmul.mubr.bf16.vlgmr.msra.gmra.mxu0 %v789_v4 }
 0x141   :  { %v448_v15 = vadd.bf16 %v4132_v38, %v394_v5  ;;  %v395_v16 = vpack.c.bf16 %v329_v9, %v325_v59  ;;  %v722_v18 = vpack.c.bf16 %v656_v17, %v652_v63  ;;  %1480 = vmatpush1.bf16.msra.mxu0 %v3392_v13  ;;  %v775_v22 = vadd.bf16 %v4135_v42, %v721_v8  ;;  %v1387_v63 = vld [vmem:[#allocation6 + $0x90] sm:$0xff] }
 0x142   :  { %v333_v20 = vpop.f32.mrf.mxu0  ;;  %v660_v25 = vpop.f32.mrf.mxu1  ;;  %1481 = vmatprep.subr.bf16.mxu0 %v3391_v7  ;;  %v3383_v10 = vcombine.high %v1387_v63, %v1388_v1  ;;  %v1386_v17 = vld [vmem:[#allocation6 + $0x70] sm:$0xff] }
 0x143   :  { %v449_v24 = vadd.bf16 %v4138_v43, %v395_v16  ;;  %v776_v27 = vadd.bf16 %v4141_v46, %v722_v18  ;;  %v464_v29 = vmax.bf16 %v3998_v0, %v448_v15  ;;  %v791_v37 = vmax.bf16 %v3998_v0, %v775_v22  ;;  %v1385_v16 = vld [vmem:[#allocation6 + $0x50] sm:$0xff] }
 0x144   :  { %v335_v28 = vpop.f32.mrf.mxu0  ;;  %v662_v33 = vpop.f32.mrf.mxu1 }
 0x145   :  { %v465_v11 = vmax.bf16 %v3998_v0, %v449_v24  ;;  %v792_v13 = vmax.bf16 %v3998_v0, %v776_v27  ;;  %1482 = vmatpush1.bf16.msra.mxu0 %v3390_v21 }
 0x146   :  { %v337_v12 = vpop.f32.mrf.mxu0  ;;  %v664_v36 = vpop.f32.mrf.mxu1  ;;  %1483 = vmatprep.subr.bf16.mxu0 %v3389_v26 }
 0x147   :  { %v396_v35 = vpack.c.bf16 %v337_v12, %v333_v20  ;;  %1312 = vmatprep.mubr.bf16.mxu1 %v465_v11  ;;  %v723_v40 = vpack.c.bf16 %v664_v36, %v660_v25  ;;  %1039 = vmatprep.mubr.bf16.mxu0 %v792_v13  ;;  %v3382_v25 = vcombine.low %v1387_v63, %v1388_v1  ;;  %v1383_v11 = vld [vmem:[#allocation6 + $0x10] sm:$0xff] }
 0x148   :  { %v339_v41 = vpop.f32.mrf.mxu0  ;;  %1313 = vmatmul.mubr.bf16.gmra.mxu1 %v464_v29  ;;  %v666_v50 = vpop.f32.mrf.mxu1  ;;  %1040 = vmatmul.mubr.bf16.gmra.mxu0 %v791_v37  ;;  %v3381_v29 = vcombine.high %v1385_v16, %v1386_v17  ;;  %v1384_v12 = vld [vmem:[#allocation6 + $0x30] sm:$0xff]  ;;  %v3380_v37 = vcombine.low %v1385_v16, %v1386_v17 }
 0x149   :  { %v450_v47 = vadd.bf16 %v4132_v38, %v396_v35  ;;  %v397_v49 = vpack.c.bf16 %v339_v41, %v335_v28  ;;  %v724_v51 = vpack.c.bf16 %v666_v50, %v662_v33  ;;  %1484 = vmatpush1.bf16.msra.mxu0 %v3388_v34  ;;  %v777_v54 = vadd.bf16 %v4135_v42, %v723_v40  ;;  %v4180_v50 = vld [vmem:[#allocation6 + $0x1f8] sm:$0xff] }
 0x14a   :  { %v343_v52 = vpop.f32.mrf.mxu0  ;;  %v670_v56 = vpop.f32.mrf.mxu1  ;;  %1485 = vmatprep.subr.bf16.mxu0 %v3387_v39  ;;  %v3379_v44 = vcombine.high %v1383_v11, %v1384_v12 }
 0x14b   :  { %v451_v55 = vadd.bf16 %v4138_v43, %v397_v49  ;;  %v778_v59 = vadd.bf16 %v4141_v46, %v724_v51  ;;  %v466_v62 = vmax.bf16 %v3998_v0, %v450_v47  ;;  %v793_v9 = vmax.bf16 %v3998_v0, %v777_v54  ;;  %v4178_v49 = vld [vmem:[#allocation6 + $0x1d8] sm:$0xff] }
 0x14c   :  { %v345_v60 = vpop.f32.mrf.mxu0  ;;  %v672_v2 = vpop.f32.mrf.mxu1 }
 0x14d   :  { %v467_v3 = vmax.bf16 %v3998_v0, %v451_v55  ;;  %v794_v5 = vmax.bf16 %v3998_v0, %v778_v59  ;;  %1486 = vmatpush1.bf16.msra.mxu0 %v3386_v53 }
 0x14e   :  { %v347_v4 = vpop.f32.mrf.mxu0  ;;  %v674_v8 = vpop.f32.mrf.mxu1  ;;  %1487 = vmatprep.subr.bf16.mxu0 %v3385_v58 }
 0x14f   :  { %v398_v7 = vpack.c.bf16 %v347_v4, %v343_v52  ;;  %1322 = vmatprep.mubr.bf16.mxu1 %v467_v3  ;;  %v725_v14 = vpack.c.bf16 %v674_v8, %v670_v56  ;;  %1049 = vmatprep.mubr.bf16.mxu0 %v794_v5  ;;  %v3378_v56 = vcombine.low %v1383_v11, %v1384_v12 }
 0x150   :  { %v349_v15 = vpop.f32.mrf.mxu0  ;;  %1323 = vmatmul.mubr.bf16.gmra.mxu1 %v466_v62  ;;  %v676_v21 = vpop.f32.mrf.mxu1  ;;  %1050 = vmatmul.mubr.bf16.gmra.mxu0 %v793_v9  ;;  %v3442_v62 = vcombine.high %v4178_v49, %v4180_v50 }
 0x151   :  { %v452_v18 = vadd.bf16 %v4132_v38, %v398_v7  ;;  %v399_v20 = vpack.c.bf16 %v349_v15, %v345_v60  ;;  %v726_v22 = vpack.c.bf16 %v676_v21, %v672_v2  ;;  %1488 = vmatpush1.bf16.msra.mxu0 %v3384_v6  ;;  %v779_v26 = vadd.bf16 %v4135_v42, %v725_v14 }
 0x152   :  { %v353_v24 = vpop.f32.mrf.mxu0  ;;  %v680_v28 = vpop.f32.mrf.mxu1  ;;  %1489 = vmatprep.subr.bf16.mxu0 %v3383_v10 }
 0x153   :  { %v453_v27 = vadd.bf16 %v4138_v43, %v399_v20  ;;  %v780_v30 = vadd.bf16 %v4141_v46, %v726_v22  ;;  %v468_v33 = vmax.bf16 %v3998_v0, %v452_v18  ;;  %v795_v41 = vmax.bf16 %v3998_v0, %v779_v26 }
 0x154   :  { %v355_v31 = vpop.f32.mrf.mxu0  ;;  %v682_v13 = vpop.f32.mrf.mxu1 }
 0x155   :  { %v469_v34 = vmax.bf16 %v3998_v0, %v453_v27  ;;  %v796_v36 = vmax.bf16 %v3998_v0, %v780_v30  ;;  %1490 = vmatpush1.bf16.msra.mxu0 %v3382_v25 }
 0x156   :  { %v357_v35 = vpop.f32.mrf.mxu0  ;;  %v684_v40 = vpop.f32.mrf.mxu1  ;;  %1491 = vmatprep.subr.bf16.mxu0 %v3381_v29 }
 0x157   :  { %v400_v39 = vpack.c.bf16 %v357_v35, %v353_v24  ;;  %1332 = vmatprep.mubr.bf16.mxu1 %v469_v34  ;;  %v727_v45 = vpack.c.bf16 %v684_v40, %v680_v28  ;;  %1059 = vmatprep.mubr.bf16.mxu0 %v796_v36 }
 0x158   :  { %v359_v47 = vpop.f32.mrf.mxu0  ;;  %1333 = vmatmul.mubr.bf16.gmra.mxu1 %v468_v33  ;;  %v686_v53 = vpop.f32.mrf.mxu1  ;;  %1060 = vmatmul.mubr.bf16.gmra.mxu0 %v795_v41 }
 0x159   :  { %v454_v51 = vadd.bf16 %v4132_v38, %v400_v39  ;;  %v401_v52 = vpack.c.bf16 %v359_v47, %v355_v31  ;;  %v728_v54 = vpack.c.bf16 %v686_v53, %v682_v13  ;;  %1492 = vmatpush1.bf16.msra.mxu0 %v3380_v37  ;;  %v781_v58 = vadd.bf16 %v4135_v42, %v727_v45 }
 0x15a   :  { %v363_v55 = vpop.f32.mrf.mxu0  ;;  %v690_v60 = vpop.f32.mrf.mxu1  ;;  %1493 = vmatprep.subr.bf16.mxu0 %v3379_v44 }
 0x15b   :  { %v455_v59 = vadd.bf16 %v4138_v43, %v401_v52  ;;  %v782_v63 = vadd.bf16 %v4141_v46, %v728_v54  ;;  %v470_v2 = vmax.bf16 %v3998_v0, %v454_v51  ;;  %v797_v9 = vmax.bf16 %v3998_v0, %v781_v58 }
 0x15c   :  { %v365_v1 = vpop.f32.mrf.mxu0  ;;  %v692_v3 = vpop.f32.mrf.mxu1 }
 0x15d   :  { %v471_v4 = vmax.bf16 %v3998_v0, %v455_v59  ;;  %v798_v6 = vmax.bf16 %v3998_v0, %v782_v63  ;;  %1494 = vmatpush1.bf16.msra.mxu0 %v3378_v56 }
 0x15e   :  { %v367_v5 = vpop.f32.mrf.mxu0  ;;  %v694_v8 = vpop.f32.mrf.mxu1  ;;  %2111 = vmatprep.subr.bf16.mxu0 %v3442_v62 }
 0x15f   :  { %v402_v7 = vpack.c.bf16 %v367_v5, %v363_v55  ;;  %1342 = vmatprep.mubr.bf16.mxu1 %v471_v4  ;;  %v729_v10 = vpack.c.bf16 %v694_v8, %v690_v60  ;;  %1069 = vmatprep.mubr.bf16.mxu0 %v798_v6 }
 0x160   :  { %v369_v14 = vpop.f32.mrf.mxu0  ;;  %1343 = vmatmul.mubr.bf16.gmra.mxu1 %v470_v2  ;;  %v696_v17 = vpop.f32.mrf.mxu1  ;;  %1070 = vmatmul.mubr.bf16.gmra.mxu0 %v797_v9 }
 0x161   :  { %v456_v15 = vadd.bf16 %v4132_v38, %v402_v7  ;;  %v403_v16 = vpack.c.bf16 %v369_v14, %v365_v1  ;;  %v730_v18 = vpack.c.bf16 %v696_v17, %v692_v3  ;;  %v783_v21 = vadd.bf16 %v4135_v42, %v729_v10  ;;  %v4219_v17 = vld [vmem:[#allocation3] sm:$0xff]  }
 0x162   :  { %v373_v20 = vpop.f32.mrf.mxu0  ;;  %v700_v24 = vpop.f32.mrf.mxu1 }
 0x163   :  { %v457_v22 = vadd.bf16 %v4138_v43, %v403_v16  ;;  %v784_v25 = vadd.bf16 %v4141_v46, %v730_v18  ;;  %v472_v27 = vmax.bf16 %v3998_v0, %v456_v15  ;;  %v799_v12 = vmax.bf16 %v3998_v0, %v783_v21  ;;  %v2025_v15 = vld [vmem:[#allocation6 + $0x158] sm:$0xff] }
 0x164   :  { %v375_v26 = vpop.f32.mrf.mxu0  ;;  %v702_v28 = vpop.f32.mrf.mxu1  ;;  %v2026_v16 = vld [vmem:[#allocation6 + $0x178] sm:$0xff] }
 0x165   :  { %v473_v29 = vmax.bf16 %v3998_v0, %v457_v22  ;;  %v800_v31 = vmax.bf16 %v3998_v0, %v784_v25  ;;  %v2023_v21 = vld [vmem:[#allocation6 + $0x118] sm:$0xff] }
 0x166   :  { %v377_v30 = vpop.f32.mrf.mxu0  ;;  %v704_v11 = vpop.f32.mrf.mxu1  ;;  %v2024_v22 = vld [vmem:[#allocation6 + $0x138] sm:$0xff] }
 0x167   :  { %v404_v33 = vpack.c.bf16 %v377_v30, %v373_v20  ;;  %1352 = vmatprep.mubr.bf16.mxu1 %v473_v29  ;;  %v731_v13 = vpack.c.bf16 %v704_v11, %v700_v24  ;;  %1079 = vmatprep.mubr.bf16.mxu0 %v800_v31  ;;  %v3438_v20 = vcombine.high %v2025_v15, %v2026_v16  ;;  %v2019_v29 = vld [vmem:[#allocation6 + $0x98] sm:$0xff] }
 0x168   :  { %v379_v34 = vpop.f32.mrf.mxu0  ;;  %1353 = vmatmul.mubr.bf16.gmra.mxu1 %v472_v27  ;;  %v706_v37 = vpop.f32.mrf.mxu1  ;;  %1080 = vmatmul.mubr.bf16.gmra.mxu0 %v799_v12  ;;  %v3437_v24 = vcombine.low %v2025_v15, %v2026_v16  ;;  %v3436_v25 = vcombine.high %v2023_v21, %v2024_v22  ;;  %v3435_v27 = vcombine.low %v2023_v21, %v2024_v22  ;;  %v2020_v30 = vld [vmem:[#allocation6 + $0xb8] sm:$0xff]  ;;  %v3716_v16 = vld [vmem:[#allocation9 + $0x284] ss:$8 sps:$4 sm:$0xff]  }
 0x169   :  { %v458_v35 = vadd.bf16 %v4132_v38, %v404_v33  ;;  %v405_v36 = vpack.c.bf16 %v379_v34, %v375_v26  ;;  %v732_v39 = vpack.c.bf16 %v706_v37, %v702_v28  ;;  %v785_v41 = vadd.bf16 %v4135_v42, %v731_v13  ;;  %v4223_v26 = vld [vmem:[#allocation3 + $0x8] sm:$0xff]   ;;  %v3671_v31 = vld [vmem:[#allocation9 + $0x274] ss:$8 sps:$4 sm:$0xff]   ;;  %v3669_v11 = vld [vmem:[#allocation9 + $0x270] ss:$8 sps:$4 sm:$0xff]  }
 0x16a   :  { %v383_v40 = vpop.f32.mrf.mxu0  ;;  %v710_v45 = vpop.f32.mrf.mxu1  ;;  %v3432_v12 = vcombine.high %v2019_v29, %v2020_v30  ;;  %1870 = vmatprep.subr.bf16.mxu1 %v3671_v31  ;;  %v2017_v13 = vld [vmem:[#allocation6 + $0x58] sm:$0xff]  ;;  %v3431_v37 = vcombine.low %v2019_v29, %v2020_v30  ;;  %v3835_v21 = vld [vmem:[#allocation3 + $0x30] sm:$0xff]  }
 0x16b   :  { %v459_v44 = vadd.bf16 %v4138_v43, %v405_v36  ;;  %v786_v47 = vadd.bf16 %v4141_v46, %v732_v39  ;;  %v474_v52 = vmax.bf16 %v3998_v0, %v458_v35  ;;  %v801_v60 = vmax.bf16 %v3998_v0, %v785_v41  ;;  %v2018_v34 = vld [vmem:[#allocation6 + $0x78] sm:$0xff]  ;;  %1871 = vmatpush1.bf16.msra.mxu1 %v3669_v11  ;;  %v4227_v35 = vld [vmem:[#allocation3 + $0x10] sm:$0xff]  }
 0x16c   :  { %v385_v51 = vpop.f32.mrf.mxu0  ;;  %v712_v53 = vpop.f32.mrf.mxu1  ;;  %v3674_v36 = vld [vmem:[#allocation9 + $0x264] ss:$8 sps:$4 sm:$0xff]   ;;  %v3672_v39 = vld [vmem:[#allocation9 + $0x260] ss:$8 sps:$4 sm:$0xff]   ;;  %v2015_v41 = vld [vmem:[#allocation6 + $0x18] sm:$0xff] }
 0x16d   :  { %v475_v54 = vmax.bf16 %v3998_v0, %v459_v44  ;;  %v802_v56 = vmax.bf16 %v3998_v0, %v786_v47  ;;  %1872 = vmatprep.subr.bf16.mxu1 %v3674_v36  ;;  %v2016_v44 = vld [vmem:[#allocation6 + $0x38] sm:$0xff]  ;;  %v3429_v47 = vcombine.low %v2017_v13, %v2018_v34 }
 0x16e   :  { %v387_v55 = vpop.f32.mrf.mxu0  ;;  %v714_v59 = vpop.f32.mrf.mxu1  ;;  %v3711_v15 = vld [vmem:[#allocation9 + $0x290] ss:$8 sps:$4 sm:$0xff]  }
 0x16f   :  { %v406_v58 = vpack.c.bf16 %v387_v55, %v383_v40  ;;  %1362 = vmatprep.mubr.bf16.mxu1 %v475_v54  ;;  %v733_v62 = vpack.c.bf16 %v714_v59, %v710_v45  ;;  %1089 = vmatprep.mubr.bf16.mxu0 %v802_v56  ;;  %v3430_v40 = vcombine.high %v2017_v13, %v2018_v34  ;;  %v3677_v45 = vld [vmem:[#allocation9 + $0x254] ss:$8 sps:$4 sm:$0xff]   ;;  %v3680_v54 = vld [vmem:[#allocation9 + $0x244] ss:$8 sps:$4 sm:$0xff]   ;;  %v3678_v56 = vld [vmem:[#allocation9 + $0x240] ss:$8 sps:$4 sm:$0xff]  }
 0x170   :  { %v389_v63 = vpop.f32.mrf.mxu0  ;;  %1363 = vmatmul.mubr.bf16.gmra.mxu1 %v474_v52  ;;  %v716_v3 = vpop.f32.mrf.mxu1  ;;  %1090 = vmatmul.mubr.bf16.gmra.mxu0 %v801_v60  ;;  %v3428_v52 = vcombine.high %v2015_v41, %v2016_v44  ;;  %v3427_v55 = vcombine.low %v2015_v41, %v2016_v44  ;;  %v3681_v59 = vld [vmem:[#allocation9 + $0x230] ss:$8 sps:$4 sm:$0xff]  }
 0x171   :  { %v460_v1 = vadd.bf16 %v4132_v38, %v406_v58  ;;  %v407_v2 = vpack.c.bf16 %v389_v63, %v385_v51  ;;  %v734_v4 = vpack.c.bf16 %v716_v3, %v712_v53  ;;  %v787_v5 = vadd.bf16 %v4135_v42, %v733_v62  ;;  %v2027_v38 = vld [vmem:[#allocation6 + $0x198] sm:$0xff]  ;;  %1873 = vmatpush1.bf16.msra.mxu1 %v3672_v39  ;;  %v3833_v60 = vld [vmem:[#allocation3 + $0x20] sm:$0xff]   ;;  %v3686_v62 = vld [vmem:[#allocation9 + $0x224] ss:$8 sps:$4 sm:$0xff]  }
 0x172   :  { %v2028_v42 = vld [vmem:[#allocation6 + $0x1b8] sm:$0xff]  ;;  %1874 = vmatprep.subr.bf16.mxu1 %v3677_v45  ;;  %v3684_v63 = vld [vmem:[#allocation9 + $0x220] ss:$8 sps:$4 sm:$0xff]   ;;  %v3692_v3 = vld [vmem:[#allocation9 + $0x204] ss:$8 sps:$4 sm:$0xff]  }
 0x173   :  { %v461_v6 = vadd.bf16 %v4138_v43, %v407_v2  ;;  %v788_v7 = vadd.bf16 %v4141_v46, %v734_v4  ;;  %v476_v8 = vmax.bf16 %v3998_v0, %v460_v1  ;;  %v803_v14 = vmax.bf16 %v3998_v0, %v787_v5  ;;  %v3675_v51 = vld [vmem:[#allocation9 + $0x250] ss:$8 sps:$4 sm:$0xff]   ;;  %v3683_v58 = vld [vmem:[#allocation9 + $0x234] ss:$8 sps:$4 sm:$0xff]   ;;  %v3690_v4 = vld [vmem:[#allocation9 + $0x200] ss:$8 sps:$4 sm:$0xff]  }
 0x174   :  { %v3441_v43 = vcombine.low %v4178_v49, %v4180_v50  ;;  %v3440_v46 = vcombine.high %v2027_v38, %v2028_v42  ;;  %v3439_v18 = vcombine.low %v2027_v38, %v2028_v42  ;;  %v2021_v49 = vld [vmem:[#allocation6 + $0xd8] sm:$0xff]  ;;  %v3708_v42 = vld [vmem:[#allocation9 + $0x2a0] ss:$8 sps:$4 sm:$0xff]  }
 0x175   :  { %v477_v9 = vmax.bf16 %v3998_v0, %v461_v6  ;;  %v804_v10 = vmax.bf16 %v3998_v0, %v788_v7  ;;  %v2022_v50 = vld [vmem:[#allocation6 + $0xf8] sm:$0xff]  ;;  %1875 = vmatpush1.bf16.msra.mxu1 %v3675_v51  ;;  %v3698_v7 = vld [vmem:[#allocation9 + $0x2e4] ss:$8 sps:$4 sm:$0xff]  }
 0x176   :  { %v3434_v28 = vcombine.high %v2021_v49, %v2022_v50  ;;  %v3433_v33 = vcombine.low %v2021_v49, %v2022_v50  ;;  %v4231_v53 = vld [vmem:[#allocation3 + $0x18] sm:$0xff]   ;;  %1876 = vmatprep.subr.bf16.mxu1 %v3680_v54 }
 0x177   :  { %1372 = vmatprep.mubr.bf16.mxu1 %v477_v9  ;;  %1099 = vmatprep.mubr.bf16.mxu0 %v804_v10  ;;  %v3689_v1 = vld [vmem:[#allocation9 + $0x214] ss:$8 sps:$4 sm:$0xff]   ;;  %v3687_v2 = vld [vmem:[#allocation9 + $0x210] ss:$8 sps:$4 sm:$0xff]   ;;  %v3704_v10 = vld [vmem:[#allocation9 + $0x2c4] ss:$8 sps:$4 sm:$0xff]  }
 0x178   :  { %1373 = vmatmul.mubr.bf16.gmra.mxu1 %v476_v8  ;;  %1100 = vmatmul.mubr.bf16.gmra.mxu0 %v803_v14  ;;  %v3695_v5 = vld [vmem:[#allocation9 + $0x2f4] ss:$8 sps:$4 sm:$0xff]   ;;  %v3693_v6 = vld [vmem:[#allocation9 + $0x2f0] ss:$8 sps:$4 sm:$0xff]   ;;  %v3696_v8 = vld [vmem:[#allocation9 + $0x2e0] ss:$8 sps:$4 sm:$0xff]  }
 0x179   :  { %1511 = vmatprep.mubr.bf16.mxu0 %v3998_v0  ;;  %1877 = vmatpush1.bf16.msra.mxu1 %v3678_v56  ;;  %v3701_v9 = vld [vmem:[#allocation9 + $0x2d4] ss:$8 sps:$4 sm:$0xff]   ;;  %v3702_v14 = vld [vmem:[#allocation9 + $0x2c0] ss:$8 sps:$4 sm:$0xff]  }
 0x17a   :  { %1878 = vmatprep.subr.bf16.mxu1 %v3683_v58  ;;  %v3707_v38 = vld [vmem:[#allocation9 + $0x2b4] ss:$8 sps:$4 sm:$0xff]  }
 0x17d   :  { %1879 = vmatpush1.bf16.msra.mxu1 %v3681_v59 }
 0x17e   :  { %1880 = vmatprep.subr.bf16.mxu1 %v3686_v62 }
 0x180   :  { %1512 = vmatmul.mubr.bf16.vlgmr.msra.gmra.mxu0 %v4219_v17 }
 0x181   :  { %2112 = vmatpush1.bf16.msra.mxu0 %v3441_v43  ;;  %1521 = vmatprep.mubr.bf16.mxu0 %v3998_v0  ;;  %v3710_v43 = vld [vmem:[#allocation9 + $0x2a4] ss:$8 sps:$4 sm:$0xff]  }
 0x182   :  { %2113 = vmatprep.subr.bf16.mxu0 %v3440_v46  ;;  %1881 = vmatpush1.bf16.msra.mxu1 %v3684_v63  ;;  %v3713_v46 = vld [vmem:[#allocation9 + $0x294] ss:$8 sps:$4 sm:$0xff]  }
 0x183   :  { %1882 = vmatprep.subr.bf16.mxu1 %v3689_v1 }
 0x185   :  { %2114 = vmatpush1.bf16.msra.mxu0 %v3439_v18  ;;  %v3714_v18 = vld [vmem:[#allocation9 + $0x280] ss:$8 sps:$4 sm:$0xff]  }
 0x186   :  { %2115 = vmatprep.subr.bf16.mxu0 %v3438_v20  ;;  %1883 = vmatpush1.bf16.msra.mxu1 %v3687_v2  ;;  %v3719_v20 = vld [vmem:[#allocation9 + $0x374] ss:$8 sps:$4 sm:$0xff]  }
 0x187   :  { %1884 = vmatprep.subr.bf16.mxu1 %v3692_v3 }
 0x188   :  { %1522 = vmatmul.mubr.bf16.gmra.mxu0 %v4223_v26 }
 0x189   :  { %1531 = vmatprep.mubr.bf16.mxu0 %v3998_v0  ;;  %2116 = vmatpush1.bf16.msra.mxu0 %v3437_v24 }
 0x18a   :  { %2117 = vmatprep.subr.bf16.mxu0 %v3436_v25  ;;  %1885 = vmatpush1.bf16.msra.mxu1 %v3690_v4 }
 0x18b   :  { %1886 = vmatprep.subr.bf16.mxu1 %v3695_v5 }
 0x18d   :  { %2118 = vmatpush1.bf16.msra.mxu0 %v3435_v27 }
 0x18e   :  { %2119 = vmatprep.subr.bf16.mxu0 %v3434_v28  ;;  %1887 = vmatpush2.bf16.msra.mxu1 %v3693_v6 }
 0x18f   :  { %1888 = vmatprep.subr.bf16.mxu1 %v3698_v7 }
 0x190   :  { %1532 = vmatmul.mubr.bf16.gmra.mxu0 %v4227_v35 }
 0x191   :  { %1541 = vmatprep.mubr.bf16.mxu0 %v3998_v0  ;;  %2120 = vmatpush1.bf16.msra.mxu0 %v3433_v33 }
 0x192   :  { %2121 = vmatprep.subr.bf16.mxu0 %v3432_v12  ;;  %1889 = vmatpush2.bf16.msra.mxu1 %v3696_v8 }
 0x193   :  { %1890 = vmatprep.subr.bf16.mxu1 %v3701_v9 }
 0x195   :  { %2122 = vmatpush1.bf16.msra.mxu0 %v3431_v37 }
 0x196   :  { %2123 = vmatprep.subr.bf16.mxu0 %v3430_v40 }
 0x198   :  { %1542 = vmatmul.mubr.bf16.gmra.mxu0 %v4231_v53 }
 0x199   :  { %1551 = vmatprep.mubr.bf16.mxu0 %v3998_v0  ;;  %2124 = vmatpush1.bf16.msra.mxu0 %v3429_v47 }
 0x19a   :  { %2125 = vmatprep.subr.bf16.mxu0 %v3428_v52 }
 0x19d   :  { %2126 = vmatpush1.bf16.msra.mxu0 %v3427_v55 }
 0x1a0   :  { %1552 = vmatmul.mubr.bf16.gmra.mxu0 %v3833_v60 }
 0x1a1   :  { %1561 = vmatprep.mubr.bf16.mxu0 %v3998_v0 }
 0x1a8   :  { %1562 = vmatmul.mubr.bf16.gmra.mxu0 %v4095_v48  ;;  %v3699_v48 = vld [vmem:[#allocation9 + $0x2d0] ss:$8 sps:$4 sm:$0xff]  }
 0x1a9   :  { %1571 = vmatprep.mubr.bf16.mxu0 %v3998_v0  ;;  %1891 = vmatpush2.bf16.msra.mxu1 %v3699_v48 }
 0x1aa   :  { %1892 = vmatprep.subr.bf16.mxu1 %v3704_v10 }
 0x1ad   :  { %1893 = vmatpush2.bf16.msra.mxu1 %v3702_v14 }
 0x1ae   :  { %1894 = vmatprep.subr.bf16.mxu1 %v3707_v38 }
 0x1b0   :  { %1572 = vmatmul.mubr.bf16.gmra.mxu0 %v4101_v57  ;;  %v3705_v57 = vld [vmem:[#allocation9 + $0x2b0] ss:$8 sps:$4 sm:$0xff]  }
 0x1b1   :  { %1581 = vmatprep.mubr.bf16.mxu0 %v3998_v0  ;;  %1895 = vmatpush2.bf16.msra.mxu1 %v3705_v57 }
 0x1b2   :  { %1896 = vmatprep.subr.bf16.mxu1 %v3710_v43 }
 0x1b5   :  { %1897 = vmatpush2.bf16.msra.mxu1 %v3708_v42 }
 0x1b6   :  { %1898 = vmatprep.subr.bf16.mxu1 %v3713_v46 }
 0x1b8   :  { %1582 = vmatmul.mubr.bf16.gmra.mxu0 %v4107_v61 }
 0x1b9   :  { %2143 = vmatprep.mubr.bf16.mxu0 %v3998_v0  ;;  %1899 = vmatpush2.bf16.msra.mxu1 %v3711_v15 }
 0x1ba   :  { %1900 = vmatprep.subr.bf16.mxu1 %v3716_v16 }
 0x1bd   :  { %1901 = vmatpush2.bf16.msra.mxu1 %v3714_v18 }
 0x1be   :  { %2502 = vmatprep.subr.bf16.mxu1 %v3719_v20 }
 0x1c0   :  { %2144 = vmatmul.mubr.bf16.vlgmr.msra.gmra.mxu0 %v4219_v17  ;;  %v3834_v17 = vld [vmem:[#allocation3 + $0x28] sm:$0xff]  }
 0x1c1   :  { %2153 = vmatprep.mubr.bf16.mxu0 %v3998_v0 }
 0x1c8   :  { %2154 = vmatmul.mubr.bf16.gmra.mxu0 %v4223_v26 }
 0x1c9   :  { %2163 = vmatprep.mubr.bf16.mxu0 %v3998_v0 }
 0x1d0   :  { %2164 = vmatmul.mubr.bf16.gmra.mxu0 %v4227_v35 }
 0x1d1   :  { %2173 = vmatprep.mubr.bf16.mxu0 %v3998_v0 }
 0x1d8   :  { %2174 = vmatmul.mubr.bf16.gmra.mxu0 %v4231_v53 }
 0x1d9   :  { %2183 = vmatprep.mubr.bf16.mxu0 %v3998_v0 }
 0x1e0   :  { %2184 = vmatmul.mubr.bf16.gmra.mxu0 %v3833_v60 }
 0x1e1   :  { %2193 = vmatprep.mubr.bf16.mxu0 %v3998_v0 }
 0x1e8   :  { %2194 = vmatmul.mubr.bf16.gmra.mxu0 %v3834_v17 }
 0x1e9   :  { %2203 = vmatprep.mubr.bf16.mxu0 %v3998_v0 }
 0x1f0   :  { %2204 = vmatmul.mubr.bf16.gmra.mxu0 %v3835_v21 }
 0x1f1   :  { %2213 = vmatprep.mubr.bf16.mxu0 %v3998_v0 }
 0x1f8   :  { %2214 = vmatmul.mubr.bf16.gmra.mxu0 %v4107_v61 }
 0x200   :  { %v1304_v22 = vpop.f32.mrf.mxu1  ;;  %v1031_v24 = vpop.f32.mrf.mxu0 }
 0x201   :  { %v4254_v25 = vadd.f32 %v1304_v22, %v1031_v24 }
 0x202   :  { %v1306_v49 = vpop.f32.mrf.mxu1  ;;  %v1033_v50 = vpop.f32.mrf.mxu0 }
 0x203   :  { %v4256_v26 = vadd.f32 %v1306_v49, %v1033_v50 }
 0x204   :  { %v1308_v27 = vpop.f32.mrf.mxu1  ;;  %v1035_v28 = vpop.f32.mrf.mxu0 }
 0x205   :  { %v4258_v29 = vadd.f32 %v1308_v27, %v1035_v28 }
 0x206   :  { %v1310_v30 = vpop.f32.mrf.mxu1  ;;  %v1037_v31 = vpop.f32.mrf.mxu0 }
 0x207   :  { %v4260_v33 = vadd.f32 %v1310_v30, %v1037_v31 }
 0x208   :  { %v1314_v11 = vpop.f32.mrf.mxu1  ;;  %v1041_v12 = vpop.f32.mrf.mxu0 }
 0x209   :  { %v4262_v13 = vadd.f32 %v1314_v11, %v1041_v12 }
 0x20a   :  { %v1316_v61 = vpop.f32.mrf.mxu1  ;;  %v1043_v34 = vpop.f32.mrf.mxu0 }
 0x20b   :  { %v4264_v35 = vadd.f32 %v1316_v61, %v1043_v34 }
 0x20c   :  { %v1318_v36 = vpop.f32.mrf.mxu1  ;;  %v1045_v37 = vpop.f32.mrf.mxu0 }
 0x20d   :  { %v4266_v39 = vadd.f32 %v1318_v36, %v1045_v37 }
 0x20e   :  { %v1320_v40 = vpop.f32.mrf.mxu1  ;;  %v1047_v41 = vpop.f32.mrf.mxu0 }
 0x20f   :  { %v4268_v44 = vadd.f32 %v1320_v40, %v1047_v41 }
 0x210   :  { %v1324_v45 = vpop.f32.mrf.mxu1  ;;  %v1051_v47 = vpop.f32.mrf.mxu0 }
 0x211   :  { %v4270_v51 = vadd.f32 %v1324_v45, %v1051_v47 }
 0x212   :  { %v1326_v52 = vpop.f32.mrf.mxu1  ;;  %v1053_v53 = vpop.f32.mrf.mxu0 }
 0x213   :  { %v4272_v54 = vadd.f32 %v1326_v52, %v1053_v53 }
 0x214   :  { %v1328_v55 = vpop.f32.mrf.mxu1  ;;  %v1055_v56 = vpop.f32.mrf.mxu0 }
 0x215   :  { %v4274_v58 = vadd.f32 %v1328_v55, %v1055_v56 }
 0x216   :  { %v1330_v59 = vpop.f32.mrf.mxu1  ;;  %v1057_v60 = vpop.f32.mrf.mxu0 }
 0x217   :  { %v4276_v62 = vadd.f32 %v1330_v59, %v1057_v60  ;;  %v3394_v60 = vld.sshfl [vmem:[#allocation8 + $0x4] sm:$0x11 pattern:$0x75316420] }
 0x218   :  { %v1334_v63 = vpop.f32.mrf.mxu1  ;;  %v1061_v1 = vpop.f32.mrf.mxu0 }
 0x219   :  { %v4278_v2 = vadd.f32 %v1334_v63, %v1061_v1 }
 0x21a   :  { %v1336_v3 = vpop.f32.mrf.mxu1  ;;  %v1063_v4 = vpop.f32.mrf.mxu0 }
 0x21b   :  { %v4280_v5 = vadd.f32 %v1336_v3, %v1063_v4 }
 0x21c   :  { %v1338_v6 = vpop.f32.mrf.mxu1  ;;  %v1065_v7 = vpop.f32.mrf.mxu0 }
 0x21d   :  { %v4282_v8 = vadd.f32 %v1338_v6, %v1065_v7  ;;  %v1617_v7 = vcombine.high %v3394_v60, %v3394_v60 }
 0x21e   :  { %v1340_v9 = vpop.f32.mrf.mxu1  ;;  %v1067_v48 = vpop.f32.mrf.mxu0 }
 0x21f   :  { %v4284_v10 = vadd.f32 %v1340_v9, %v1067_v48 }
 0x220   :  { %v1344_v14 = vpop.f32.mrf.mxu1  ;;  %v1071_v38 = vpop.f32.mrf.mxu0 }
 0x221   :  { %v4286_v57 = vadd.f32 %v1344_v14, %v1071_v38 }
 0x222   :  { %v1346_v42 = vpop.f32.mrf.mxu1  ;;  %v1073_v43 = vpop.f32.mrf.mxu0 }
 0x223   :  { %v4288_v46 = vadd.f32 %v1346_v42, %v1073_v43  ;;  %v1624_v42 = vrot.slane %v3394_v60, %v4122_v23  ;;  %v3722_v60 = vld [vmem:[#allocation9 + $0x364] ss:$8 sps:$4 sm:$0xff]  }
 0x224   :  { %v1348_v15 = vpop.f32.mrf.mxu1  ;;  %v1075_v16 = vpop.f32.mrf.mxu0 }
 0x225   :  { %v4290_v18 = vadd.f32 %v1348_v15, %v1075_v16  ;;  %v1631_v15 = vrot.slane %v1617_v7, %v4122_v23  ;;  %v3720_v7 = vld [vmem:[#allocation9 + $0x360] ss:$8 sps:$4 sm:$0xff]  }
 0x226   :  { %v1350_v20 = vpop.f32.mrf.mxu1  ;;  %v1077_v17 = vpop.f32.mrf.mxu0 }
 0x227   :  { %v4292_v21 = vadd.f32 %v1350_v20, %v1077_v17  ;;  %v1633_v17 = vpack.i.b16 %v1624_v42, %v1624_v42 }
 0x228   :  { %v1354_v22 = vpop.f32.mrf.mxu1  ;;  %v1081_v24 = vpop.f32.mrf.mxu0 }
 0x229   :  { %v4294_v49 = vadd.f32 %v1354_v22, %v1081_v24  ;;  %v1640_v22 = vpack.i.b16 %v1631_v15, %v1631_v15 }
 0x22a   :  { %v1356_v50 = vpop.f32.mrf.mxu1  ;;  %v1083_v27 = vpop.f32.mrf.mxu0 }
 0x22b   :  { %v4296_v28 = vadd.f32 %v1356_v50, %v1083_v27  ;;  %v4321_v27 = vrot.slane %v1633_v17, %v4129_v32  ;;  %v3723_v17 = vld [vmem:[#allocation9 + $0x350] ss:$8 sps:$4 sm:$0xff]  }
 0x22c   :  { %v1358_v30 = vpop.f32.mrf.mxu1  ;;  %v1085_v31 = vpop.f32.mrf.mxu0 }
 0x22d   :  { %v4298_v11 = vadd.f32 %v1358_v30, %v1085_v31  ;;  %v4324_v31 = vrot.slane %v1640_v22, %v4129_v32 }
 0x22e   :  { %v1360_v12 = vpop.f32.mrf.mxu1  ;;  %v1087_v61 = vpop.f32.mrf.mxu0 }
 0x22f   :  { %v4300_v34 = vadd.f32 %v1360_v12, %v1087_v61 }
 0x230   :  { %v1364_v36 = vpop.f32.mrf.mxu1  ;;  %v1091_v37 = vpop.f32.mrf.mxu0 }
 0x231   :  { %v4302_v40 = vadd.f32 %v1364_v36, %v1091_v37 }
 0x232   :  { %v1366_v41 = vpop.f32.mrf.mxu1  ;;  %v1093_v45 = vpop.f32.mrf.mxu0 }
 0x233   :  { %v4304_v47 = vadd.f32 %v1366_v41, %v1093_v45 }
 0x234   :  { %v1368_v52 = vpop.f32.mrf.mxu1  ;;  %v1095_v53 = vpop.f32.mrf.mxu0 }
 0x235   :  { %v4306_v55 = vadd.f32 %v1368_v52, %v1095_v53  ;;  %v3717_v53 = vld [vmem:[#allocation9 + $0x370] ss:$8 sps:$4 sm:$0xff]  }
 0x236   :  { %v1370_v56 = vpop.f32.mrf.mxu1  ;;  %v1097_v59 = vpop.f32.mrf.mxu0 }
 0x237   :  { %v4308_v63 = vadd.f32 %v1370_v56, %v1097_v59 }
 0x238   :  { %v1374_v1 = vpop.f32.mrf.mxu1  ;;  %v1101_v3 = vpop.f32.mrf.mxu0 }
 0x239   :  { %v4310_v4 = vadd.f32 %v1374_v1, %v1101_v3 }
 0x23a   :  { %v1376_v6 = vpop.f32.mrf.mxu1  ;;  %v1103_v9 = vpop.f32.mrf.mxu0 }
 0x23b   :  { %v4312_v48 = vadd.f32 %v1376_v6, %v1103_v9 }
 0x23c   :  { %v1378_v14 = vpop.f32.mrf.mxu1  ;;  %v1105_v38 = vpop.f32.mrf.mxu0 }
 0x23d   :  { %v4315_v43 = vadd.f32 %v1378_v14, %v1105_v38  ;;  %v3725_v38 = vld [vmem:[#allocation9 + $0x354] ss:$8 sps:$4 sm:$0xff]  }
 0x23e   :  { %v4318_v16 = vpop.f32.mrf.mxu0 }
 0x240   :  { %v1513_v20 = vpop.f32.mrf.mxu0 }
 0x242   :  { %v1515_v24 = vpop.f32.mrf.mxu0 }
 0x244   :  { %v1517_v50 = vpop.f32.mrf.mxu0 }
 0x245   :  { %v1592_v30 = vpack.c.bf16 %v1517_v50, %v1513_v20  ;;  %v3728_v50 = vld [vmem:[#allocation9 + $0x344] ss:$8 sps:$4 sm:$0xff]  }
 0x246   :  { %v1519_v12 = vpop.f32.mrf.mxu0 }
 0x247   :  { %v1593_v61 = vpack.c.bf16 %v1519_v12, %v1515_v24  ;;  %v1646_v36 = vadd.bf16 %v4321_v27, %v1592_v30 }
 0x248   :  { %v1523_v37 = vpop.f32.mrf.mxu0 }
 0x249   :  { %v1647_v41 = vadd.bf16 %v4324_v31, %v1593_v61  ;;  %v1662_v56 = vmax.bf16 %v3998_v0, %v1646_v36  ;;  %v3726_v36 = vld [vmem:[#allocation9 + $0x340] ss:$8 sps:$4 sm:$0xff]  }
 0x24a   :  { %v1525_v45 = vpop.f32.mrf.mxu0 }
 0x24b   :  { %v1663_v52 = vmax.bf16 %v3998_v0, %v1647_v41 }
 0x24c   :  { %v1527_v59 = vpop.f32.mrf.mxu0 }
 0x24d   :  { %v1594_v1 = vpack.c.bf16 %v1527_v59, %v1523_v37  ;;  %1902 = vmatprep.mubr.bf16.mxu1 %v1663_v52  ;;  %v3729_v59 = vld [vmem:[#allocation9 + $0x330] ss:$8 sps:$4 sm:$0xff]  }
 0x24e   :  { %v1529_v3 = vpop.f32.mrf.mxu0  ;;  %1903 = vmatmul.mubr.bf16.vlgmr.msra.gmra.mxu1 %v1662_v56 }
 0x24f   :  { %v1595_v6 = vpack.c.bf16 %v1529_v3, %v1525_v45  ;;  %2503 = vmatpush1.bf16.msra.mxu1 %v3717_v53  ;;  %v1648_v9 = vadd.bf16 %v4321_v27, %v1594_v1  ;;  %v3731_v45 = vld [vmem:[#allocation9 + $0x334] ss:$8 sps:$4 sm:$0xff]   ;;  %v3734_v3 = vld [vmem:[#allocation9 + $0x324] ss:$8 sps:$4 sm:$0xff]  }
 0x250   :  { %v1533_v14 = vpop.f32.mrf.mxu0  ;;  %2504 = vmatprep.subr.bf16.mxu1 %v3722_v60 }
 0x251   :  { %v1649_v42 = vadd.bf16 %v4324_v31, %v1595_v6  ;;  %v1664_v24 = vmax.bf16 %v3998_v0, %v1648_v9 }
 0x252   :  { %v1535_v15 = vpop.f32.mrf.mxu0 }
 0x253   :  { %2505 = vmatpush1.bf16.msra.mxu1 %v3720_v7  ;;  %v1665_v20 = vmax.bf16 %v3998_v0, %v1649_v42 }
 0x254   :  { %v1537_v22 = vpop.f32.mrf.mxu0  ;;  %2506 = vmatprep.subr.bf16.mxu1 %v3725_v38 }
 0x255   :  { %v1596_v30 = vpack.c.bf16 %v1537_v22, %v1533_v14  ;;  %1912 = vmatprep.mubr.bf16.mxu1 %v1665_v20  ;;  %v3732_v14 = vld [vmem:[#allocation9 + $0x320] ss:$8 sps:$4 sm:$0xff]  }
 0x256   :  { %v1539_v12 = vpop.f32.mrf.mxu0  ;;  %1913 = vmatmul.mubr.bf16.gmra.mxu1 %v1664_v24  ;;  %v3735_v24 = vld [vmem:[#allocation9 + $0x310] ss:$8 sps:$4 sm:$0xff]  }
 0x257   :  { %v1597_v61 = vpack.c.bf16 %v1539_v12, %v1535_v15  ;;  %2507 = vmatpush1.bf16.msra.mxu1 %v3723_v17  ;;  %v1650_v37 = vadd.bf16 %v4321_v27, %v1596_v30  ;;  %v3737_v15 = vld [vmem:[#allocation9 + $0x314] ss:$8 sps:$4 sm:$0xff]   ;;  %v3740_v12 = vld [vmem:[#allocation9 + $0x304] ss:$8 sps:$4 sm:$0xff]  }
 0x258   :  { %v1543_v41 = vpop.f32.mrf.mxu0  ;;  %2508 = vmatprep.subr.bf16.mxu1 %v3728_v50 }
 0x259   :  { %v1651_v52 = vadd.bf16 %v4324_v31, %v1597_v61  ;;  %v1666_v1 = vmax.bf16 %v3998_v0, %v1650_v37 }
 0x25a   :  { %v1545_v53 = vpop.f32.mrf.mxu0 }
 0x25b   :  { %2509 = vmatpush1.bf16.msra.mxu1 %v3726_v36  ;;  %v1667_v56 = vmax.bf16 %v3998_v0, %v1651_v52 }
 0x25c   :  { %v1547_v60 = vpop.f32.mrf.mxu0  ;;  %2510 = vmatprep.subr.bf16.mxu1 %v3731_v45 }
 0x25d   :  { %v1598_v6 = vpack.c.bf16 %v1547_v60, %v1543_v41  ;;  %1922 = vmatprep.mubr.bf16.mxu1 %v1667_v56  ;;  %v3738_v41 = vld [vmem:[#allocation9 + $0x300] ss:$8 sps:$4 sm:$0xff]  }
 0x25e   :  { %v1549_v7 = vpop.f32.mrf.mxu0  ;;  %1923 = vmatmul.mubr.bf16.gmra.mxu1 %v1666_v1  ;;  %v3741_v1 = vld [vmem:[#allocation9 + $0x3f0] ss:$8 sps:$4 sm:$0xff]  }
 0x25f   :  { %v1599_v9 = vpack.c.bf16 %v1549_v7, %v1545_v53  ;;  %2511 = vmatpush1.bf16.msra.mxu1 %v3729_v59  ;;  %v1652_v38 = vadd.bf16 %v4321_v27, %v1598_v6  ;;  %v3743_v53 = vld [vmem:[#allocation9 + $0x3f4] ss:$8 sps:$4 sm:$0xff]   ;;  %v3746_v7 = vld [vmem:[#allocation9 + $0x3e4] ss:$8 sps:$4 sm:$0xff]  }
 0x260   :  { %v1553_v42 = vpop.f32.mrf.mxu0  ;;  %2512 = vmatprep.subr.bf16.mxu1 %v3734_v3 }
 0x261   :  { %v1653_v20 = vadd.bf16 %v4324_v31, %v1599_v9  ;;  %v1668_v30 = vmax.bf16 %v3998_v0, %v1652_v38 }
 0x262   :  { %v1555_v17 = vpop.f32.mrf.mxu0 }
 0x263   :  { %2513 = vmatpush1.bf16.msra.mxu1 %v3732_v14  ;;  %v1669_v22 = vmax.bf16 %v3998_v0, %v1653_v20 }
 0x264   :  { %v1557_v50 = vpop.f32.mrf.mxu0  ;;  %2514 = vmatprep.subr.bf16.mxu1 %v3737_v15 }
 0x265   :  { %v1600_v61 = vpack.c.bf16 %v1557_v50, %v1553_v42  ;;  %1932 = vmatprep.mubr.bf16.mxu1 %v1669_v22  ;;  %v3744_v42 = vld [vmem:[#allocation9 + $0x3e0] ss:$8 sps:$4 sm:$0xff]  }
 0x266   :  { %v1559_v36 = vpop.f32.mrf.mxu0  ;;  %1933 = vmatmul.mubr.bf16.gmra.mxu1 %v1668_v30  ;;  %v3747_v30 = vld [vmem:[#allocation9 + $0x3d0] ss:$8 sps:$4 sm:$0xff]  }
 0x267   :  { %v1601_v37 = vpack.c.bf16 %v1559_v36, %v1555_v17  ;;  %2515 = vmatpush1.bf16.msra.mxu1 %v3735_v24  ;;  %v1654_v45 = vadd.bf16 %v4321_v27, %v1600_v61  ;;  %v3749_v17 = vld [vmem:[#allocation9 + $0x3d4] ss:$8 sps:$4 sm:$0xff]   ;;  %v3752_v36 = vld [vmem:[#allocation9 + $0x3c4] ss:$8 sps:$4 sm:$0xff]  }
 0x268   :  { %v1563_v52 = vpop.f32.mrf.mxu0  ;;  %2516 = vmatprep.subr.bf16.mxu1 %v3740_v12 }
 0x269   :  { %v1655_v56 = vadd.bf16 %v4324_v31, %v1601_v37  ;;  %v1670_v6 = vmax.bf16 %v3998_v0, %v1654_v45  ;;  %v3443_v45 = vld.sshfl [vmem:[#allocation8 + $0x6] sm:$0x11 pattern:$0x75316420] }
 0x26a   :  { %v1565_v59 = vpop.f32.mrf.mxu0 }
 0x26b   :  { %2517 = vmatpush1.bf16.msra.mxu1 %v3738_v41  ;;  %v1671_v60 = vmax.bf16 %v3998_v0, %v1655_v56 }
 0x26c   :  { %v1567_v3 = vpop.f32.mrf.mxu0  ;;  %2518 = vmatprep.subr.bf16.mxu1 %v3743_v53  ;;  %v3750_v53 = vld [vmem:[#allocation9 + $0x3c0] ss:$8 sps:$4 sm:$0xff]  }
 0x26d   :  { %v1602_v9 = vpack.c.bf16 %v1567_v3, %v1563_v52  ;;  %1942 = vmatprep.mubr.bf16.mxu1 %v1671_v60  ;;  %v3755_v60 = vld [vmem:[#allocation9 + $0x3b4] ss:$8 sps:$4 sm:$0xff]   ;;  %v2249_v3 = vcombine.high %v3443_v45, %v3443_v45 }
 0x26e   :  { %v1569_v14 = vpop.f32.mrf.mxu0  ;;  %1943 = vmatmul.mubr.bf16.gmra.mxu1 %v1670_v6 }
 0x26f   :  { %v1603_v38 = vpack.c.bf16 %v1569_v14, %v1565_v59  ;;  %2519 = vmatpush2.bf16.msra.mxu1 %v3741_v1  ;;  %v1656_v15 = vadd.bf16 %v4321_v27, %v1602_v9  ;;  %v3753_v9 = vld [vmem:[#allocation9 + $0x3b0] ss:$8 sps:$4 sm:$0xff]  }
 0x270   :  { %v1573_v20 = vpop.f32.mrf.mxu0  ;;  %2520 = vmatprep.subr.bf16.mxu1 %v3746_v7 }
 0x271   :  { %v1657_v22 = vadd.bf16 %v4324_v31, %v1603_v38  ;;  %v1672_v61 = vmax.bf16 %v3998_v0, %v1656_v15  ;;  %v2256_v15 = vrot.slane %v3443_v45, %v4122_v23 }
 0x272   :  { %v1575_v24 = vpop.f32.mrf.mxu0 }
 0x273   :  { %2521 = vmatpush2.bf16.msra.mxu1 %v3744_v42  ;;  %v1673_v50 = vmax.bf16 %v3998_v0, %v1657_v22  ;;  %v3758_v42 = vld [vmem:[#allocation9 + $0x3a4] ss:$8 sps:$4 sm:$0xff]  }
 0x274   :  { %v1577_v12 = vpop.f32.mrf.mxu0  ;;  %2522 = vmatprep.subr.bf16.mxu1 %v3749_v17  ;;  %v2263_v17 = vrot.slane %v2249_v3, %v4122_v23 }
 0x275   :  { %v1604_v37 = vpack.c.bf16 %v1577_v12, %v1573_v20  ;;  %1952 = vmatprep.mubr.bf16.mxu1 %v1673_v50  ;;  %v3756_v50 = vld [vmem:[#allocation9 + $0x3a0] ss:$8 sps:$4 sm:$0xff]  }
 0x276   :  { %v1579_v41 = vpop.f32.mrf.mxu0  ;;  %1953 = vmatmul.mubr.bf16.gmra.mxu1 %v1672_v61  ;;  %v2265_v61 = vpack.i.b16 %v2256_v15, %v2256_v15 }
 0x277   :  { %v1605_v52 = vpack.c.bf16 %v1579_v41, %v1575_v24  ;;  %2523 = vmatpush2.bf16.msra.mxu1 %v3747_v30  ;;  %v1658_v56 = vadd.bf16 %v4321_v27, %v1604_v37  ;;  %v2272_v41 = vpack.i.b16 %v2263_v17, %v2263_v17 }
 0x278   :  { %v1583_v59 = vpop.f32.mrf.mxu0  ;;  %2524 = vmatprep.subr.bf16.mxu1 %v3752_v36  ;;  %v3761_v36 = vld [vmem:[#allocation9 + $0x394] ss:$8 sps:$4 sm:$0xff]  }
 0x279   :  { %v1659_v1 = vadd.bf16 %v4324_v31, %v1605_v52  ;;  %v1674_v38 = vmax.bf16 %v3998_v0, %v1658_v56  ;;  %v4360_v56 = vrot.slane %v2265_v61, %v4129_v32 }
 0x27a   :  { %v1585_v6 = vpop.f32.mrf.mxu0 }
 0x27b   :  { %2525 = vmatpush2.bf16.msra.mxu1 %v3750_v53  ;;  %v1675_v7 = vmax.bf16 %v3998_v0, %v1659_v1  ;;  %v3759_v53 = vld [vmem:[#allocation9 + $0x390] ss:$8 sps:$4 sm:$0xff]   ;;  %v4364_v1 = vrot.slane %v2272_v41, %v4129_v32 }
 0x27c   :  { %v1587_v14 = vpop.f32.mrf.mxu0  ;;  %2526 = vmatprep.subr.bf16.mxu1 %v3755_v60 }
 0x27d   :  { %v1606_v20 = vpack.c.bf16 %v1587_v14, %v1583_v59  ;;  %1962 = vmatprep.mubr.bf16.mxu1 %v1675_v7 }
 0x27e   :  { %v1589_v22 = vpop.f32.mrf.mxu0  ;;  %1963 = vmatmul.mubr.bf16.gmra.mxu1 %v1674_v38 }
 0x27f   :  { %v1607_v24 = vpack.c.bf16 %v1589_v22, %v1585_v6  ;;  %2527 = vmatpush2.bf16.msra.mxu1 %v3753_v9  ;;  %v1660_v30 = vadd.bf16 %v4321_v27, %v1606_v20  ;;  %v3764_v27 = vld [vmem:[#allocation9 + $0x384] ss:$8 sps:$4 sm:$0xff]   ;;  %v3762_v6 = vld [vmem:[#allocation9 + $0x380] ss:$8 sps:$4 sm:$0xff]  }
 0x280   :  { %v2145_v12 = vpop.f32.mrf.mxu0  ;;  %2528 = vmatprep.subr.bf16.mxu1 %v3758_v42 }
 0x281   :  { %v1661_v37 = vadd.bf16 %v4324_v31, %v1607_v24  ;;  %v1676_v59 = vmax.bf16 %v3998_v0, %v1660_v30 }
 0x282   :  { %v2147_v52 = vpop.f32.mrf.mxu0 }
 0x283   :  { %2529 = vmatpush2.bf16.msra.mxu1 %v3756_v50  ;;  %v1677_v45 = vmax.bf16 %v3998_v0, %v1661_v37 }
 0x284   :  { %v2149_v23 = vpop.f32.mrf.mxu0  ;;  %2530 = vmatprep.subr.bf16.mxu1 %v3761_v36 }
 0x285   :  { %v2224_v60 = vpack.c.bf16 %v2149_v23, %v2145_v12  ;;  %1972 = vmatprep.mubr.bf16.mxu1 %v1677_v45 }
 0x286   :  { %1973 = vmatmul.mubr.bf16.gmra.mxu1 %v1676_v59  ;;  %v2151_v31 = vpop.f32.mrf.mxu0 }
 0x287   :  { %v2225_v3 = vpack.c.bf16 %v2151_v31, %v2147_v52  ;;  %2531 = vmatpush2.bf16.msra.mxu1 %v3759_v53  ;;  %v2278_v7 = vadd.bf16 %v4360_v56, %v2224_v60 }
 0x288   :  { %v2155_v9 = vpop.f32.mrf.mxu0  ;;  %2532 = vmatprep.subr.bf16.mxu1 %v3764_v27 }
 0x289   :  { %v2279_v14 = vadd.bf16 %v4364_v1, %v2225_v3  ;;  %v2294_v15 = vmax.bf16 %v3998_v0, %v2278_v7 }
 0x28a   :  { %v2157_v38 = vpop.f32.mrf.mxu0 }
 0x28b   :  { %2533 = vmatpush2.bf16.msra.mxu1 %v3762_v6  ;;  %v2295_v42 = vmax.bf16 %v3998_v0, %v2279_v14 }
 0x28c   :  { %v2159_v20 = vpop.f32.mrf.mxu0 }
 0x28d   :  { %v2226_v17 = vpack.c.bf16 %v2159_v20, %v2155_v9  ;;  %2534 = vmatprep.mubr.bf16.mxu1 %v2295_v42 }
 0x28e   :  { %v2161_v22 = vpop.f32.mrf.mxu0  ;;  %2535 = vmatmul.mubr.bf16.vlgmr.msra.gmra.mxu1 %v2294_v15 }
 0x28f   :  { %v2227_v24 = vpack.c.bf16 %v2161_v22, %v2157_v38  ;;  %v2280_v50 = vadd.bf16 %v4360_v56, %v2226_v17 }
 0x290   :  { %v2165_v30 = vpop.f32.mrf.mxu0 }
 0x291   :  { %v2281_v12 = vadd.bf16 %v4364_v1, %v2227_v24  ;;  %v2296_v41 = vmax.bf16 %v3998_v0, %v2280_v50 }
 0x292   :  { %v2167_v61 = vpop.f32.mrf.mxu0 }
 0x293   :  { %v2297_v36 = vmax.bf16 %v3998_v0, %v2281_v12 }
 0x294   :  { %v2169_v37 = vpop.f32.mrf.mxu0 }
 0x295   :  { %v2228_v52 = vpack.c.bf16 %v2169_v37, %v2165_v30  ;;  %2544 = vmatprep.mubr.bf16.mxu1 %v2297_v36 }
 0x296   :  { %v2171_v45 = vpop.f32.mrf.mxu0  ;;  %2545 = vmatmul.mubr.bf16.gmra.mxu1 %v2296_v41 }
 0x297   :  { %v2229_v53 = vpack.c.bf16 %v2171_v45, %v2167_v61  ;;  %v2282_v23 = vadd.bf16 %v4360_v56, %v2228_v52 }
 0x298   :  { %v2175_v59 = vpop.f32.mrf.mxu0 }
 0x299   :  { %v2283_v27 = vadd.bf16 %v4364_v1, %v2229_v53  ;;  %v2298_v6 = vmax.bf16 %v3998_v0, %v2282_v23 }
 0x29a   :  { %v2177_v60 = vpop.f32.mrf.mxu0 }
 0x29b   :  { %v2299_v31 = vmax.bf16 %v3998_v0, %v2283_v27 }
 0x29c   :  { %v2179_v3 = vpop.f32.mrf.mxu0 }
 0x29d   :  { %v2230_v7 = vpack.c.bf16 %v2179_v3, %v2175_v59  ;;  %2554 = vmatprep.mubr.bf16.mxu1 %v2299_v31 }
 0x29e   :  { %v2181_v9 = vpop.f32.mrf.mxu0  ;;  %2555 = vmatmul.mubr.bf16.gmra.mxu1 %v2298_v6 }
 0x29f   :  { %v2231_v14 = vpack.c.bf16 %v2181_v9, %v2177_v60  ;;  %v2284_v38 = vadd.bf16 %v4360_v56, %v2230_v7 }
 0x2a0   :  { %v2185_v42 = vpop.f32.mrf.mxu0 }
 0x2a1   :  { %v2285_v15 = vadd.bf16 %v4364_v1, %v2231_v14  ;;  %v2300_v24 = vmax.bf16 %v3998_v0, %v2284_v38 }
 0x2a2   :  { %v2187_v20 = vpop.f32.mrf.mxu0 }
 0x2a3   :  { %v2301_v17 = vmax.bf16 %v3998_v0, %v2285_v15 }
 0x2a4   :  { %v2189_v22 = vpop.f32.mrf.mxu0 }
 0x2a5   :  { %v2232_v50 = vpack.c.bf16 %v2189_v22, %v2185_v42  ;;  %2564 = vmatprep.mubr.bf16.mxu1 %v2301_v17 }
 0x2a6   :  { %v2191_v30 = vpop.f32.mrf.mxu0  ;;  %2565 = vmatmul.mubr.bf16.gmra.mxu1 %v2300_v24 }
 0x2a7   :  { %v2233_v12 = vpack.c.bf16 %v2191_v30, %v2187_v20  ;;  %v2286_v61 = vadd.bf16 %v4360_v56, %v2232_v50 }
 0x2a8   :  { %v2195_v36 = vpop.f32.mrf.mxu0 }
 0x2a9   :  { %v2287_v37 = vadd.bf16 %v4364_v1, %v2233_v12  ;;  %v2302_v45 = vmax.bf16 %v3998_v0, %v2286_v61 }
 0x2aa   :  { %v2197_v41 = vpop.f32.mrf.mxu0 }
 0x2ab   :  { %v2303_v52 = vmax.bf16 %v3998_v0, %v2287_v37 }
 0x2ac   :  { %v2199_v53 = vpop.f32.mrf.mxu0 }
 0x2ad   :  { %v2234_v23 = vpack.c.bf16 %v2199_v53, %v2195_v36  ;;  %2574 = vmatprep.mubr.bf16.mxu1 %v2303_v52 }
 0x2ae   :  { %v2201_v59 = vpop.f32.mrf.mxu0  ;;  %2575 = vmatmul.mubr.bf16.gmra.mxu1 %v2302_v45 }
 0x2af   :  { %v2235_v27 = vpack.c.bf16 %v2201_v59, %v2197_v41  ;;  %v2288_v60 = vadd.bf16 %v4360_v56, %v2234_v23  ;;  %v3767_v23 = vld [vmem:[#allocation11 + $0x74] ss:$8 sps:$4 sm:$0xff]   ;;  %v3765_v59 = vld [vmem:[#allocation11 + $0x70] ss:$8 sps:$4 sm:$0xff]  }
 0x2b0   :  { %v2205_v31 = vpop.f32.mrf.mxu0  ;;  %3033 = vmatprep.subr.bf16.mxu0 %v3767_v23 }
 0x2b1   :  { %v2289_v3 = vadd.bf16 %v4364_v1, %v2235_v27  ;;  %v2304_v9 = vmax.bf16 %v3998_v0, %v2288_v60  ;;  %3034 = vmatpush1.bf16.msra.mxu0 %v3765_v59  ;;  %v3770_v27 = vld [vmem:[#allocation11 + $0x64] ss:$8 sps:$4 sm:$0xff]   ;;  %v3768_v60 = vld [vmem:[#allocation11 + $0x60] ss:$8 sps:$4 sm:$0xff]  }
 0x2b2   :  { %v2207_v6 = vpop.f32.mrf.mxu0  ;;  %3035 = vmatprep.subr.bf16.mxu0 %v3770_v27  ;;  %v4000_v27 = vmov -inf  }
 0x2b3   :  { %v2305_v7 = vmax.bf16 %v3998_v0, %v2289_v3  ;;  %v3771_v3 = vld [vmem:[#allocation11 + $0x50] ss:$8 sps:$4 sm:$0xff]   ;;  %118 = vst [vmem:[#allocation2] sm:$0xf] %v4000_v27 }
 0x2b4   :  { %v2209_v14 = vpop.f32.mrf.mxu0 }
 0x2b5   :  { %v2236_v38 = vpack.c.bf16 %v2209_v14, %v2205_v31  ;;  %2584 = vmatprep.mubr.bf16.mxu1 %v2305_v7  ;;  %3036 = vmatpush1.bf16.msra.mxu0 %v3768_v60  ;;  %v3773_v31 = vld [vmem:[#allocation11 + $0x54] ss:$8 sps:$4 sm:$0xff]   ;;  %v4398_v7 = vpop.f32.mrf.mxu1  ;;  %v3792_v60 = vld [vmem:[#allocation11 + $0xe0] ss:$8 sps:$4 sm:$0xff]  }
 0x2b6   :  { %v2211_v42 = vpop.f32.mrf.mxu0  ;;  %2585 = vmatmul.mubr.bf16.gmra.mxu1 %v2304_v9  ;;  %3037 = vmatprep.subr.bf16.mxu0 %v3773_v31  ;;  %v3782_v9 = vld [vmem:[#allocation11 + $0x24] ss:$8 sps:$4 sm:$0xff]  }
 0x2b7   :  { %v2237_v15 = vpack.c.bf16 %v2211_v42, %v2207_v6  ;;  %v2290_v20 = vadd.bf16 %v4360_v56, %v2236_v38  ;;  %v3779_v6 = vld [vmem:[#allocation11 + $0x34] ss:$8 sps:$4 sm:$0xff]   ;;  %v3780_v38 = vld [vmem:[#allocation11 + $0x20] ss:$8 sps:$4 sm:$0xff]  }
 0x2b8   :  { %v2215_v17 = vpop.f32.mrf.mxu0 }
 0x2b9   :  { %v2291_v22 = vadd.bf16 %v4364_v1, %v2237_v15  ;;  %v2306_v30 = vmax.bf16 %v3998_v0, %v2290_v20  ;;  %3038 = vmatpush1.bf16.msra.mxu0 %v3771_v3  ;;  %v3797_v3 = vld [vmem:[#allocation11 + $0xd4] ss:$8 sps:$4 sm:$0xff]  }
 0x2ba   :  { %v2217_v24 = vpop.f32.mrf.mxu0 }
 0x2bb   :  { %v2307_v50 = vmax.bf16 %v3998_v0, %v2291_v22 }
 0x2bc   :  { %v2219_v12 = vpop.f32.mrf.mxu0 }
 0x2bd   :  { %v2238_v61 = vpack.c.bf16 %v2219_v12, %v2215_v17  ;;  %2594 = vmatprep.mubr.bf16.mxu1 %v2307_v50  ;;  %v3785_v17 = vld [vmem:[#allocation11 + $0x14] ss:$8 sps:$4 sm:$0xff]  }
 0x2be   :  { %v2221_v36 = vpop.f32.mrf.mxu0  ;;  %2595 = vmatmul.mubr.bf16.gmra.mxu1 %v2306_v30 }
 0x2bf   :  { %v2239_v37 = vpack.c.bf16 %v2221_v36, %v2217_v24  ;;  %v2292_v41 = vadd.bf16 %v4360_v56, %v2238_v61  ;;  %v3776_v56 = vld [vmem:[#allocation11 + $0x44] ss:$8 sps:$4 sm:$0xff]   ;;  %v3783_v24 = vld [vmem:[#allocation11 + $0x10] ss:$8 sps:$4 sm:$0xff]   ;;  %v3786_v36 = vld [vmem:[#allocation11] ss:$8 sps:$4 sm:$0xff]  }
 0x2c0   :  { %3039 = vmatprep.subr.bf16.mxu0 %v3776_v56 }
 0x2c1   :  { %v2293_v52 = vadd.bf16 %v4364_v1, %v2239_v37  ;;  %v2308_v53 = vmax.bf16 %v3998_v0, %v2292_v41  ;;  %v3774_v1 = vld [vmem:[#allocation11 + $0x40] ss:$8 sps:$4 sm:$0xff]  }
 0x2c2   :  { %3040 = vmatpush1.bf16.msra.mxu0 %v3774_v1  ;;  %v3795_v1 = vld [vmem:[#allocation11 + $0xd0] ss:$8 sps:$4 sm:$0xff]  }
 0x2c3   :  { %v2309_v45 = vmax.bf16 %v3998_v0, %v2293_v52  ;;  %v3777_v0 = vld [vmem:[#allocation11 + $0x30] ss:$8 sps:$4 sm:$0xff]   ;;  %3041 = vmatprep.subr.bf16.mxu0 %v3779_v6 }
 0x2c5   :  { %2604 = vmatprep.mubr.bf16.mxu1 %v2309_v45  ;;  %v3789_v45 = vld [vmem:[#allocation11 + $0xf0] ss:$8 sps:$4 sm:$0xff]  }
 0x2c6   :  { %2605 = vmatmul.mubr.bf16.gmra.mxu1 %v2308_v53  ;;  %3042 = vmatpush1.bf16.msra.mxu0 %v3777_v0 }
 0x2c7   :  { %3043 = vmatprep.subr.bf16.mxu0 %v3782_v9 }
 0x2ca   :  { %3044 = vmatpush1.bf16.msra.mxu0 %v3780_v38 }
 0x2cb   :  { %3045 = vmatprep.subr.bf16.mxu0 %v3785_v17 }
 0x2ce   :  { %3046 = vmatpush1.bf16.msra.mxu0 %v3783_v24 }
 0x30e   :  { %v1904_v14 = vpop.f32.mrf.mxu1 }
 0x30f   :  { %v4401_v42 = vadd.f32 %v1904_v14, %v4254_v25  ;;  %v3788_v25 = vld [vmem:[#allocation11 + $0x4] ss:$8 sps:$4 sm:$0xff]   ;;  %v3798_v14 = vld [vmem:[#allocation11 + $0xc0] ss:$8 sps:$4 sm:$0xff]  }
 0x310   :  { %v1906_v15 = vpop.f32.mrf.mxu1  ;;  %3047 = vmatprep.subr.bf16.mxu0 %v3788_v25  ;;  %v3806_v25 = vld [vmem:[#allocation11 + $0xa4] ss:$8 sps:$4 sm:$0xff]  }
 0x311   :  { %v4404_v20 = vadd.f32 %v1906_v15, %v4256_v26  ;;  %3048 = vmatpush1.bf16.msra.mxu0 %v3786_v36  ;;  %v3809_v36 = vld [vmem:[#allocation11 + $0x94] ss:$8 sps:$4 sm:$0xff]  }
 0x312   :  { %v1908_v22 = vpop.f32.mrf.mxu1 }
 0x313   :  { %v4407_v50 = vadd.f32 %v1908_v22, %v4258_v29  ;;  %v3791_v29 = vld [vmem:[#allocation11 + $0xf4] ss:$8 sps:$4 sm:$0xff]   ;;  %v3801_v22 = vld [vmem:[#allocation11 + $0xb0] ss:$8 sps:$4 sm:$0xff]  }
 0x314   :  { %v1910_v30 = vpop.f32.mrf.mxu1  ;;  %3049 = vmatprep.subr.bf16.mxu0 %v3791_v29  ;;  %v3807_v29 = vld [vmem:[#allocation11 + $0x90] ss:$8 sps:$4 sm:$0xff]  }
 0x315   :  { %v4410_v12 = vadd.f32 %v1910_v30, %v4260_v33  ;;  %3050 = vmatpush2.bf16.msra.mxu0 %v3789_v45 }
 0x316   :  { %v1914_v61 = vpop.f32.mrf.mxu1 }
 0x317   :  { %v4413_v37 = vadd.f32 %v1914_v61, %v4262_v13  ;;  %v3794_v13 = vld [vmem:[#allocation11 + $0xe4] ss:$8 sps:$4 sm:$0xff]  }
 0x318   :  { %v1916_v26 = vpop.f32.mrf.mxu1  ;;  %3051 = vmatprep.subr.bf16.mxu0 %v3794_v13  ;;  %v3810_v13 = vld [vmem:[#allocation11 + $0x80] ss:$8 sps:$4 sm:$0xff]  }
 0x319   :  { %v4416_v41 = vadd.f32 %v1916_v26, %v4264_v35  ;;  %3052 = vmatpush2.bf16.msra.mxu0 %v3792_v60 }
 0x31a   :  { %v1918_v52 = vpop.f32.mrf.mxu1  ;;  %3053 = vmatprep.subr.bf16.mxu0 %v3797_v3  ;;  %v3813_v3 = vld [vmem:[#allocation12 + $0x78] sm:$0xff]  }
 0x31b   :  { %v4419_v53 = vadd.f32 %v1918_v52, %v4266_v39  ;;  %v3812_v52 = vld [vmem:[#allocation11 + $0x84] ss:$8 sps:$4 sm:$0xff]   ;;  %3526 = vmatprep.subr.bf16.mxu1 %v3813_v3 }
 0x31c   :  { %v1920_v33 = vpop.f32.mrf.mxu1 }
 0x31d   :  { %v4422_v23 = vadd.f32 %v1920_v33, %v4268_v44  ;;  %3054 = vmatpush2.bf16.msra.mxu0 %v3795_v1 }
 0x31e   :  { %v1924_v59 = vpop.f32.mrf.mxu1 }
 0x31f   :  { %v4425_v35 = vadd.f32 %v1924_v59, %v4270_v51  ;;  %v3800_v51 = vld [vmem:[#allocation11 + $0xc4] ss:$8 sps:$4 sm:$0xff]  }
 0x320   :  { %v1926_v31 = vpop.f32.mrf.mxu1  ;;  %3055 = vmatprep.subr.bf16.mxu0 %v3800_v51 }
 0x321   :  { %v4428_v39 = vadd.f32 %v1926_v31, %v4272_v54  ;;  %3056 = vmatpush2.bf16.msra.mxu0 %v3798_v14 }
 0x322   :  { %v1928_v56 = vpop.f32.mrf.mxu1 }
 0x323   :  { %v4431_v44 = vadd.f32 %v1928_v56, %v4274_v58  ;;  %v3803_v58 = vld [vmem:[#allocation11 + $0xb4] ss:$8 sps:$4 sm:$0xff]  }
 0x324   :  { %v1930_v6 = vpop.f32.mrf.mxu1  ;;  %3057 = vmatprep.subr.bf16.mxu0 %v3803_v58  ;;  %v3815_v56 = vld [vmem:[#allocation12 + $0x70] sm:$0xff]  }
 0x325   :  { %v4434_v0 = vadd.f32 %v1930_v6, %v4276_v62  ;;  %3058 = vmatpush2.bf16.msra.mxu0 %v3801_v22 }
 0x326   :  { %v1934_v9 = vpop.f32.mrf.mxu1  ;;  %3059 = vmatprep.subr.bf16.mxu0 %v3806_v25  ;;  %v3821_v25 = vld [vmem:[#allocation12 + $0x58] sm:$0xff]  }
 0x327   :  { %v4437_v38 = vadd.f32 %v1934_v9, %v4278_v2  ;;  %v3804_v2 = vld [vmem:[#allocation11 + $0xa0] ss:$8 sps:$4 sm:$0xff]  }
 0x328   :  { %v1936_v54 = vpop.f32.mrf.mxu1  ;;  %v3817_v9 = vld [vmem:[#allocation12 + $0x68] sm:$0xff]  }
 0x329   :  { %v4440_v15 = vadd.f32 %v1936_v54, %v4280_v5  ;;  %3060 = vmatpush2.bf16.msra.mxu0 %v3804_v2  ;;  %v3820_v2 = vld [vmem:[#allocation12 + $0x20] sm:$0xff]  }
 0x32a   :  { %v1938_v17 = vpop.f32.mrf.mxu1  ;;  %3061 = vmatprep.subr.bf16.mxu0 %v3809_v36 }
 0x32b   :  { %v4443_v24 = vadd.f32 %v1938_v17, %v4282_v8  ;;  %v3819_v17 = vld [vmem:[#allocation12 + $0x60] sm:$0xff]  }
 0x32c   :  { %v1940_v62 = vpop.f32.mrf.mxu1 }
 0x32d   :  { %v4446_v30 = vadd.f32 %v1940_v62, %v4284_v10  ;;  %3062 = vmatpush2.bf16.msra.mxu0 %v3807_v29  ;;  %v3823_v29 = vld [vmem:[#allocation12 + $0x50] sm:$0xff]  }
 0x32e   :  { %v1944_v61 = vpop.f32.mrf.mxu1  ;;  %3063 = vmatprep.subr.bf16.mxu0 %v3812_v52  ;;  %v2647_v52 = vld [vmem:[%s4595_s4] sm:$0x3] }
 0x32f   :  { %v4449_v26 = vadd.f32 %v1944_v61, %v4286_v57 }
 0x330   :  { %v1946_v5 = vpop.f32.mrf.mxu1 }
 0x331   :  { %v4452_v8 = vadd.f32 %v1946_v5, %v4288_v46  ;;  %3064 = vmatpush2.bf16.msra.mxu0 %v3810_v13  ;;  %v3822_v5 = vld [vmem:[#allocation12 + $0x18] sm:$0xff]   ;;  %v3825_v13 = vld [vmem:[#allocation12 + $0x48] sm:$0xff]  }
 0x332   :  { %v1948_v45 = vpop.f32.mrf.mxu1 }
 0x333   :  { %v4455_v10 = vadd.f32 %v1948_v45, %v4290_v18  ;;  %v3814_v18 = vld [vmem:[#allocation12 + $0x38] sm:$0xff]   ;;  %v2655_v45 = vsub.s32 1, %v4119_v19 }
 0x334   :  { %v1950_v33 = vpop.f32.mrf.mxu1  ;;  %3527 = vmatpush3.bf16.msra.mxu1 %v3814_v18  ;;  %v3826_v18 = vld [vmem:[#allocation12 + $0x8] sm:$0xff]  }
 0x335   :  { %v4458_v59 = vadd.f32 %v1950_v33, %v4292_v21  ;;  %3528 = vmatprep.subr.bf16.mxu1 %v3815_v56  ;;  %v3824_v33 = vld [vmem:[#allocation12 + $0x10] sm:$0xff]  }
 0x336   :  { %v1954_v57 = vpop.f32.mrf.mxu1 }
 0x337   :  { %v4461_v27 = vadd.f32 %v1954_v57, %v4294_v49  ;;  %v3816_v49 = vld [vmem:[#allocation12 + $0x30] sm:$0xff]  }
 0x338   :  { %v1956_v60 = vpop.f32.mrf.mxu1  ;;  %3529 = vmatpush3.bf16.msra.mxu1 %v3816_v49 }
 0x339   :  { %v4464_v46 = vadd.f32 %v1956_v60, %v4296_v28  ;;  %3530 = vmatprep.subr.bf16.mxu1 %v3817_v9  ;;  %v4501_v60 = vrot.slane %v2647_v52, %v4129_v32 }
 0x33a   :  { %v1958_v31 = vpop.f32.mrf.mxu1 }
 0x33b   :  { %v4467_v1 = vadd.f32 %v1958_v31, %v4298_v11  ;;  %v3818_v11 = vld [vmem:[#allocation12 + $0x28] sm:$0xff]  }
 0x33c   :  { %v1960_v6 = vpop.f32.mrf.mxu1  ;;  %3531 = vmatpush3.bf16.msra.mxu1 %v3818_v11 }
 0x33d   :  { %v4470_v21 = vadd.f32 %v1960_v6, %v4300_v34  ;;  %3532 = vmatprep.subr.bf16.mxu1 %v3819_v17 }
 0x33e   :  { %v1964_v51 = vpop.f32.mrf.mxu1 }
 0x33f   :  { %v4473_v28 = vadd.f32 %v1964_v51, %v4302_v40 }
 0x340   :  { %v1966_v14 = vpop.f32.mrf.mxu1  ;;  %3533 = vmatpush3.bf16.msra.mxu1 %v3820_v2 }
 0x341   :  { %v4476_v54 = vadd.f32 %v1966_v14, %v4304_v47  ;;  %3534 = vmatprep.subr.bf16.mxu1 %v3821_v25 }
 0x342   :  { %v1968_v58 = vpop.f32.mrf.mxu1 }
 0x343   :  { %v4479_v34 = vadd.f32 %v1968_v58, %v4306_v55 }
 0x344   :  { %v1970_v22 = vpop.f32.mrf.mxu1  ;;  %3535 = vmatpush3.bf16.msra.mxu1 %v3822_v5 }
 0x345   :  { %v4482_v62 = vadd.f32 %v1970_v22, %v4308_v63  ;;  %3536 = vmatprep.subr.bf16.mxu1 %v3823_v29 }
 0x346   :  { %v1974_v40 = vpop.f32.mrf.mxu1 }
 0x347   :  { %v4485_v47 = vadd.f32 %v1974_v40, %v4310_v4 }
 0x348   :  { %v1976_v61 = vpop.f32.mrf.mxu1  ;;  %3537 = vmatpush3.bf16.msra.mxu1 %v3824_v33 }
 0x349   :  { %v4488_v36 = vadd.f32 %v1976_v61, %v4312_v48  ;;  %3538 = vmatprep.subr.bf16.mxu1 %v3825_v13 }
 0x34a   :  { %v1978_v55 = vpop.f32.mrf.mxu1 }
 0x34b   :  { %v4491_v63 = vadd.f32 %v1978_v55, %v4315_v43  ;;  %v4505_v43 = vrot.slane %v2647_v52, %v2655_v45 }
 0x34c   :  { %v4497_v4 = vpop.f32.mrf.mxu1  ;;  %3539 = vmatpush3.bf16.msra.mxu1 %v3826_v18 }
 0x34e   :  { %v2536_v48 = vpop.f32.mrf.mxu1 }
 0x34f   :  { %v2615_v57 = vadd.f32 %v2536_v48, %v4401_v42 }
 0x350   :  { %v2538_v31 = vpop.f32.mrf.mxu1 }
 0x351   :  { %v2616_v3 = vadd.f32 %v2538_v31, %v4404_v20  ;;  %v2659_v6 = vadd.f32 %v4501_v60, %v2615_v57 }
 0x352   :  { %v2540_v56 = vpop.f32.mrf.mxu1 }
 0x353   :  { %v2617_v49 = vadd.f32 %v2540_v56, %v4407_v50  ;;  %v2660_v42 = vadd.f32 %v4505_v43, %v2616_v3  ;;  %v2691_v58 = vmax.f32 %v2659_v6, 0.0 }
 0x354   :  { %v2542_v51 = vpop.f32.mrf.mxu1 }
 0x355   :  { %v2661_v9 = vadd.f32 %v4501_v60, %v2617_v49  ;;  %v2618_v14 = vadd.f32 %v2542_v51, %v4410_v12  ;;  %v2692_v2 = vmax.f32 %v2660_v42, 0.0 }
 0x356   :  { %v2546_v11 = vpop.f32.mrf.mxu1 }
 0x357   :  { %v2693_v17 = vmax.f32 %v2661_v9, 0.0  ;;  %v2662_v20 = vadd.f32 %v4505_v43, %v2618_v14  ;;  %v2619_v22 = vadd.f32 %v2546_v11, %v4413_v37 }
 0x358   :  { %v2548_v40 = vpop.f32.mrf.mxu1 }
 0x359   :  { %v2724_v25 = vmax.f32 %v2691_v58, %v2693_v17  ;;  %v2694_v61 = vmax.f32 %v2662_v20, 0.0  ;;  %v2663_v50 = vadd.f32 %v4501_v60, %v2619_v22  ;;  %v2620_v5 = vadd.f32 %v2548_v40, %v4416_v41 }
 0x35a   :  { %v2550_v55 = vpop.f32.mrf.mxu1 }
 0x35b   :  { %v2737_v29 = vmax.f32 %v2692_v2, %v2694_v61  ;;  %v2695_v52 = vmax.f32 %v2663_v50, 0.0  ;;  %v2664_v12 = vadd.f32 %v4505_v43, %v2620_v5  ;;  %v2621_v33 = vadd.f32 %v2550_v55, %v4419_v53 }
 0x35c   :  { %v2552_v48 = vpop.f32.mrf.mxu1 }
 0x35d   :  { %v2725_v13 = vmax.f32 %v2724_v25, %v2695_v52  ;;  %v2696_v57 = vmax.f32 %v2664_v12, 0.0  ;;  %v2665_v37 = vadd.f32 %v4501_v60, %v2621_v33  ;;  %v2622_v31 = vadd.f32 %v2552_v48, %v4422_v23 }
 0x35e   :  { %v2556_v3 = vpop.f32.mrf.mxu1 }
 0x35f   :  { %v2738_v18 = vmax.f32 %v2737_v29, %v2696_v57  ;;  %v2697_v56 = vmax.f32 %v2665_v37, 0.0  ;;  %v2666_v6 = vadd.f32 %v4505_v43, %v2622_v31  ;;  %v2623_v41 = vadd.f32 %v2556_v3, %v4425_v35 }
 0x360   :  { %v2558_v49 = vpop.f32.mrf.mxu1 }
 0x361   :  { %v2726_v42 = vmax.f32 %v2725_v13, %v2697_v56  ;;  %v2698_v51 = vmax.f32 %v2666_v6, 0.0  ;;  %v2667_v9 = vadd.f32 %v4501_v60, %v2623_v41  ;;  %v2624_v53 = vadd.f32 %v2558_v49, %v4428_v39 }
 0x362   :  { %v2560_v14 = vpop.f32.mrf.mxu1 }
 0x363   :  { %v2739_v11 = vmax.f32 %v2738_v18, %v2698_v51  ;;  %v2699_v58 = vmax.f32 %v2667_v9, 0.0  ;;  %v2668_v17 = vadd.f32 %v4505_v43, %v2624_v53  ;;  %v2625_v23 = vadd.f32 %v2560_v14, %v4431_v44 }
 0x364   :  { %v2562_v20 = vpop.f32.mrf.mxu1 }
 0x365   :  { %v2727_v22 = vmax.f32 %v2726_v42, %v2699_v58  ;;  %v2700_v2 = vmax.f32 %v2668_v17, 0.0  ;;  %v2669_v40 = vadd.f32 %v4501_v60, %v2625_v23  ;;  %v2626_v35 = vadd.f32 %v2562_v20, %v4434_v0 }
 0x366   :  { %v2566_v25 = vpop.f32.mrf.mxu1 }
 0x367   :  { %v2740_v61 = vmax.f32 %v2739_v11, %v2700_v2  ;;  %v2701_v50 = vmax.f32 %v2669_v40, 0.0  ;;  %v2670_v5 = vadd.f32 %v4505_v43, %v2626_v35  ;;  %v2627_v39 = vadd.f32 %v2566_v25, %v4437_v38 }
 0x368   :  { %v2568_v55 = vpop.f32.mrf.mxu1 }
 0x369   :  { %v2728_v29 = vmax.f32 %v2727_v22, %v2701_v50  ;;  %v2702_v52 = vmax.f32 %v2670_v5, 0.0  ;;  %v2671_v12 = vadd.f32 %v4501_v60, %v2627_v39  ;;  %v2628_v44 = vadd.f32 %v2568_v55, %v4440_v15 }
 0x36a   :  { %v2570_v33 = vpop.f32.mrf.mxu1 }
 0x36b   :  { %v2741_v48 = vmax.f32 %v2740_v61, %v2702_v52  ;;  %v2703_v13 = vmax.f32 %v2671_v12, 0.0  ;;  %v2672_v57 = vadd.f32 %v4505_v43, %v2628_v44  ;;  %v2629_v0 = vadd.f32 %v2570_v33, %v4443_v24 }
 0x36c   :  { %v2572_v37 = vpop.f32.mrf.mxu1 }
 0x36d   :  { %v2729_v31 = vmax.f32 %v2728_v29, %v2703_v13  ;;  %v2704_v3 = vmax.f32 %v2672_v57, 0.0  ;;  %v2673_v18 = vadd.f32 %v4501_v60, %v2629_v0  ;;  %v2630_v38 = vadd.f32 %v2572_v37, %v4446_v30 }
 0x36e   :  { %v2576_v56 = vpop.f32.mrf.mxu1 }
 0x36f   :  { %v2742_v6 = vmax.f32 %v2741_v48, %v2704_v3  ;;  %v2705_v41 = vmax.f32 %v2673_v18, 0.0  ;;  %v2674_v49 = vadd.f32 %v4505_v43, %v2630_v38  ;;  %v2631_v15 = vadd.f32 %v2576_v56, %v4449_v26 }
 0x370   :  { %v2578_v42 = vpop.f32.mrf.mxu1 }
 0x371   :  { %v2730_v51 = vmax.f32 %v2729_v31, %v2705_v41  ;;  %v2706_v9 = vmax.f32 %v2674_v49, 0.0  ;;  %v2632_v53 = vadd.f32 %v2578_v42, %v4452_v8  ;;  %v2675_v58 = vadd.f32 %v4501_v60, %v2631_v15 }
 0x372   :  { %v2580_v24 = vpop.f32.mrf.mxu1 }
 0x373   :  { %v2731_v14 = vrot.slane %v2730_v51, 4  ;;  %v2743_v11 = vmax.f32 %v2742_v6, %v2706_v9  ;;  %v2676_v17 = vadd.f32 %v4505_v43, %v2632_v53  ;;  %v2633_v30 = vadd.f32 %v2580_v24, %v4455_v10 }
 0x374   :  { %v2582_v23 = vpop.f32.mrf.mxu1  ;;  %v2707_v50 = vmax.f32 %v2675_v58, 0.0 }
 0x375   :  { %v2732_v20 = vmax.f32 %v2730_v51, %v2731_v14  ;;  %v2744_v22 = vrot.slane %v2743_v11, 4  ;;  %v2634_v2 = vadd.f32 %v2582_v23, %v4458_v59  ;;  %v2677_v26 = vadd.f32 %v4501_v60, %v2633_v30 }
 0x376   :  { %v2586_v40 = vpop.f32.mrf.mxu1  ;;  %v2708_v5 = vmax.f32 %v2676_v17, 0.0 }
 0x377   :  { %v2733_v35 = vrot.slane %v2732_v20, 2  ;;  %v2745_v25 = vmax.f32 %v2743_v11, %v2744_v22  ;;  %v2678_v8 = vadd.f32 %v4505_v43, %v2634_v2  ;;  %v2635_v61 = vadd.f32 %v2586_v40, %v4461_v27 }
 0x378   :  { %v2709_v39 = vmax.f32 %v2677_v26, 0.0  ;;  %v2588_v55 = vpop.f32.mrf.mxu1 }
 0x379   :  { %v2734_v29 = vmax.f32 %v2732_v20, %v2733_v35  ;;  %v2746_v10 = vrot.slane %v2745_v25, 2  ;;  %v2710_v52 = vmax.f32 %v2678_v8, 0.0  ;;  %v2679_v12 = vadd.f32 %v4501_v60, %v2635_v61 }
 0x37a   :  { %v2750_v44 = vmax.f32 %v2707_v50, %v2709_v39  ;;  %v2636_v59 = vadd.f32 %v2588_v55, %v4464_v46  ;;  %v2590_v33 = vpop.f32.mrf.mxu1  ;;  %v1381_v61 = vadd.f32 %v4398_v7, %v4318_v16 }
 0x37b   :  { %v2735_v48 = vrot.slane %v2734_v29, 1  ;;  %v2747_v13 = vmax.f32 %v2745_v25, %v2746_v10  ;;  %v2763_v57 = vmax.f32 %v2708_v5, %v2710_v52  ;;  %v2711_v0 = vmax.f32 %v2679_v12, 0.0 }
 0x37c   :  { %v2680_v37 = vadd.f32 %v4505_v43, %v2636_v59  ;;  %v2637_v27 = vadd.f32 %v2590_v33, %v4467_v1  ;;  %v2592_v31 = vpop.f32.mrf.mxu1 }
 0x37d   :  { %v2748_v3 = vrot.slane %v2747_v13, 1  ;;  %v2751_v18 = vmax.f32 %v2750_v44, %v2711_v0  ;;  %v2638_v38 = vadd.f32 %v2592_v31, %v4470_v21  ;;  %v4553_v49 = vmax.f32 %v2734_v29, %v2735_v48 }
 0x37e   :  { %v2712_v56 = vmax.f32 %v2680_v37, 0.0  ;;  %v2681_v6 = vadd.f32 %v4501_v60, %v2637_v27  ;;  %v2596_v41 = vpop.f32.mrf.mxu1 }
 0x37f   :  { %v4555_v46 = vmax.f32 %v2747_v13, %v2748_v3  ;;  %v2682_v15 = vadd.f32 %v4505_v43, %v2638_v38  ;;  %v2639_v42 = vadd.f32 %v2596_v41, %v4473_v28 }
 0x380   :  { %v2764_v51 = vmax.f32 %v2763_v57, %v2712_v56  ;;  %v2713_v9 = vmax.f32 %v2681_v6, 0.0  ;;  %v2598_v1 = vpop.f32.mrf.mxu1  ;;  %v4001_v56 = vmov 1983009808  }
 0x381   :  { %v2780_v53 = vcombine.low %v4553_v49, %v4555_v46  ;;  %v2714_v24 = vmax.f32 %v2682_v15, 0.0  ;;  %v2683_v21 = vadd.f32 %v4501_v60, %v2639_v42  ;;  %v2640_v14 = vadd.f32 %v2598_v1, %v4476_v54 }
 0x382   :  { %v2752_v11 = vmax.f32 %v2751_v18, %v2713_v9  ;;  %v2600_v58 = vpop.f32.mrf.mxu1 }
 0x383   :  { %v2765_v17 = vmax.f32 %v2764_v51, %v2714_v24  ;;  %v2715_v30 = vmax.f32 %v2683_v21, 0.0  ;;  %v2684_v23 = vadd.f32 %v4505_v43, %v2640_v14  ;;  %v2641_v20 = vadd.f32 %v2600_v58, %v4479_v34 }
 0x384   :  { %v2602_v28 = vpop.f32.mrf.mxu1 }
 0x385   :  { %v2753_v22 = vmax.f32 %v2752_v11, %v2715_v30  ;;  %v2716_v2 = vmax.f32 %v2684_v23, 0.0  ;;  %v2642_v26 = vadd.f32 %v2602_v28, %v4482_v62  ;;  %v2685_v40 = vadd.f32 %v4501_v60, %v2641_v20  ;;  %v2723_v11 = vld [vmem:[#allocation2] sm:$0xf] }
 0x386   :  { %v2606_v35 = vpop.f32.mrf.mxu1  ;;  %v2014_v62 = vadd.f32 %v4497_v4, %v1381_v61 }
 0x387   :  { %v2766_v25 = vmax.f32 %v2765_v17, %v2716_v2  ;;  %v2686_v8 = vadd.f32 %v4505_v43, %v2642_v26  ;;  %v2643_v54 = vadd.f32 %v2606_v35, %v4485_v47  ;;  %v2717_v50 = vmax.f32 %v2685_v40, 0.0  ;;  %v3827_v26 = vld [vmem:[#allocation12 + $0x40] sm:$0xff]  }
 0x388   :  { %v2608_v5 = vpop.f32.mrf.mxu1  ;;  %v3828_v40 = vld [vmem:[#allocation12] sm:$0xff]   ;;  %3540 = vmatprep.subr.bf16.mxu1 %v3827_v26 }
 0x389   :  { %v2718_v39 = vmax.f32 %v2686_v8, 0.0  ;;  %v2687_v34 = vadd.f32 %v4501_v60, %v2643_v54  ;;  %v2644_v55 = vadd.f32 %v2608_v5, %v4488_v36  ;;  %v2754_v29 = vmax.f32 %v2753_v22, %v2717_v50  ;;  %3541 = vmatpush3.bf16.msra.mxu1 %v3828_v40 }
 0x38a   :  { %v2610_v10 = vpop.f32.mrf.mxu1 }
 0x38b   :  { %v2767_v52 = vmax.f32 %v2766_v25, %v2718_v39  ;;  %v2719_v12 = vmax.f32 %v2687_v34, 0.0  ;;  %v2688_v44 = vadd.f32 %v4505_v43, %v2644_v55  ;;  %v2645_v47 = vadd.f32 %v2610_v10, %v4491_v63 }
 0x38c   :  { %v2612_v59 = vpop.f32.mrf.mxu1  ;;  %v2782_v63 = vunpack.c.l.s4 %v4001_v56 }
 0x38d   :  { %v2755_v33 = vmax.f32 %v2754_v29, %v2719_v12  ;;  %v2720_v16 = vmax.f32 %v2688_v44, 0.0  ;;  %v2689_v7 = vadd.f32 %v4501_v60, %v2645_v47  ;;  %v2646_v48 = vadd.f32 %v2612_v59, %v2014_v62 }
 0x38e   :  { %v2783_v60 = vunpack.c.0.s8 %v2782_v63 }
 0x38f   :  { %v2768_v13 = vmax.f32 %v2767_v52, %v2720_v16  ;;  %v2721_v57 = vmax.f32 %v2689_v7, 0.0  ;;  %v2690_v36 = vadd.f32 %v4505_v43, %v2646_v48 }
 0x390   :  { %v2786_v43 = vsub.s32 %v2783_v60, %v4119_v19 }
 0x391   :  { %v2756_v0 = vmax.f32 %v2755_v33, %v2721_v57  ;;  %v2722_v4 = vmax.f32 %v2690_v36, 0.0 }
 0x392   :  { %v2787_v24 = vrot.slane %v2780_v53, %v2786_v43  ;;  %v2861_v53 = vld [vmem:[%s4597_s6] sm:$0x3] }
 0x393   :  { %v2757_v37 = vrot.slane %v2756_v0, 4  ;;  %v2769_v27 = vmax.f32 %v2768_v13, %v2722_v4  ;;  %v2866_v35 = vrot.slane %v2861_v53, %v4129_v32  ;;  %v2870_v25 = vrot.slane %v2861_v53, %v2655_v45  ;;  %v3509_v32 = vld [vmem:[%s4599_s8] ss:$0 sm:$0xff] }
 0x395   :  { %v2758_v31 = vmax.f32 %v2756_v0, %v2757_v37  ;;  %v2770_v3 = vrot.slane %v2769_v27, 4 }
 0x397   :  { %v2759_v18 = vrot.slane %v2758_v31, 2  ;;  %v2771_v38 = vmax.f32 %v2769_v27, %v2770_v3 }
 0x399   :  { %v2760_v6 = vmax.f32 %v2758_v31, %v2759_v18  ;;  %v2772_v41 = vrot.slane %v2771_v38, 2 }
 0x39b   :  { %v2761_v49 = vrot.slane %v2760_v6, 1  ;;  %v2773_v46 = vmax.f32 %v2771_v38, %v2772_v41 }
 0x39d   :  { %v2774_v15 = vrot.slane %v2773_v46, 1  ;;  %v2762_v42 = vmax.f32 %v2760_v6, %v2761_v49 }
 0x39f   :  { %v2775_v51 = vmax.f32 %v2773_v46, %v2774_v15 }
 0x3a1   :  { %v2788_v9 = vcombine.low %v2762_v42, %v2775_v51 }
 0x3a3   :  { %v2795_v1 = vrot.slane %v2788_v9, %v2786_v43 }
 0x3a5   :  { %v2800_v21 = vrot.slane %v2795_v1, 7 }
 0x3a7   :  { %v2802_v14 = vsel %vm2801_vm0, %v2800_v21, %v2787_v24 }
 0x3a8   :  { %v2804_v58 = vsel %vm2803_vm1, %v2800_v21, %v2802_v14 }
 0x3a9   :  { %v2806_v17 = vsel %vm2805_vm2, %v2800_v21, %v2804_v58 }
 0x3aa   :  { %v2808_v30 = vsel %vm2807_vm3, %v2800_v21, %v2806_v17 }
 0x3ab   :  { %v2810_v23 = vmax.f32 %v2723_v11, %v2808_v30 }
 0x3ad   :  { %2811 = vst [vmem:[#allocation2] sm:$0xf] %v2810_v23 }
 0x3b4   :  { %v3476_v20 = vld.sshfl [vmem:[#allocation2] sm:$0x33 pattern:$0x76325410] }
 0x3b5   :  { %v2824_v28 = vcombine.high %v3476_v20, %v3476_v20  ;;  %v2827_v2 = vpack.c.bf16 %v3476_v20, %v3476_v20 }
 0x3b7   :  { %v2828_v22 = vpack.c.bf16 %v2824_v28, %v2824_v28 }
 0x3b9   :  { %3065 = vmatprep.mubr.bf16.mxu0 %v2828_v22 }
 0x3ba   :  { %3066 = vmatmul.mubr.bf16.vlgmr.msra.gmra.mxu0 %v2827_v2 }
 0x47a   :  { %v3067_v8 = vpop.f32.mrf.mxu0 }
 0x47b   :  { %v3068_v54 = vadd.f32 %v3067_v8, %v2866_v35 }
 0x47c   :  { %v3069_v61 = vpop.f32.mrf.mxu0 }
 0x47d   :  { %v3070_v50 = vadd.f32 %v3069_v61, %v2870_v25  ;;  %v3074_v5 = vmax.f32 %v3068_v54, 0.0 }
 0x47e   :  { %v3071_v39 = vpop.f32.mrf.mxu0 }
 0x47f   :  { %v3075_v34 = vmax.f32 %v3070_v50, 0.0  ;;  %v3076_v29 = vpack.c.bf16 %v3074_v5, %v3074_v5 }
 0x480   :  { %v3072_v55 = vpop.f32.mrf.mxu0 }
 0x481   :  { %v3077_v62 = vpack.c.bf16 %v3075_v34, %v3075_v34 }
 0x483   :  { %3245 = vmatprep.mubr.bf16.mxu1 %v3077_v62 }
 0x484   :  { %3246 = vmatmul.mubr.bf16.vlgmr.msra.gmra.mxu1 %v3076_v29 }
 0x544   :  { %v3542_v10 = vpop.f32.mrf.mxu1 }
 0x546   :  { %v3543_v52 = vpop.f32.mrf.mxu1 }
 0x547   :  { %v3544_v19 = vadd.f32 %v3543_v52, %v3542_v10 }
 0x548   :  { %v3545_v45 = vpop.f32.mrf.mxu1 }
 0x549   :  { %v3248_v12 = vadd.f32 %v3544_v19, %v3509_v32 }
 0x54a   :  { %v3546_v44 = vpop.f32.mrf.mxu1 }
 0x54b   :  { %3253 = vst [vmem:[#allocation14] sm:$0x3] %v3248_v12 }
 0x54c   :  { %3967 = shalt.err (!%p3964_p6)
}
 0x54d   :  { %3263 = dma.vmem_to_hbm [thread:$0]  %s3261_s1, 32, %s4600_s9, [#allocation5]  }
 0x54e   :  { %3984 = dma.done.wait [#allocation5], 32  }
 0x54f   :  { %3985 = vsyncadd [#allocation5], 4294967264 }
 0x550   :  { %3267 = vsyncpa [#allocation4], 1 }
 0x551   :  { %3268 = vsyncpa [#allocation7], 1 }
 0x552   :  { %3269 = vsyncpa [#allocation10], 1 }
 0x553   :  { %3270 = vsyncpa [#allocation13], 1 }
 0x554   :  { %3271 = vsyncpa [#allocation5], 1 }

</bundles_post_ra>
